<compile_context>
chip_gen: v6e
topology: v6e:2x2x1
jax: 0.10.0
libtpu: 0.0.40
codegen_flags: <defaults>
</compile_context>

<pallas_src>
import jax
import jax.numpy as jnp
from jax.experimental import pallas as pl
from jax.experimental.pallas import tpu as pltpu


def smallcnn_fused_kernel(z_ref, wc_ref, bc_ref, fcw_ref, fcb_ref, o_ref):
    # z_ref:   (1, 48, TB*256) bf16  phase-plane block, lane = b_local*256 + ph*16 + pw
    # wc_ref:  (64, 48)        bf16  conv weight, row = q*16 + co  (q = 2x2 pool offset)
    # bc_ref:  (16, 1)         f32   conv bias
    # fcw_ref: (16, 256, 128)  f32   fc weight [c, ph*16+pw, out], out zero-padded 10->128
    # fcb_ref: (1, 128)        f32   fc bias (zero-padded)
    # o_ref:   (TB, 128)       f32   padded logits for this block of samples
    tb = o_ref.shape[0]

    # conv for all 4 pool offsets in one MXU push: (64,48) x (48, TB*256) -> (64, TB*256)
    conv = jnp.dot(wc_ref[...], z_ref[0], preferred_element_type=jnp.float32)

    # 2x2 max-pool = max over the 4 pool-offset row groups (sublane-tile aligned slices),
    # then per-channel bias + ReLU6 on the VPU.
    m = jnp.maximum(jnp.maximum(conv[0:16], conv[16:32]),
                    jnp.maximum(conv[32:48], conv[48:64]))          # (16, TB*256)
    m = jnp.clip(m + bc_ref[...], 0.0, 6.0)

    # Dropout(p=0.99) is identity in eval mode.
    # TODO(synk): training-mode dropout (stochastic mask + 1/(1-p) scaling) not implemented.

    # FC with the PyTorch flatten (index c*256 + h*16 + w) folded into the weight layout:
    #   logits[b, o] = sum_c sum_p m[c, b*256+p] * fcw[c, p, o]
    m3 = m.reshape(16, tb, 256)                    # split lanes (b,pos); channel -> leading dim
    acc = jnp.zeros((tb, 128), jnp.float32)
    for c in range(16):                            # leading-dim index of value/ref: cheap
        acc += jnp.dot(m3[c], fcw_ref[c], preferred_element_type=jnp.float32)
    o_ref[...] = acc + fcb_ref[...]


def pack_params(conv_w, conv_b, fc_w, fc_b):
    """Pack weights once (outside the jitted forward)."""
    # Conv weight -> (64, 48): row = q*16 + co (q = qh*2+qw), col = ci*16 + ai*4 + bi,
    # where ai = dh + qh, bi = dw + qw (zero where the kernel tap falls outside the 3x3 window).
    w = jnp.zeros((4, 16, 3, 4, 4), conv_w.dtype)
    for qh in range(2):
        for qw in range(2):
            q = qh * 2 + qw
            w = w.at[q, :, :, qh:qh + 3, qw:qw + 3].set(conv_w)
    wstack = w.reshape(64, 48).astype(jnp.bfloat16)
    bc = conv_b.reshape(16, 1).astype(jnp.float32)
    fcw3 = jnp.pad(fc_w, ((0, 0), (0, 118))).reshape(16, 256, 128).astype(jnp.float32)
    fcb = jnp.pad(fc_b, (0, 118)).reshape(1, 128).astype(jnp.float32)
    return wstack, bc, fcw3, fcb


def _phase_planes(x):
    # x: (B, 3, 32, 32) NCHW -> Z: (B, 48, 256)
    # Z[b, ci*16 + ai*4 + bi, ph*16 + pw] = xpad[b, ci, 2*ph + ai, 2*pw + bi],  ai, bi in [0, 4)
    B = x.shape[0]
    xp = jnp.pad(x, ((0, 0), (0, 0), (1, 1), (1, 1)))
    planes = []
    for ci in range(3):
        for ai in range(4):
            for bi in range(4):
                sl = xp[:, ci, ai:ai + 32:2, bi:bi + 32:2]       # (B, 16, 16)
                planes.append(sl.reshape(B, 256))
    return jnp.stack(planes, axis=1)                              # (B, 48, 256)


def _pick_tb(batch):
    # Keep >=2 grid steps when possible (v7x has 2 TCs; grid axis is "parallel") and keep the
    # output block sublane-aligned (TB multiple of 8, or a single full-array block).
    if batch >= 16:
        tb = min(32, (batch // 2) // 8 * 8)
        return max(tb, 8)
    return batch


@jax.jit
def small_cnn_forward(x, wstack, bc, fcw3, fcb):
    B = x.shape[0]
    TB = _pick_tb(B)
    B_pad = -(-B // TB) * TB
    nb = B_pad // TB

    # Compact conv input (glue only, no 9x im2col blow-up); bf16 halves the streaming DMA.
    z = _phase_planes(x).astype(jnp.bfloat16)                     # (B, 48, 256)
    if B_pad != B:
        z = jnp.pad(z, ((0, B_pad - B), (0, 0), (0, 0)))
    # Re-layout so each grid block is one lane-dense (48, TB*256) slab (lane = b_local*256+pos).
    zblk = z.reshape(nb, TB, 48, 256).transpose(0, 2, 1, 3).reshape(nb, 48, TB * 256)

    out = pl.pallas_call(
        smallcnn_fused_kernel,
        out_shape=jax.ShapeDtypeStruct((B_pad, 128), jnp.float32),
        grid=(nb,),
        in_specs=[
            pl.BlockSpec((1, 48, TB * 256), lambda i: (i, 0, 0)),
            pl.BlockSpec((64, 48), lambda i: (0, 0)),          # constant index_map ->
            pl.BlockSpec((16, 1), lambda i: (0, 0)),           #   weights stay VMEM-resident
            pl.BlockSpec((16, 256, 128), lambda i: (0, 0, 0)),
            pl.BlockSpec((1, 128), lambda i: (0, 0)),
        ],
        out_specs=pl.BlockSpec((TB, 128), lambda i: (i, 0)),
        compiler_params=pltpu.CompilerParams(
            dimension_semantics=("parallel",)),
    )(zblk, wstack, bc, fcw3, fcb)

    return out[:B, :10]


def reference_forward(x, conv_w, conv_b, fc_w, fc_b):
    # Pure-JAX f32 reference of the PyTorch forward (eval mode), for verification.
    B = x.shape[0]
    y = jax.lax.conv_general_dilated(
        x, conv_w, window_strides=(1, 1), padding=((1, 1), (1, 1)),
        dimension_numbers=("NCHW", "OIHW", "NCHW"),
        precision=jax.lax.Precision.HIGHEST)
    y = y + conv_b.reshape(1, 16, 1, 1)
    y = jnp.clip(y, 0.0, 6.0)
    y = y.reshape(B, 16, 16, 2, 16, 2).max(axis=(3, 5))
    flat = y.reshape(B, 16 * 16 * 16)
    return jnp.dot(flat, fc_w, precision=jax.lax.Precision.HIGHEST) + fc_b


if __name__ == "__main__":
    key = jax.random.PRNGKey(0)
    k1, k2, k3, k4, k5 = jax.random.split(key, 5)

    # fc = Linear(16*16*16, 10) implies 32x32 spatial input (pool halves 32 -> 16).
    # B=16 keeps shapes small while exercising the batched path (TB=8, 2 grid steps).
    B = 16
    x = jax.random.normal(k1, (B, 3, 32, 32), jnp.float32)
    conv_w = jax.random.normal(k2, (16, 3, 3, 3), jnp.float32) * 0.1
    conv_b = jax.random.normal(k3, (16,), jnp.float32) * 0.1
    fc_w = jax.random.normal(k4, (16 * 16 * 16, 10), jnp.float32) * 0.02
    fc_b = jax.random.normal(k5, (10,), jnp.float32) * 0.02

    params = pack_params(conv_w, conv_b, fc_w, fc_b)   # packed once, outside the jitted forward
    out = small_cnn_forward(x, *params)
    jax.block_until_ready(out)
    assert out.shape == (B, 10) and out.dtype == jnp.float32

    ref = reference_forward(x, conv_w, conv_b, fc_w, fc_b)
    # bf16 streaming inputs + f32 accumulation -> a couple of 1e-3 of absolute error on O(1) logits.
    assert jnp.allclose(out, ref, rtol=2e-2, atol=2e-2), float(jnp.max(jnp.abs(out - ref)))

    print("KERNEL_OK")
</pallas_src>

<mosaic_0001>
module attributes {stable_mosaic.version = 11 : i64} {
  func.func @smallcnn_fused_kernel(%arg0: i32, %arg1: memref<1x48x2048xbf16, #tpu.memory_space<vmem>>, %arg2: memref<64x48xbf16, #tpu.memory_space<vmem>>, %arg3: memref<16x1xf32, #tpu.memory_space<vmem>>, %arg4: memref<16x256x128xf32, #tpu.memory_space<vmem>>, %arg5: memref<1x128xf32, #tpu.memory_space<vmem>>, %arg6: memref<8x128xf32, #tpu.memory_space<vmem>>) attributes {dimension_semantics = [#tpu.dimension_semantics<parallel>], iteration_bounds = array<i64: 2>, scalar_prefetch = 0 : i64, scratch_operands = 0 : i64, tpu.core_type = #tpu.core_type<tc>, window_params = [{transform_indices = @transform_0, window_bounds = array<i64: 1, 48, 2048>}, {pipeline_mode = #tpu.pipeline_mode<synchronous>, transform_indices = @transform_1, window_bounds = array<i64: 64, 48>}, {pipeline_mode = #tpu.pipeline_mode<synchronous>, transform_indices = @transform_2, window_bounds = array<i64: 16, 1>}, {pipeline_mode = #tpu.pipeline_mode<synchronous>, transform_indices = @transform_3, window_bounds = array<i64: 16, 256, 128>}, {pipeline_mode = #tpu.pipeline_mode<synchronous>, transform_indices = @transform_4, window_bounds = array<i64: 1, 128>}, {transform_indices = @transform_5, window_bounds = array<i64: 8, 128>}]} {
    %c0 = arith.constant 0 : index
    %c0_0 = arith.constant 0 : index
    %0 = vector.load %arg2[%c0, %c0_0] : memref<64x48xbf16, #tpu.memory_space<vmem>>, vector<64x48xbf16>
    %c0_1 = arith.constant 0 : index
    %c0_2 = arith.constant 0 : index
    %c0_3 = arith.constant 0 : index
    %1 = vector.load %arg1[%c0_1, %c0_2, %c0_3] : memref<1x48x2048xbf16, #tpu.memory_space<vmem>>, vector<1x48x2048xbf16>
    %2 = vector.shape_cast %1 : vector<1x48x2048xbf16> to vector<48x2048xbf16>
    %cst = arith.constant dense<0.000000e+00> : vector<64x2048xf32>
    %3 = tpu.matmul %0, %2, %cst {dimension_numbers = #tpu.dot_dimension_numbers<[1], [0], [0], [1], [0, 0, 1, 1], [], []>} : vector<64x48xbf16>, vector<48x2048xbf16>, vector<64x2048xf32> -> vector<64x2048xf32>
    %4 = vector.extract_strided_slice %3 {offsets = [0, 0], sizes = [16, 2048], strides = [1, 1]} : vector<64x2048xf32> to vector<16x2048xf32>
    %5 = vector.extract_strided_slice %3 {offsets = [16, 0], sizes = [16, 2048], strides = [1, 1]} : vector<64x2048xf32> to vector<16x2048xf32>
    %6 = arith.maximumf %4, %5 : vector<16x2048xf32>
    %7 = vector.extract_strided_slice %3 {offsets = [32, 0], sizes = [16, 2048], strides = [1, 1]} : vector<64x2048xf32> to vector<16x2048xf32>
    %8 = vector.extract_strided_slice %3 {offsets = [48, 0], sizes = [16, 2048], strides = [1, 1]} : vector<64x2048xf32> to vector<16x2048xf32>
    %9 = arith.maximumf %7, %8 : vector<16x2048xf32>
    %10 = arith.maximumf %6, %9 : vector<16x2048xf32>
    %c0_4 = arith.constant 0 : index
    %c0_5 = arith.constant 0 : index
    %11 = vector.load %arg3[%c0_4, %c0_5] : memref<16x1xf32, #tpu.memory_space<vmem>>, vector<16x1xf32>
    %12 = vector.broadcast %11 : vector<16x1xf32> to vector<16x2048xf32>
    %13 = arith.addf %10, %12 : vector<16x2048xf32>
    %cst_6 = arith.constant 0.000000e+00 : f32
    %cst_7 = arith.constant 6.000000e+00 : f32
    %14 = vector.broadcast %cst_6 : f32 to vector<16x2048xf32>
    %15 = arith.maximumf %14, %13 : vector<16x2048xf32>
    %16 = vector.broadcast %cst_7 : f32 to vector<16x2048xf32>
    %17 = arith.minimumf %16, %15 : vector<16x2048xf32>
    %18 = vector.shape_cast %17 : vector<16x2048xf32> to vector<16x8x256xf32>
    %cst_8 = arith.constant 0.000000e+00 : f32
    %19 = vector.broadcast %cst_8 : f32 to vector<8x128xf32>
    %20 = vector.extract_strided_slice %18 {offsets = [0, 0, 0], sizes = [1, 8, 256], strides = [1, 1, 1]} : vector<16x8x256xf32> to vector<1x8x256xf32>
    %21 = vector.shape_cast %20 : vector<1x8x256xf32> to vector<8x256xf32>
    %c0_9 = arith.constant 0 : index
    %c0_10 = arith.constant 0 : index
    %c0_11 = arith.constant 0 : index
    %22 = vector.load %arg4[%c0_9, %c0_10, %c0_11] : memref<16x256x128xf32, #tpu.memory_space<vmem>>, vector<1x256x128xf32>
    %23 = vector.shape_cast %22 : vector<1x256x128xf32> to vector<256x128xf32>
    %cst_12 = arith.constant dense<0.000000e+00> : vector<8x128xf32>
    %24 = tpu.matmul %21, %23, %cst_12 {dimension_numbers = #tpu.dot_dimension_numbers<[1], [0], [0], [1], [0, 0, 1, 1], [], []>} : vector<8x256xf32>, vector<256x128xf32>, vector<8x128xf32> -> vector<8x128xf32>
    %25 = arith.addf %19, %24 : vector<8x128xf32>
    %26 = vector.extract_strided_slice %18 {offsets = [1, 0, 0], sizes = [1, 8, 256], strides = [1, 1, 1]} : vector<16x8x256xf32> to vector<1x8x256xf32>
    %27 = vector.shape_cast %26 : vector<1x8x256xf32> to vector<8x256xf32>
    %c1 = arith.constant 1 : index
    %c0_13 = arith.constant 0 : index
    %c0_14 = arith.constant 0 : index
    %28 = vector.load %arg4[%c1, %c0_13, %c0_14] : memref<16x256x128xf32, #tpu.memory_space<vmem>>, vector<1x256x128xf32>
    %29 = vector.shape_cast %28 : vector<1x256x128xf32> to vector<256x128xf32>
    %cst_15 = arith.constant dense<0.000000e+00> : vector<8x128xf32>
    %30 = tpu.matmul %27, %29, %cst_15 {dimension_numbers = #tpu.dot_dimension_numbers<[1], [0], [0], [1], [0, 0, 1, 1], [], []>} : vector<8x256xf32>, vector<256x128xf32>, vector<8x128xf32> -> vector<8x128xf32>
    %31 = arith.addf %25, %30 : vector<8x128xf32>
    %32 = vector.extract_strided_slice %18 {offsets = [2, 0, 0], sizes = [1, 8, 256], strides = [1, 1, 1]} : vector<16x8x256xf32> to vector<1x8x256xf32>
    %33 = vector.shape_cast %32 : vector<1x8x256xf32> to vector<8x256xf32>
    %c2 = arith.constant 2 : index
    %c0_16 = arith.constant 0 : index
    %c0_17 = arith.constant 0 : index
    %34 = vector.load %arg4[%c2, %c0_16, %c0_17] : memref<16x256x128xf32, #tpu.memory_space<vmem>>, vector<1x256x128xf32>
    %35 = vector.shape_cast %34 : vector<1x256x128xf32> to vector<256x128xf32>
    %cst_18 = arith.constant dense<0.000000e+00> : vector<8x128xf32>
    %36 = tpu.matmul %33, %35, %cst_18 {dimension_numbers = #tpu.dot_dimension_numbers<[1], [0], [0], [1], [0, 0, 1, 1], [], []>} : vector<8x256xf32>, vector<256x128xf32>, vector<8x128xf32> -> vector<8x128xf32>
    %37 = arith.addf %31, %36 : vector<8x128xf32>
    %38 = vector.extract_strided_slice %18 {offsets = [3, 0, 0], sizes = [1, 8, 256], strides = [1, 1, 1]} : vector<16x8x256xf32> to vector<1x8x256xf32>
    %39 = vector.shape_cast %38 : vector<1x8x256xf32> to vector<8x256xf32>
    %c3 = arith.constant 3 : index
    %c0_19 = arith.constant 0 : index
    %c0_20 = arith.constant 0 : index
    %40 = vector.load %arg4[%c3, %c0_19, %c0_20] : memref<16x256x128xf32, #tpu.memory_space<vmem>>, vector<1x256x128xf32>
    %41 = vector.shape_cast %40 : vector<1x256x128xf32> to vector<256x128xf32>
    %cst_21 = arith.constant dense<0.000000e+00> : vector<8x128xf32>
    %42 = tpu.matmul %39, %41, %cst_21 {dimension_numbers = #tpu.dot_dimension_numbers<[1], [0], [0], [1], [0, 0, 1, 1], [], []>} : vector<8x256xf32>, vector<256x128xf32>, vector<8x128xf32> -> vector<8x128xf32>
    %43 = arith.addf %37, %42 : vector<8x128xf32>
    %44 = vector.extract_strided_slice %18 {offsets = [4, 0, 0], sizes = [1, 8, 256], strides = [1, 1, 1]} : vector<16x8x256xf32> to vector<1x8x256xf32>
    %45 = vector.shape_cast %44 : vector<1x8x256xf32> to vector<8x256xf32>
    %c4 = arith.constant 4 : index
    %c0_22 = arith.constant 0 : index
    %c0_23 = arith.constant 0 : index
    %46 = vector.load %arg4[%c4, %c0_22, %c0_23] : memref<16x256x128xf32, #tpu.memory_space<vmem>>, vector<1x256x128xf32>
    %47 = vector.shape_cast %46 : vector<1x256x128xf32> to vector<256x128xf32>
    %cst_24 = arith.constant dense<0.000000e+00> : vector<8x128xf32>
    %48 = tpu.matmul %45, %47, %cst_24 {dimension_numbers = #tpu.dot_dimension_numbers<[1], [0], [0], [1], [0, 0, 1, 1], [], []>} : vector<8x256xf32>, vector<256x128xf32>, vector<8x128xf32> -> vector<8x128xf32>
    %49 = arith.addf %43, %48 : vector<8x128xf32>
    %50 = vector.extract_strided_slice %18 {offsets = [5, 0, 0], sizes = [1, 8, 256], strides = [1, 1, 1]} : vector<16x8x256xf32> to vector<1x8x256xf32>
    %51 = vector.shape_cast %50 : vector<1x8x256xf32> to vector<8x256xf32>
    %c5 = arith.constant 5 : index
    %c0_25 = arith.constant 0 : index
    %c0_26 = arith.constant 0 : index
    %52 = vector.load %arg4[%c5, %c0_25, %c0_26] : memref<16x256x128xf32, #tpu.memory_space<vmem>>, vector<1x256x128xf32>
    %53 = vector.shape_cast %52 : vector<1x256x128xf32> to vector<256x128xf32>
    %cst_27 = arith.constant dense<0.000000e+00> : vector<8x128xf32>
    %54 = tpu.matmul %51, %53, %cst_27 {dimension_numbers = #tpu.dot_dimension_numbers<[1], [0], [0], [1], [0, 0, 1, 1], [], []>} : vector<8x256xf32>, vector<256x128xf32>, vector<8x128xf32> -> vector<8x128xf32>
    %55 = arith.addf %49, %54 : vector<8x128xf32>
    %56 = vector.extract_strided_slice %18 {offsets = [6, 0, 0], sizes = [1, 8, 256], strides = [1, 1, 1]} : vector<16x8x256xf32> to vector<1x8x256xf32>
    %57 = vector.shape_cast %56 : vector<1x8x256xf32> to vector<8x256xf32>
    %c6 = arith.constant 6 : index
    %c0_28 = arith.constant 0 : index
    %c0_29 = arith.constant 0 : index
    %58 = vector.load %arg4[%c6, %c0_28, %c0_29] : memref<16x256x128xf32, #tpu.memory_space<vmem>>, vector<1x256x128xf32>
    %59 = vector.shape_cast %58 : vector<1x256x128xf32> to vector<256x128xf32>
    %cst_30 = arith.constant dense<0.000000e+00> : vector<8x128xf32>
    %60 = tpu.matmul %57, %59, %cst_30 {dimension_numbers = #tpu.dot_dimension_numbers<[1], [0], [0], [1], [0, 0, 1, 1], [], []>} : vector<8x256xf32>, vector<256x128xf32>, vector<8x128xf32> -> vector<8x128xf32>
    %61 = arith.addf %55, %60 : vector<8x128xf32>
    %62 = vector.extract_strided_slice %18 {offsets = [7, 0, 0], sizes = [1, 8, 256], strides = [1, 1, 1]} : vector<16x8x256xf32> to vector<1x8x256xf32>
    %63 = vector.shape_cast %62 : vector<1x8x256xf32> to vector<8x256xf32>
    %c7 = arith.constant 7 : index
    %c0_31 = arith.constant 0 : index
    %c0_32 = arith.constant 0 : index
    %64 = vector.load %arg4[%c7, %c0_31, %c0_32] : memref<16x256x128xf32, #tpu.memory_space<vmem>>, vector<1x256x128xf32>
    %65 = vector.shape_cast %64 : vector<1x256x128xf32> to vector<256x128xf32>
    %cst_33 = arith.constant dense<0.000000e+00> : vector<8x128xf32>
    %66 = tpu.matmul %63, %65, %cst_33 {dimension_numbers = #tpu.dot_dimension_numbers<[1], [0], [0], [1], [0, 0, 1, 1], [], []>} : vector<8x256xf32>, vector<256x128xf32>, vector<8x128xf32> -> vector<8x128xf32>
    %67 = arith.addf %61, %66 : vector<8x128xf32>
    %68 = vector.extract_strided_slice %18 {offsets = [8, 0, 0], sizes = [1, 8, 256], strides = [1, 1, 1]} : vector<16x8x256xf32> to vector<1x8x256xf32>
    %69 = vector.shape_cast %68 : vector<1x8x256xf32> to vector<8x256xf32>
    %c8 = arith.constant 8 : index
    %c0_34 = arith.constant 0 : index
    %c0_35 = arith.constant 0 : index
    %70 = vector.load %arg4[%c8, %c0_34, %c0_35] : memref<16x256x128xf32, #tpu.memory_space<vmem>>, vector<1x256x128xf32>
    %71 = vector.shape_cast %70 : vector<1x256x128xf32> to vector<256x128xf32>
    %cst_36 = arith.constant dense<0.000000e+00> : vector<8x128xf32>
    %72 = tpu.matmul %69, %71, %cst_36 {dimension_numbers = #tpu.dot_dimension_numbers<[1], [0], [0], [1], [0, 0, 1, 1], [], []>} : vector<8x256xf32>, vector<256x128xf32>, vector<8x128xf32> -> vector<8x128xf32>
    %73 = arith.addf %67, %72 : vector<8x128xf32>
    %74 = vector.extract_strided_slice %18 {offsets = [9, 0, 0], sizes = [1, 8, 256], strides = [1, 1, 1]} : vector<16x8x256xf32> to vector<1x8x256xf32>
    %75 = vector.shape_cast %74 : vector<1x8x256xf32> to vector<8x256xf32>
    %c9 = arith.constant 9 : index
    %c0_37 = arith.constant 0 : index
    %c0_38 = arith.constant 0 : index
    %76 = vector.load %arg4[%c9, %c0_37, %c0_38] : memref<16x256x128xf32, #tpu.memory_space<vmem>>, vector<1x256x128xf32>
    %77 = vector.shape_cast %76 : vector<1x256x128xf32> to vector<256x128xf32>
    %cst_39 = arith.constant dense<0.000000e+00> : vector<8x128xf32>
    %78 = tpu.matmul %75, %77, %cst_39 {dimension_numbers = #tpu.dot_dimension_numbers<[1], [0], [0], [1], [0, 0, 1, 1], [], []>} : vector<8x256xf32>, vector<256x128xf32>, vector<8x128xf32> -> vector<8x128xf32>
    %79 = arith.addf %73, %78 : vector<8x128xf32>
    %80 = vector.extract_strided_slice %18 {offsets = [10, 0, 0], sizes = [1, 8, 256], strides = [1, 1, 1]} : vector<16x8x256xf32> to vector<1x8x256xf32>
    %81 = vector.shape_cast %80 : vector<1x8x256xf32> to vector<8x256xf32>
    %c10 = arith.constant 10 : index
    %c0_40 = arith.constant 0 : index
    %c0_41 = arith.constant 0 : index
    %82 = vector.load %arg4[%c10, %c0_40, %c0_41] : memref<16x256x128xf32, #tpu.memory_space<vmem>>, vector<1x256x128xf32>
    %83 = vector.shape_cast %82 : vector<1x256x128xf32> to vector<256x128xf32>
    %cst_42 = arith.constant dense<0.000000e+00> : vector<8x128xf32>
    %84 = tpu.matmul %81, %83, %cst_42 {dimension_numbers = #tpu.dot_dimension_numbers<[1], [0], [0], [1], [0, 0, 1, 1], [], []>} : vector<8x256xf32>, vector<256x128xf32>, vector<8x128xf32> -> vector<8x128xf32>
    %85 = arith.addf %79, %84 : vector<8x128xf32>
    %86 = vector.extract_strided_slice %18 {offsets = [11, 0, 0], sizes = [1, 8, 256], strides = [1, 1, 1]} : vector<16x8x256xf32> to vector<1x8x256xf32>
    %87 = vector.shape_cast %86 : vector<1x8x256xf32> to vector<8x256xf32>
    %c11 = arith.constant 11 : index
    %c0_43 = arith.constant 0 : index
    %c0_44 = arith.constant 0 : index
    %88 = vector.load %arg4[%c11, %c0_43, %c0_44] : memref<16x256x128xf32, #tpu.memory_space<vmem>>, vector<1x256x128xf32>
    %89 = vector.shape_cast %88 : vector<1x256x128xf32> to vector<256x128xf32>
    %cst_45 = arith.constant dense<0.000000e+00> : vector<8x128xf32>
    %90 = tpu.matmul %87, %89, %cst_45 {dimension_numbers = #tpu.dot_dimension_numbers<[1], [0], [0], [1], [0, 0, 1, 1], [], []>} : vector<8x256xf32>, vector<256x128xf32>, vector<8x128xf32> -> vector<8x128xf32>
    %91 = arith.addf %85, %90 : vector<8x128xf32>
    %92 = vector.extract_strided_slice %18 {offsets = [12, 0, 0], sizes = [1, 8, 256], strides = [1, 1, 1]} : vector<16x8x256xf32> to vector<1x8x256xf32>
    %93 = vector.shape_cast %92 : vector<1x8x256xf32> to vector<8x256xf32>
    %c12 = arith.constant 12 : index
    %c0_46 = arith.constant 0 : index
    %c0_47 = arith.constant 0 : index
    %94 = vector.load %arg4[%c12, %c0_46, %c0_47] : memref<16x256x128xf32, #tpu.memory_space<vmem>>, vector<1x256x128xf32>
    %95 = vector.shape_cast %94 : vector<1x256x128xf32> to vector<256x128xf32>
    %cst_48 = arith.constant dense<0.000000e+00> : vector<8x128xf32>
    %96 = tpu.matmul %93, %95, %cst_48 {dimension_numbers = #tpu.dot_dimension_numbers<[1], [0], [0], [1], [0, 0, 1, 1], [], []>} : vector<8x256xf32>, vector<256x128xf32>, vector<8x128xf32> -> vector<8x128xf32>
    %97 = arith.addf %91, %96 : vector<8x128xf32>
    %98 = vector.extract_strided_slice %18 {offsets = [13, 0, 0], sizes = [1, 8, 256], strides = [1, 1, 1]} : vector<16x8x256xf32> to vector<1x8x256xf32>
    %99 = vector.shape_cast %98 : vector<1x8x256xf32> to vector<8x256xf32>
    %c13 = arith.constant 13 : index
    %c0_49 = arith.constant 0 : index
    %c0_50 = arith.constant 0 : index
    %100 = vector.load %arg4[%c13, %c0_49, %c0_50] : memref<16x256x128xf32, #tpu.memory_space<vmem>>, vector<1x256x128xf32>
    %101 = vector.shape_cast %100 : vector<1x256x128xf32> to vector<256x128xf32>
    %cst_51 = arith.constant dense<0.000000e+00> : vector<8x128xf32>
    %102 = tpu.matmul %99, %101, %cst_51 {dimension_numbers = #tpu.dot_dimension_numbers<[1], [0], [0], [1], [0, 0, 1, 1], [], []>} : vector<8x256xf32>, vector<256x128xf32>, vector<8x128xf32> -> vector<8x128xf32>
    %103 = arith.addf %97, %102 : vector<8x128xf32>
    %104 = vector.extract_strided_slice %18 {offsets = [14, 0, 0], sizes = [1, 8, 256], strides = [1, 1, 1]} : vector<16x8x256xf32> to vector<1x8x256xf32>
    %105 = vector.shape_cast %104 : vector<1x8x256xf32> to vector<8x256xf32>
    %c14 = arith.constant 14 : index
    %c0_52 = arith.constant 0 : index
    %c0_53 = arith.constant 0 : index
    %106 = vector.load %arg4[%c14, %c0_52, %c0_53] : memref<16x256x128xf32, #tpu.memory_space<vmem>>, vector<1x256x128xf32>
    %107 = vector.shape_cast %106 : vector<1x256x128xf32> to vector<256x128xf32>
    %cst_54 = arith.constant dense<0.000000e+00> : vector<8x128xf32>
    %108 = tpu.matmul %105, %107, %cst_54 {dimension_numbers = #tpu.dot_dimension_numbers<[1], [0], [0], [1], [0, 0, 1, 1], [], []>} : vector<8x256xf32>, vector<256x128xf32>, vector<8x128xf32> -> vector<8x128xf32>
    %109 = arith.addf %103, %108 : vector<8x128xf32>
    %110 = vector.extract_strided_slice %18 {offsets = [15, 0, 0], sizes = [1, 8, 256], strides = [1, 1, 1]} : vector<16x8x256xf32> to vector<1x8x256xf32>
    %111 = vector.shape_cast %110 : vector<1x8x256xf32> to vector<8x256xf32>
    %c15 = arith.constant 15 : index
    %c0_55 = arith.constant 0 : index
    %c0_56 = arith.constant 0 : index
    %112 = vector.load %arg4[%c15, %c0_55, %c0_56] : memref<16x256x128xf32, #tpu.memory_space<vmem>>, vector<1x256x128xf32>
    %113 = vector.shape_cast %112 : vector<1x256x128xf32> to vector<256x128xf32>
    %cst_57 = arith.constant dense<0.000000e+00> : vector<8x128xf32>
    %114 = tpu.matmul %111, %113, %cst_57 {dimension_numbers = #tpu.dot_dimension_numbers<[1], [0], [0], [1], [0, 0, 1, 1], [], []>} : vector<8x256xf32>, vector<256x128xf32>, vector<8x128xf32> -> vector<8x128xf32>
    %115 = arith.addf %109, %114 : vector<8x128xf32>
    %c0_58 = arith.constant 0 : index
    %c0_59 = arith.constant 0 : index
    %116 = vector.load %arg5[%c0_58, %c0_59] : memref<1x128xf32, #tpu.memory_space<vmem>>, vector<1x128xf32>
    %117 = vector.broadcast %116 : vector<1x128xf32> to vector<8x128xf32>
    %118 = arith.addf %115, %117 : vector<8x128xf32>
    %c0_60 = arith.constant 0 : index
    %c0_61 = arith.constant 0 : index
    %119 = vector.load %arg6[%c0_60, %c0_61] : memref<8x128xf32, #tpu.memory_space<vmem>>, vector<8x128xf32>
    tpu.vector_store %arg6[%c0_60, %c0_61], %118 {strides = array<i32>} : memref<8x128xf32, #tpu.memory_space<vmem>>, vector<8x128xf32>,
    return
  }
  func.func @transform_0(%arg0: i32) -> (i32, i32, i32) {
    %c0_i32 = arith.constant 0 : i32
    %c0_i32_0 = arith.constant 0 : i32
    %c0_i32_1 = arith.constant 0 : i32
    return %arg0, %c0_i32, %c0_i32_0 : i32, i32, i32
  }
  func.func @transform_1(%arg0: i32) -> (i32, i32) {
    %c0_i32 = arith.constant 0 : i32
    %c0_i32_0 = arith.constant 0 : i32
    %c0_i32_1 = arith.constant 0 : i32
    return %c0_i32, %c0_i32_0 : i32, i32
  }
  func.func @transform_2(%arg0: i32) -> (i32, i32) {
    %c0_i32 = arith.constant 0 : i32
    %c0_i32_0 = arith.constant 0 : i32
    %c0_i32_1 = arith.constant 0 : i32
    return %c0_i32, %c0_i32_0 : i32, i32
  }
  func.func @transform_3(%arg0: i32) -> (i32, i32, i32) {
    %c0_i32 = arith.constant 0 : i32
    %c0_i32_0 = arith.constant 0 : i32
    %c0_i32_1 = arith.constant 0 : i32
    %c0_i32_2 = arith.constant 0 : i32
    return %c0_i32, %c0_i32_0, %c0_i32_1 : i32, i32, i32
  }
  func.func @transform_4(%arg0: i32) -> (i32, i32) {
    %c0_i32 = arith.constant 0 : i32
    %c0_i32_0 = arith.constant 0 : i32
    %c0_i32_1 = arith.constant 0 : i32
    return %c0_i32, %c0_i32_0 : i32, i32
  }
  func.func @transform_5(%arg0: i32) -> (i32, i32) {
    %c0_i32 = arith.constant 0 : i32
    %c0_i32_0 = arith.constant 0 : i32
    return %arg0, %c0_i32 : i32, i32
  }
}

</mosaic_0001>

<bundles_post_ra>
// kernel: small_cnn_forward.1
= control target key start
LH: loop header
LB: loop body
LE: loop exit
PB: predicated region body
PF: predicated region fallthrough
CT: control target
= control target key end

     0   :  { %10 = vsyncpa [#allocation3], 0  ;;  %s7392_s0 = inlined_call_operand.vmem [shape: bf16[2,48,2048], index: 0, kind: input, shape index: {}]   ;;  %s7393_s1 = inlined_call_operand.vmem [shape: bf16[64,48], index: 1, kind: input, shape index: {}]   ;;  %s7394_s2 = inlined_call_operand.vmem [shape: f32[16,1], index: 2, kind: input, shape index: {}]   ;;  %s7395_s3 = inlined_call_operand.vmem [shape: f32[16,256,128], index: 3, kind: input, shape index: {}]   ;;  %s7396_s4 = inlined_call_operand.vmem [shape: f32[1,128], index: 4, kind: input, shape index: {}]   ;;  %s7397_s5 = inlined_call_operand.hbm [shape: f32[16,128], index: 5, kind: output, shape index: {}]  }
   0x1   :  { %12 = vsyncpa [#allocation3 + $0x1], 0  ;;  %s4907_s18 = smov 0   ;;  %s4909_s19 = smov 0  }
   0x2   :  { %s4911_s20 = smov 0   ;;  %s4913_s21 = smov 0  }
   0x3 LB: > { %s4928_s22 = sadd.s32 4294967295, %s4871_s21   ;;  %s3628_s23 = sadd.s32 4294967294, %s4871_s21   ;;  %s4871_s21 = sphi %s4913_s21, %s7432_s21   ;;  %s4867_s20 = sphi %s4911_s20, %s7431_s20   ;;  %s4863_s19 = sphi %s4909_s19, %s7430_s19   ;;  %s4859_s18 = sphi %s4907_s18, %s7429_s18  }
   0x4   : > { %s4932_s24 = sadd.s32 1, %s4871_s21   ;;  %s135_s25 = sadd.s32 1, %s4867_s20 }
   0x5   : > { %s132_s26 = ssub.s32 %s4871_s21, %s4932_s24  ;;  %p145_p0 = scmp.ne.s32.totalorder %s4867_s20, %s4863_s19 }
   0x6   : > { %p133_p1 = scmp.eq.s32.totalorder %s132_s26, 0  ;;  %p146_p2 = scmp.eq.s32.totalorder %s4928_s22, 1 }
   0x7   : > { %p151_p3 = scmp.ne.s32.totalorder %s4863_s19, %s4859_s18  ;;  %p152_p4 = scmp.eq.s32.totalorder %s3628_s23, 1 }
   0x8   : > { %s4943_s27 = scalar_select %p133_p1, %s4867_s20, %s135_s25  }
   0x9   : > { %p4945_p5 = por %p146_p2, %p145_p0  ;;  %p4949_p6 = por %p152_p4, %p151_p3 }
   0xa   : > { %p3631_p7 = scmp.ge.s32.totalorder %s4871_s21, 1  ;;  %p190_p8 = scmp.lt.s32.totalorder %s4871_s21, 3 }
   0xc   : > { %p191_p9 = pnand %p3631_p7, %p190_p8 }
   0xe   : > { %194 = sbr.rel (%p191_p9) target bundleno = 835 (0x343), region = 40 }
  0x13   : > { %p218_p10 = scmp.lt.s32.totalorder %s4928_s22, 1  ;;  %v4873_v0 = vmov 0   ;;  %v1233_v1 = vld [vmem:[%s7394_s2] sm:$0xff]  ;;  %v1234_v2 = vld [vmem:[%s7394_s2 + $0x8] sm:$0xff]  ;;  %vm540_vm0 = vcmask 392192   ;;  %v5024_v59 = vld [vmem:[%s7393_s1 + $0x10] sm:$0xff]  }
  0x14   : > { %585 = vmatprep.mubr.bf16.mxu0 %v4873_v0  ;;  %658 = vmatprep.mubr.bf16.mxu1 %v4873_v0  ;;  %v4990_v33 = vld [vmem:[%s7393_s1] sm:$0xff]   ;;  %v5009_v50 = vld [vmem:[%s7393_s1 + $0x8] sm:$0xff]   ;;  %v5035_v60 = vld [vmem:[%s7393_s1 + $0x18] sm:$0xff]   ;;  %s4200_s10 = sshll.u32 %s4928_s22, 7  ;;  %s4876_s23 = smov [#allocation2]  }
  0x15   : > { %s219_s30 = scalar_select %p218_p10, %s4928_s22, 1  ;;  %4806 = vset.pattern.permute.xlu0 %v4873_v0 }
  0x16   : > { %1237 = vperm.xlu0 %4806, %v1233_v1   ;;  %s3567_s15 = scalar_lea.hbm %s7397_s5, %s4200_s10  ;;  %s4815_s25 = sshll.u32 %s4876_s23, 4  ;;  %s4816_s25 = int_to_ptr.vmem [resolvable:$false] %s4815_s25 }
  0x17   : > { %s4763_s6 = smul.u32 384, %s219_s30  ;;  %s4817_s22 = scalar_lea.vmem %s4816_s25, 256 }
  0x19   : > { %s4966_s11 = scalar_lea.vmem %s7392_s0, %s4763_s6  ;;  %s215_s6 = sand.u32 1, %s4863_s19  }
  0x1a   : > { %v264_v3 = vld [vmem:[%s4966_s11 + $0x100] sm:$0xff]  ;;  %v265_v5 = vld [vmem:[%s4966_s11 + $0x108] sm:$0xff]  ;;  %1242 = vperm.xlu0 %4806, %v1234_v2   ;;  %v266_v25 = vld [vmem:[%s4966_s11 + $0x110] sm:$0xff]  ;;  %s3632_s7 = sshll.u32 %s215_s6, 3  ;;  %s3556_s16 = scalar_lea.sflag [#allocation3], %s215_s6 }
  0x1b   : > { %v272_v4 = vld [vmem:[%s4966_s11 + $0x140] sm:$0xff]  ;;  %v273_v7 = vld [vmem:[%s4966_s11 + $0x148] sm:$0xff]  ;;  %v274_v26 = vld [vmem:[%s4966_s11 + $0x150] sm:$0xff] }
  0x1c   : > { %v3671_v6 = vcombine.high %v264_v3, %v272_v4  ;;  %v3670_v8 = vcombine.low %v264_v3, %v272_v4  ;;  %v248_v9 = vld [vmem:[%s4966_s11 + $0x80] sm:$0xff]  ;;  %v3673_v11 = vcombine.high %v265_v5, %v273_v7  ;;  %v3672_v12 = vcombine.low %v265_v5, %v273_v7  ;;  %v249_v14 = vld [vmem:[%s4966_s11 + $0x88] sm:$0xff]  ;;  %v267_v27 = vld [vmem:[%s4966_s11 + $0x118] sm:$0xff] }
  0x1d   : > { %v256_v10 = vld [vmem:[%s4966_s11 + $0xc0] sm:$0xff]  ;;  %v257_v15 = vld [vmem:[%s4966_s11 + $0xc8] sm:$0xff]  ;;  %v275_v28 = vld [vmem:[%s4966_s11 + $0x158] sm:$0xff]  ;;  %v3675_v31 = vcombine.high %v266_v25, %v274_v26  ;;  %v3674_v36 = vcombine.low %v266_v25, %v274_v26 }
  0x1e   : > { %v3655_v13 = vcombine.high %v248_v9, %v256_v10  ;;  %v232_v16 = vld [vmem:[%s4966_s11] sm:$0xff]  ;;  %563 = vmatprep.subr.bf16.mxu0 %v3671_v6  ;;  %v3657_v17 = vcombine.high %v249_v14, %v257_v15  ;;  %v233_v19 = vld [vmem:[%s4966_s11 + $0x8] sm:$0xff]  ;;  %636 = vmatprep.subr.bf16.mxu1 %v3673_v11  ;;  %v3654_v21 = vcombine.low %v248_v9, %v256_v10  ;;  %v250_v34 = vld [vmem:[%s4966_s11 + $0x90] sm:$0xff] }
  0x1f   : > { %v240_v18 = vld [vmem:[%s4966_s11 + $0x40] sm:$0xff]  ;;  %v241_v20 = vld [vmem:[%s4966_s11 + $0x48] sm:$0xff]  ;;  %564 = vmatpush1.bf16.msra.mxu0 %v3670_v8  ;;  %637 = vmatpush1.bf16.msra.mxu1 %v3672_v12  ;;  %v3656_v22 = vcombine.low %v249_v14, %v257_v15  ;;  %v3677_v32 = vcombine.high %v267_v27, %v275_v28  ;;  %v258_v35 = vld [vmem:[%s4966_s11 + $0xd0] sm:$0xff]  ;;  %v3676_v39 = vcombine.low %v267_v27, %v275_v28 }
  0x20   : > { %565 = vmatprep.subr.bf16.mxu0 %v3655_v13  ;;  %v3639_v23 = vcombine.high %v232_v16, %v240_v18  ;;  %638 = vmatprep.subr.bf16.mxu1 %v3657_v17  ;;  %v3641_v24 = vcombine.high %v233_v19, %v241_v20  ;;  %v3638_v29 = vcombine.low %v232_v16, %v240_v18  ;;  %v251_v37 = vld [vmem:[%s4966_s11 + $0x98] sm:$0xff]  ;;  %v234_v41 = vld [vmem:[%s4966_s11 + $0x10] sm:$0xff]  ;;  %v268_v51 = vld [vmem:[%s4966_s11 + $0x120] sm:$0xff] }
  0x21   : > { %v3640_v30 = vcombine.low %v233_v19, %v241_v20  ;;  %v259_v38 = vld [vmem:[%s4966_s11 + $0xd8] sm:$0xff]  ;;  %v3659_v40 = vcombine.high %v250_v34, %v258_v35  ;;  %v242_v42 = vld [vmem:[%s4966_s11 + $0x50] sm:$0xff]  ;;  %v3658_v46 = vcombine.low %v250_v34, %v258_v35  ;;  %v276_v52 = vld [vmem:[%s4966_s11 + $0x160] sm:$0xff] }
  0x22   : > { %v3661_v43 = vcombine.high %v251_v37, %v259_v38  ;;  %v235_v44 = vld [vmem:[%s4966_s11 + $0x18] sm:$0xff]  ;;  %v3660_v47 = vcombine.low %v251_v37, %v259_v38  ;;  %v3643_v48 = vcombine.high %v234_v41, %v242_v42  ;;  %v269_v53 = vld [vmem:[%s4966_s11 + $0x128] sm:$0xff]  ;;  %v3642_v55 = vcombine.low %v234_v41, %v242_v42  ;;  %v252_v61 = vld [vmem:[%s4966_s11 + $0xa0] sm:$0xff] }
  0x23   : > { %566 = vmatpush1.bf16.msra.mxu0 %v3654_v21  ;;  %639 = vmatpush1.bf16.msra.mxu1 %v3656_v22  ;;  %v243_v45 = vld [vmem:[%s4966_s11 + $0x58] sm:$0xff]  ;;  %v277_v54 = vld [vmem:[%s4966_s11 + $0x168] sm:$0xff]  ;;  %v3679_v57 = vcombine.high %v268_v51, %v276_v52  ;;  %v260_v62 = vld [vmem:[%s4966_s11 + $0xe0] sm:$0xff]  ;;  %v3678_v63 = vcombine.low %v268_v51, %v276_v52 }
  0x24   : > { %567 = vmatprep.subr.bf16.mxu0 %v3639_v23  ;;  %640 = vmatprep.subr.bf16.mxu1 %v3641_v24  ;;  %v3645_v49 = vcombine.high %v235_v44, %v243_v45  ;;  %v3644_v56 = vcombine.low %v235_v44, %v243_v45  ;;  %v3681_v58 = vcombine.high %v269_v53, %v277_v54  ;;  %v253_v1 = vld [vmem:[%s4966_s11 + $0xa8] sm:$0xff]  ;;  %v236_v5 = vld [vmem:[%s4966_s11 + $0x20] sm:$0xff]  ;;  %v270_v14 = vld [vmem:[%s4966_s11 + $0x130] sm:$0xff] }
  0x25   : > { %v261_v2 = vld [vmem:[%s4966_s11 + $0xe8] sm:$0xff]  ;;  %v3680_v3 = vcombine.low %v269_v53, %v277_v54  ;;  %v3663_v4 = vcombine.high %v252_v61, %v260_v62  ;;  %v244_v6 = vld [vmem:[%s4966_s11 + $0x60] sm:$0xff]  ;;  %v3662_v10 = vcombine.low %v252_v61, %v260_v62  ;;  %v278_v15 = vld [vmem:[%s4966_s11 + $0x170] sm:$0xff] }
  0x26   : > { %v3665_v7 = vcombine.high %v253_v1, %v261_v2  ;;  %v237_v8 = vld [vmem:[%s4966_s11 + $0x28] sm:$0xff]  ;;  %v3664_v11 = vcombine.low %v253_v1, %v261_v2  ;;  %v3647_v12 = vcombine.high %v236_v5, %v244_v6  ;;  %v271_v16 = vld [vmem:[%s4966_s11 + $0x138] sm:$0xff]  ;;  %v3646_v18 = vcombine.low %v236_v5, %v244_v6  ;;  %v254_v22 = vld [vmem:[%s4966_s11 + $0xb0] sm:$0xff] }
  0x27   : > { %568 = vmatpush1.bf16.msra.mxu0 %v3638_v29  ;;  %641 = vmatpush1.bf16.msra.mxu1 %v3640_v30  ;;  %v245_v9 = vld [vmem:[%s4966_s11 + $0x68] sm:$0xff]  ;;  %v279_v17 = vld [vmem:[%s4966_s11 + $0x178] sm:$0xff]  ;;  %v3683_v20 = vcombine.high %v270_v14, %v278_v15  ;;  %v262_v23 = vld [vmem:[%s4966_s11 + $0xf0] sm:$0xff]  ;;  %v3682_v24 = vcombine.low %v270_v14, %v278_v15 }
  0x28   : > { %709 = vmatprep.subr.bf16.mxu0 %v3675_v31  ;;  %782 = vmatprep.subr.bf16.mxu1 %v3677_v32  ;;  %v3649_v13 = vcombine.high %v237_v8, %v245_v9  ;;  %v3648_v19 = vcombine.low %v237_v8, %v245_v9  ;;  %v3685_v21 = vcombine.high %v271_v16, %v279_v17  ;;  %v255_v25 = vld [vmem:[%s4966_s11 + $0xb8] sm:$0xff]  ;;  %v238_v29 = vld [vmem:[%s4966_s11 + $0x30] sm:$0xff]  ;;  %v3746_v51 = vld [vmem:[%s7395_s3 + $0x1e0] sm:$0xff] }
  0x29   : > { %v263_v26 = vld [vmem:[%s4966_s11 + $0xf8] sm:$0xff]  ;;  %v3684_v27 = vcombine.low %v271_v16, %v279_v17  ;;  %v3667_v28 = vcombine.high %v254_v22, %v262_v23  ;;  %v246_v30 = vld [vmem:[%s4966_s11 + $0x70] sm:$0xff]  ;;  %v3666_v35 = vcombine.low %v254_v22, %v262_v23  ;;  %v1913_v52 = vld [vmem:[%s7395_s3 + $0xe0] sm:$0xff] }
  0x2a   : > { %3686 = vmatmul.mubr.msk.bf16.vlgmr.msra.gmra.mxu0 %vm540_vm0, %v4990_v33  ;;  %3690 = vmatmul.mubr.msk.bf16.vlgmr.msra.gmra.mxu1 %vm540_vm0, %v4990_v33  ;;  %v3669_v31 = vcombine.high %v255_v25, %v263_v26  ;;  %v239_v32 = vld [vmem:[%s4966_s11 + $0x38] sm:$0xff]  ;;  %v3651_v37 = vcombine.high %v238_v29, %v246_v30  ;;  %v1915_v44 = vld [vmem:[%s7395_s3 + $0xf0] sm:$0xff]  ;;  %v3730_v53 = vld [vmem:[%s7395_s3 + $0x160] sm:$0xff] }
  0x2b   : > { %710 = vmatpush1.bf16.msra.mxu0 %v3674_v36  ;;  %783 = vmatpush1.bf16.msra.mxu1 %v3676_v39  ;;  %v247_v34 = vld [vmem:[%s4966_s11 + $0x78] sm:$0xff]  ;;  %v3668_v36 = vcombine.low %v255_v25, %v263_v26  ;;  %v3650_v39 = vcombine.low %v238_v29, %v246_v30  ;;  %v3732_v45 = vld [vmem:[%s7395_s3 + $0x170] sm:$0xff]  ;;  %v1897_v54 = vld [vmem:[%s7395_s3 + $0x60] sm:$0xff]  ;;  %s217_s11 = scalar_lea.vmem [#allocation2], %s3632_s7 }
  0x2c   : > { %595 = vmatprep.mubr.bf16.mxu0 %v4873_v0  ;;  %668 = vmatprep.mubr.bf16.mxu1 %v4873_v0  ;;  %v3653_v38 = vcombine.high %v239_v32, %v247_v34  ;;  %v1916_v41 = vld [vmem:[%s7395_s3 + $0xf8] sm:$0xff]  ;;  %v3728_v62 = vld [vmem:[%s7395_s3 + $0x150] sm:$0xff]  ;;  %v3743_v2 = vld [vmem:[%s7395_s3 + $0x1c8] sm:$0xff]  ;;  %s3569_s12 = sshll.u32 %s217_s11, 4  ;;  %s3570_s12 = int_to_ptr.vmem [resolvable:$true] %s3569_s12 }
  0x2d   : > { %711 = vmatprep.subr.bf16.mxu0 %v3659_v40  ;;  %784 = vmatprep.subr.bf16.mxu1 %v3661_v43  ;;  %v3652_v40 = vcombine.low %v239_v32, %v247_v34  ;;  %v1900_v42 = vld [vmem:[%s7395_s3 + $0x78] sm:$0xff]  ;;  %v3748_v43 = vld [vmem:[%s7395_s3 + $0x1f0] sm:$0xff]  ;;  %v3727_v5 = vld [vmem:[%s7395_s3 + $0x148] sm:$0xff]  ;;  %s4811_s17 = scalar_lea.vmem %s3570_s12, 128  ;;  %p4818_p0 = scmp.lt.s32.totalorder %s3570_s12, %s4816_s25 }
  0x2e   : > { %v1894_v6 = vld [vmem:[%s7395_s3 + $0x48] sm:$0xff]  ;;  %v3742_v8 = vld [vmem:[%s7395_s3 + $0x1c0] sm:$0xff]  ;;  %v3741_v14 = vld [vmem:[%s7395_s3 + $0x1b8] sm:$0xff]  ;;  %p4812_p11 = scmp.ne.s32.totalorder %s3570_s12, %s4811_s17  ;;  %p4819_p1 = scmp.lt.s32.totalorder %s4817_s22, %s4811_s17 }
  0x2f   : > { %712 = vmatpush1.bf16.msra.mxu0 %v3658_v46  ;;  %785 = vmatpush1.bf16.msra.mxu1 %v3660_v47  ;;  %v1899_v46 = vld [vmem:[%s7395_s3 + $0x70] sm:$0xff]  ;;  %v3747_v47 = vld [vmem:[%s7395_s3 + $0x1e8] sm:$0xff]  ;;  %v1909_v9 = vld [vmem:[%s7395_s3 + $0xc0] sm:$0xff] }
  0x30   : > { %713 = vmatprep.subr.bf16.mxu0 %v3643_v48  ;;  %786 = vmatprep.subr.bf16.mxu1 %v3645_v49  ;;  %v1914_v48 = vld [vmem:[%s7395_s3 + $0xe8] sm:$0xff]  ;;  %v1908_v15 = vld [vmem:[%s7395_s3 + $0xb8] sm:$0xff]  ;;  %v3724_v23 = vld [vmem:[%s7395_s3 + $0x130] sm:$0xff]  ;;  %p4813_p12 = pnand %p4812_p11, %p4945_p5  ;;  %p4820_p2 = por %p4819_p1, %p4818_p0 }
  0x31   : > { %v3731_v49 = vld [vmem:[%s7395_s3 + $0x168] sm:$0xff]  ;;  %v3725_v17 = vld [vmem:[%s7395_s3 + $0x138] sm:$0xff] }
  0x32   : > { %3687 = vmatmul.mubr.msk.bf16.gmra.mxu0 %vm540_vm0, %v5009_v50  ;;  %3691 = vmatmul.mubr.msk.bf16.gmra.mxu1 %vm540_vm0, %v5009_v50  ;;  %v1890_v32 = vld [vmem:[%s7395_s3 + $0x28] sm:$0xff]  ;;  %p4814_p13 = pneg %p4813_p12 }
  0x33   : > { %605 = vmatprep.mubr.bf16.mxu0 %v4873_v0  ;;  %678 = vmatprep.mubr.bf16.mxu1 %v4873_v0 }
  0x34   : > { %714 = vmatpush1.bf16.msra.mxu0 %v3642_v55  ;;  %787 = vmatpush1.bf16.msra.mxu1 %v3644_v56  ;;  %v3745_v55 = vld [vmem:[%s7395_s3 + $0x1d8] sm:$0xff]  ;;  %p4821_p3 = pnand %p4820_p2, %p4814_p13 }
  0x35   : > { %855 = vmatprep.subr.bf16.mxu0 %v3679_v57  ;;  %928 = vmatprep.subr.bf16.mxu1 %v3681_v58  ;;  %v1912_v56 = vld [vmem:[%s7395_s3 + $0xd8] sm:$0xff] }
  0x36   : > { %v3729_v57 = vld [vmem:[%s7395_s3 + $0x158] sm:$0xff] }
  0x37   : > { %v1896_v58 = vld [vmem:[%s7395_s3 + $0x58] sm:$0xff] }
  0x3a   : > { %3688 = vmatmul.mubr.msk.bf16.gmra.mxu0 %vm540_vm0, %v5024_v59  ;;  %3692 = vmatmul.mubr.msk.bf16.gmra.mxu1 %vm540_vm0, %v5024_v59 }
  0x3b   : > { %615 = vmatprep.mubr.bf16.mxu0 %v4873_v0  ;;  %688 = vmatprep.mubr.bf16.mxu1 %v4873_v0 }
  0x42   : > { %3689 = vmatmul.mubr.msk.bf16.gmra.mxu0 %vm540_vm0, %v5035_v60  ;;  %3693 = vmatmul.mubr.msk.bf16.gmra.mxu1 %vm540_vm0, %v5035_v60 }
  0x43   : > { %731 = vmatprep.mubr.bf16.mxu0 %v4873_v0  ;;  %804 = vmatprep.mubr.bf16.mxu1 %v4873_v0 }
  0x4a   : > { %3694 = vmatmul.mubr.msk.bf16.vlgmr.msra.gmra.mxu0 %vm540_vm0, %v4990_v33  ;;  %3698 = vmatmul.mubr.msk.bf16.vlgmr.msra.gmra.mxu1 %vm540_vm0, %v4990_v33 }
  0x4b   : > { %856 = vmatpush1.bf16.msra.mxu0 %v3678_v63  ;;  %929 = vmatpush1.bf16.msra.mxu1 %v3680_v3  ;;  %v1895_v63 = vld [vmem:[%s7395_s3 + $0x50] sm:$0xff]  ;;  %v1910_v3 = vld [vmem:[%s7395_s3 + $0xc8] sm:$0xff] }
  0x4c   : > { %741 = vmatprep.mubr.bf16.mxu0 %v4873_v0  ;;  %814 = vmatprep.mubr.bf16.mxu1 %v4873_v0 }
  0x4d   : > { %857 = vmatprep.subr.bf16.mxu0 %v3663_v4  ;;  %930 = vmatprep.subr.bf16.mxu1 %v3665_v7 }
  0x4f   : > { %858 = vmatpush1.bf16.msra.mxu0 %v3662_v10  ;;  %931 = vmatpush1.bf16.msra.mxu1 %v3664_v11  ;;  %v3726_v11 = vld [vmem:[%s7395_s3 + $0x140] sm:$0xff] }
  0x50   : > { %859 = vmatprep.subr.bf16.mxu0 %v3647_v12  ;;  %932 = vmatprep.subr.bf16.mxu1 %v3649_v13  ;;  %v1893_v12 = vld [vmem:[%s7395_s3 + $0x40] sm:$0xff] }
  0x52   : > { %3695 = vmatmul.mubr.msk.bf16.gmra.mxu0 %vm540_vm0, %v5009_v50  ;;  %3699 = vmatmul.mubr.msk.bf16.gmra.mxu1 %vm540_vm0, %v5009_v50 }
  0x53   : > { %751 = vmatprep.mubr.bf16.mxu0 %v4873_v0  ;;  %824 = vmatprep.mubr.bf16.mxu1 %v4873_v0 }
  0x54   : > { %860 = vmatpush1.bf16.msra.mxu0 %v3646_v18  ;;  %933 = vmatpush1.bf16.msra.mxu1 %v3648_v19  ;;  %v1892_v18 = vld [vmem:[%s7395_s3 + $0x38] sm:$0xff] }
  0x55   : > { %1001 = vmatprep.subr.bf16.mxu0 %v3683_v20  ;;  %1074 = vmatprep.subr.bf16.mxu1 %v3685_v21  ;;  %v3740_v20 = vld [vmem:[%s7395_s3 + $0x1b0] sm:$0xff] }
  0x56   : > { %v1907_v21 = vld [vmem:[%s7395_s3 + $0xb0] sm:$0xff] }
  0x5a   : > { %3696 = vmatmul.mubr.msk.bf16.gmra.mxu0 %vm540_vm0, %v5024_v59  ;;  %3700 = vmatmul.mubr.msk.bf16.gmra.mxu1 %vm540_vm0, %v5024_v59 }
  0x5b   : > { %761 = vmatprep.mubr.bf16.mxu0 %v4873_v0  ;;  %834 = vmatprep.mubr.bf16.mxu1 %v4873_v0 }
  0x62   : > { %3697 = vmatmul.mubr.msk.bf16.gmra.mxu0 %vm540_vm0, %v5035_v60  ;;  %3701 = vmatmul.mubr.msk.bf16.gmra.mxu1 %vm540_vm0, %v5035_v60 }
  0x63   : > { %877 = vmatprep.mubr.bf16.mxu0 %v4873_v0  ;;  %950 = vmatprep.mubr.bf16.mxu1 %v4873_v0 }
  0x6a   : > { %3702 = vmatmul.mubr.msk.bf16.vlgmr.msra.gmra.mxu0 %vm540_vm0, %v4990_v33  ;;  %3706 = vmatmul.mubr.msk.bf16.vlgmr.msra.gmra.mxu1 %vm540_vm0, %v4990_v33 }
  0x6b   : > { %1002 = vmatpush1.bf16.msra.mxu0 %v3682_v24  ;;  %1075 = vmatpush1.bf16.msra.mxu1 %v3684_v27  ;;  %v1891_v24 = vld [vmem:[%s7395_s3 + $0x30] sm:$0xff]  ;;  %v3739_v27 = vld [vmem:[%s7395_s3 + $0x1a8] sm:$0xff] }
  0x6c   : > { %887 = vmatprep.mubr.bf16.mxu0 %v4873_v0  ;;  %960 = vmatprep.mubr.bf16.mxu1 %v4873_v0 }
  0x6d   : > { %1003 = vmatprep.subr.bf16.mxu0 %v3667_v28  ;;  %1076 = vmatprep.subr.bf16.mxu1 %v3669_v31  ;;  %v1906_v28 = vld [vmem:[%s7395_s3 + $0xa8] sm:$0xff] }
  0x6e   : > { %v3723_v31 = vld [vmem:[%s7395_s3 + $0x128] sm:$0xff] }
  0x6f   : > { %1004 = vmatpush1.bf16.msra.mxu0 %v3666_v35  ;;  %1077 = vmatpush1.bf16.msra.mxu1 %v3668_v36  ;;  %v3738_v36 = vld [vmem:[%s7395_s3 + $0x1a0] sm:$0xff] }
  0x70   : > { %1005 = vmatprep.subr.bf16.mxu0 %v3651_v37  ;;  %1078 = vmatprep.subr.bf16.mxu1 %v3653_v38  ;;  %v1905_v37 = vld [vmem:[%s7395_s3 + $0xa0] sm:$0xff] }
  0x72   : > { %3703 = vmatmul.mubr.msk.bf16.gmra.mxu0 %vm540_vm0, %v5009_v50  ;;  %3707 = vmatmul.mubr.msk.bf16.gmra.mxu1 %vm540_vm0, %v5009_v50 }
  0x73   : > { %897 = vmatprep.mubr.bf16.mxu0 %v4873_v0  ;;  %970 = vmatprep.mubr.bf16.mxu1 %v4873_v0 }
  0x74   : > { %1006 = vmatpush1.bf16.msra.mxu0 %v3650_v39  ;;  %1079 = vmatpush1.bf16.msra.mxu1 %v3652_v40  ;;  %v3722_v40 = vld [vmem:[%s7395_s3 + $0x120] sm:$0xff] }
  0x75   : > { %4238 = vmatprep.subr.mxu1 %v1916_v41 }
  0x7a   : > { %3704 = vmatmul.mubr.msk.bf16.gmra.mxu0 %vm540_vm0, %v5024_v59  ;;  %3708 = vmatmul.mubr.msk.bf16.gmra.mxu1 %vm540_vm0, %v5024_v59 }
  0x7b   : > { %907 = vmatprep.mubr.bf16.mxu0 %v4873_v0  ;;  %980 = vmatprep.mubr.bf16.mxu1 %v4873_v0 }
  0x82   : > { %3705 = vmatmul.mubr.msk.bf16.gmra.mxu0 %vm540_vm0, %v5035_v60  ;;  %3709 = vmatmul.mubr.msk.bf16.gmra.mxu1 %vm540_vm0, %v5035_v60 }
  0x83   : > { %1023 = vmatprep.mubr.bf16.mxu0 %v4873_v0  ;;  %1096 = vmatprep.mubr.bf16.mxu1 %v4873_v0 }
  0x8a   : > { %3710 = vmatmul.mubr.msk.bf16.vlgmr.msra.gmra.mxu0 %vm540_vm0, %v4990_v33  ;;  %3714 = vmatmul.mubr.msk.bf16.vlgmr.msra.gmra.mxu1 %vm540_vm0, %v4990_v33  ;;  %v3749_v33 = vld [vmem:[%s7395_s3 + $0x1f8] sm:$0xff] }
  0x8b   : > { %1033 = vmatprep.mubr.bf16.mxu0 %v4873_v0  ;;  %1106 = vmatprep.mubr.bf16.mxu1 %v4873_v0 }
  0x8c   : > { %4203 = vmatprep.subr.mxu0 %v3749_v33  ;;  %4239 = vmatpush3.msra.mxu1 %v1900_v42  ;;  %v1889_v33 = vld [vmem:[%s7395_s3 + $0x20] sm:$0xff]  ;;  %v3737_v42 = vld [vmem:[%s7395_s3 + $0x198] sm:$0xff] }
  0x8d   : > { %4240 = vmatprep.subr.mxu1 %v1915_v44 }
  0x8e   : > { %4241 = vmatpush3.msra.mxu1 %v1899_v46  ;;  %v3721_v46 = vld [vmem:[%s7395_s3 + $0x118] sm:$0xff] }
  0x8f   : > { %4242 = vmatprep.subr.mxu1 %v1914_v48 }
  0x92   : > { %3711 = vmatmul.mubr.msk.bf16.gmra.mxu0 %vm540_vm0, %v5009_v50  ;;  %3715 = vmatmul.mubr.msk.bf16.gmra.mxu1 %vm540_vm0, %v5009_v50  ;;  %v1898_v50 = vld [vmem:[%s7395_s3 + $0x68] sm:$0xff] }
  0x93   : > { %1043 = vmatprep.mubr.bf16.mxu0 %v4873_v0  ;;  %1116 = vmatprep.mubr.bf16.mxu1 %v4873_v0 }
  0x94   : > { %4243 = vmatpush3.msra.mxu1 %v1898_v50  ;;  %v3736_v50 = vld [vmem:[%s7395_s3 + $0x190] sm:$0xff] }
  0x95   : > { %4244 = vmatprep.subr.mxu1 %v1913_v52 }
  0x96   : > { %4245 = vmatpush3.msra.mxu1 %v1897_v54  ;;  %v3720_v54 = vld [vmem:[%s7395_s3 + $0x110] sm:$0xff] }
  0x97   : > { %4246 = vmatprep.subr.mxu1 %v1912_v56 }
  0x98   : > { %4247 = vmatpush3.msra.mxu1 %v1896_v58  ;;  %v1902_v58 = vld [vmem:[%s7395_s3 + $0x88] sm:$0xff] }
  0x9a   : > { %3712 = vmatmul.mubr.msk.bf16.gmra.mxu0 %vm540_vm0, %v5024_v59  ;;  %3716 = vmatmul.mubr.msk.bf16.gmra.mxu1 %vm540_vm0, %v5024_v59  ;;  %v3744_v59 = vld [vmem:[%s7395_s3 + $0x1d0] sm:$0xff] }
  0x9b   : > { %1053 = vmatprep.mubr.bf16.mxu0 %v4873_v0  ;;  %1126 = vmatprep.mubr.bf16.mxu1 %v4873_v0  ;;  %v3733_v0 = vld [vmem:[%s7395_s3 + $0x178] sm:$0xff] }
  0x9c   : > { %4204 = vmatpush3.msra.mxu0 %v3733_v0 }
  0x9d   : > { %4205 = vmatprep.subr.mxu0 %v3748_v43  ;;  %v1904_v43 = vld [vmem:[%s7395_s3 + $0x98] sm:$0xff] }
  0x9e   : > { %4206 = vmatpush3.msra.mxu0 %v3732_v45 }
  0x9f   : > { %4207 = vmatprep.subr.mxu0 %v3747_v47  ;;  %v1888_v47 = vld [vmem:[%s7395_s3 + $0x18] sm:$0xff] }
  0xa0   : > { %4208 = vmatpush3.msra.mxu0 %v3731_v49 }
  0xa1   : > { %4209 = vmatprep.subr.mxu0 %v3746_v51  ;;  %v1903_v51 = vld [vmem:[%s7395_s3 + $0x90] sm:$0xff] }
  0xa2   : > { %3713 = vmatmul.mubr.msk.bf16.gmra.mxu0 %vm540_vm0, %v5035_v60  ;;  %3717 = vmatmul.mubr.msk.bf16.gmra.mxu1 %vm540_vm0, %v5035_v60  ;;  %v1911_v60 = vld [vmem:[%s7395_s3 + $0xd0] sm:$0xff] }
  0xa3   : > { %4210 = vmatpush3.msra.mxu0 %v3730_v53  ;;  %4248 = vmatprep.subr.mxu1 %v1911_v60  ;;  %v3719_v60 = vld [vmem:[%s7395_s3 + $0x108] sm:$0xff] }
  0xa4   : > { %4211 = vmatprep.subr.mxu0 %v3745_v55  ;;  %4249 = vmatpush3.msra.mxu1 %v1895_v63  ;;  %v1887_v55 = vld [vmem:[%s7395_s3 + $0x10] sm:$0xff]  ;;  %v3734_v63 = vld [vmem:[%s7395_s3 + $0x180] sm:$0xff] }
  0xa5   : > { %4212 = vmatpush3.msra.mxu0 %v3729_v57  ;;  %4250 = vmatprep.subr.mxu1 %v1910_v3  ;;  %v3735_v57 = vld [vmem:[%s7395_s3 + $0x188] sm:$0xff]  ;;  %v1901_v3 = vld [vmem:[%s7395_s3 + $0x80] sm:$0xff] }
  0xa6   : > { %4213 = vmatprep.subr.mxu0 %v3744_v59  ;;  %4251 = vmatpush3.msra.mxu1 %v1894_v6  ;;  %v1885_v6 = vld [vmem:[%s7395_s3] sm:$0xff] }
  0xa7   : > { %4214 = vmatpush3.msra.mxu0 %v3728_v62  ;;  %4252 = vmatprep.subr.mxu1 %v1909_v9  ;;  %v1886_v62 = vld [vmem:[%s7395_s3 + $0x8] sm:$0xff]  ;;  %v3781_v9 = vld [vmem:[%s7395_s3 + $0x2f8] sm:$0xff] }
  0xa8   : > { %4215 = vmatprep.subr.mxu0 %v3743_v2  ;;  %4253 = vmatpush3.msra.mxu1 %v1893_v12 }
  0xa9   : > { %4216 = vmatpush3.msra.mxu0 %v3727_v5  ;;  %4254 = vmatprep.subr.mxu1 %v1908_v15  ;;  %v3718_v5 = vld [vmem:[%s7395_s3 + $0x100] sm:$0xff] }
  0xaa   : > { %4217 = vmatprep.subr.mxu0 %v3742_v8  ;;  %4255 = vmatpush3.msra.mxu1 %v1892_v18 }
  0xab   : > { %4218 = vmatpush3.msra.mxu0 %v3726_v11  ;;  %4256 = vmatprep.subr.mxu1 %v1907_v21  ;;  %v3813_v11 = vld [vmem:[%s7395_s3 + $0x3f8] sm:$0xff] }
  0xac   : > { %4219 = vmatprep.subr.mxu0 %v3741_v14  ;;  %4257 = vmatpush3.msra.mxu1 %v1891_v24 }
  0xad   : > { %4220 = vmatpush3.msra.mxu0 %v3725_v17  ;;  %4258 = vmatprep.subr.mxu1 %v1906_v28 }
  0xae   : > { %4221 = vmatprep.subr.mxu0 %v3740_v20  ;;  %4259 = vmatpush3.msra.mxu1 %v1890_v32 }
  0xaf   : > { %4222 = vmatpush3.msra.mxu0 %v3724_v23  ;;  %4260 = vmatprep.subr.mxu1 %v1905_v37 }
  0xb0   : > { %4223 = vmatprep.subr.mxu0 %v3739_v27  ;;  %4261 = vmatpush3.msra.mxu1 %v1889_v33 }
  0xb1   : > { %4224 = vmatpush3.msra.mxu0 %v3723_v31  ;;  %4262 = vmatprep.subr.mxu1 %v1904_v43 }
  0xb2   : > { %4225 = vmatprep.subr.mxu0 %v3738_v36  ;;  %4263 = vmatpush3.msra.mxu1 %v1888_v47 }
  0xb3   : > { %4226 = vmatpush3.msra.mxu0 %v3722_v40  ;;  %4264 = vmatprep.subr.mxu1 %v1903_v51 }
  0xb4   : > { %4227 = vmatprep.subr.mxu0 %v3737_v42  ;;  %4265 = vmatpush3.msra.mxu1 %v1887_v55 }
  0xb5   : > { %4228 = vmatpush3.msra.mxu0 %v3721_v46  ;;  %4266 = vmatprep.subr.mxu1 %v1902_v58 }
  0xb6   : > { %4229 = vmatprep.subr.mxu0 %v3736_v50  ;;  %4267 = vmatpush3.msra.mxu1 %v1886_v62 }
  0xb7   : > { %4230 = vmatpush3.msra.mxu0 %v3720_v54  ;;  %4268 = vmatprep.subr.mxu1 %v1901_v3  ;;  %v1346_v3 = vlaneseq }
  0xb8   : > { %4231 = vmatprep.subr.mxu0 %v3735_v57  ;;  %4269 = vmatpush3.msra.mxu1 %v1885_v6 }
  0xb9   : > { %4232 = vmatpush3.msra.mxu0 %v3719_v60  ;;  %4308 = vmatprep.subr.mxu1 %v3813_v11 }
  0xba   : > { %4233 = vmatprep.subr.mxu0 %v3734_v63  ;;  %v4874_v63 = vmov 1983009808  }
  0xbb   : > { %4234 = vmatpush3.msra.mxu0 %v3718_v5 }
  0xbc   : > { %4273 = vmatprep.subr.mxu0 %v3781_v9 }
  0xea   : > { %v5199_v61 = vpop.f32.mrf.mxu0  ;;  %v5207_v1 = vpop.f32.mrf.mxu1 }
  0xec   : > { %v5215_v4 = vpop.f32.mrf.mxu0  ;;  %v5223_v7 = vpop.f32.mrf.mxu1 }
  0xee   : > { %v5231_v10 = vpop.f32.mrf.mxu0  ;;  %v5239_v13 = vpop.f32.mrf.mxu1 }
  0xf0   : > { %v5247_v16 = vpop.f32.mrf.mxu0  ;;  %v5255_v19 = vpop.f32.mrf.mxu1 }
  0xf2   : > { %v5263_v22 = vpop.f32.mrf.mxu0  ;;  %v5273_v26 = vpop.f32.mrf.mxu1 }
  0xf3   : > { %v1137_v25 = vmax.f32 %v5199_v61, %v5263_v22  ;;  %v1139_v29 = vmax.f32 %v5207_v1, %v5273_v26 }
  0xf4   : > { %v5283_v30 = vpop.f32.mrf.mxu0  ;;  %v5293_v35 = vpop.f32.mrf.mxu1 }
  0xf5   : > { %v1138_v34 = vmax.f32 %v5215_v4, %v5283_v30  ;;  %v1140_v38 = vmax.f32 %v5223_v7, %v5293_v35 }
  0xf6   : > { %v5303_v39 = vpop.f32.mrf.mxu0  ;;  %v5313_v0 = vpop.f32.mrf.mxu1 }
  0xf7   : > { %v1153_v41 = vmax.f32 %v5231_v10, %v5303_v39  ;;  %v1155_v44 = vmax.f32 %v5239_v13, %v5313_v0 }
  0xf8   : > { %v5323_v45 = vpop.f32.mrf.mxu0  ;;  %v5333_v49 = vpop.f32.mrf.mxu1 }
  0xf9   : > { %v1154_v48 = vmax.f32 %v5247_v16, %v5323_v45  ;;  %v1156_v52 = vmax.f32 %v5255_v19, %v5333_v49 }
  0xfa   : > { %v607_v53 = vpop.f32.mrf.mxu0  ;;  %v680_v56 = vpop.f32.mrf.mxu1 }
  0xfc   : > { %v609_v59 = vpop.f32.mrf.mxu0  ;;  %v682_v2 = vpop.f32.mrf.mxu1 }
  0xfe   : > { %v611_v8 = vpop.f32.mrf.mxu0  ;;  %v684_v12 = vpop.f32.mrf.mxu1 }
 0x100   : > { %v613_v14 = vpop.f32.mrf.mxu0  ;;  %v686_v15 = vpop.f32.mrf.mxu1 }
 0x102   : > { %v617_v17 = vpop.f32.mrf.mxu0  ;;  %v690_v19 = vpop.f32.mrf.mxu1 }
 0x103   : > { %v1169_v18 = vmax.f32 %v607_v53, %v617_v17  ;;  %v1171_v20 = vmax.f32 %v680_v56, %v690_v19  ;;  %v5445_v19 = vshrl.u32 %v1346_v3, 7 }
 0x104   : > { %v619_v21 = vpop.f32.mrf.mxu0  ;;  %v692_v27 = vpop.f32.mrf.mxu1 }
 0x105   : > { %v1201_v23 = vmax.f32 %v1137_v25, %v1169_v18  ;;  %v1170_v24 = vmax.f32 %v609_v59, %v619_v21  ;;  %v1203_v28 = vmax.f32 %v1139_v29, %v1171_v20  ;;  %v1172_v31 = vmax.f32 %v682_v2, %v692_v27 }
 0x106   : > { %v621_v32 = vpop.f32.mrf.mxu0  ;;  %v694_v40 = vpop.f32.mrf.mxu1  ;;  %v1344_v2 = vunpack.c.l.s4 %v4874_v63 }
 0x107   : > { %v1202_v36 = vmax.f32 %v1138_v34, %v1170_v24  ;;  %v1185_v37 = vmax.f32 %v611_v8, %v621_v32  ;;  %v1204_v33 = vmax.f32 %v1140_v38, %v1172_v31  ;;  %v1187_v61 = vmax.f32 %v684_v12, %v694_v40 }
 0x108   : > { %v623_v22 = vpop.f32.mrf.mxu0  ;;  %v696_v26 = vpop.f32.mrf.mxu1  ;;  %v1345_v18 = vunpack.c.0.s8 %v1344_v2 }
 0x109   : > { %v1217_v25 = vmax.f32 %v1153_v41, %v1185_v37  ;;  %v1186_v1 = vmax.f32 %v613_v14, %v623_v22  ;;  %v1219_v29 = vmax.f32 %v1155_v44, %v1187_v61  ;;  %v1188_v4 = vmax.f32 %v686_v15, %v696_v26 }
 0x10a   : > { %v733_v30 = vpop.f32.mrf.mxu0  ;;  %v5402_v7 = vpop.f32.mrf.mxu1  ;;  %v5456_v40 = vsub.s32 %v1345_v18, %v5445_v19 }
 0x10b   : > { %v5400_v34 = vmax.f32 %v1154_v48, %v1186_v1  ;;  %v5404_v35 = vmax.f32 %v1156_v52, %v1188_v4  ;;  %v5427_v52 = vpop.permute.xlu0 %1237 }
 0x10c   : > { %v5406_v38 = vpop.f32.mrf.mxu0  ;;  %v5408_v10 = vpop.f32.mrf.mxu1  ;;  %v1245_v62 = vadd.f32 %v5427_v52, %v1201_v23  ;;  %v1247_v5 = vadd.f32 %v5427_v52, %v1203_v28  ;;  %v1246_v8 = vadd.f32 %v5427_v52, %v1202_v36  ;;  %v1248_v12 = vadd.f32 %v5427_v52, %v1204_v33 }
 0x10e   : > { %v5410_v39 = vpop.f32.mrf.mxu0  ;;  %v5412_v41 = vpop.f32.mrf.mxu1  ;;  %v1277_v17 = vmax.f32 %v1245_v62, 0.0  ;;  %v1279_v20 = vmax.f32 %v1247_v5, 0.0  ;;  %v1278_v23 = vmax.f32 %v1246_v8, 0.0  ;;  %v1280_v28 = vmax.f32 %v1248_v12, 0.0 }
 0x10f   : > { %v5442_v9 = vpop.permute.xlu0 %1242 }
 0x110   : > { %v5414_v13 = vpop.f32.mrf.mxu0  ;;  %v5416_v0 = vpop.f32.mrf.mxu1  ;;  %v5448_v24 = vadd.f32 %v5442_v9, %v1217_v25  ;;  %v5451_v36 = vadd.f32 %v5442_v9, %v1219_v29  ;;  %v5453_v37 = vmin.f32 %v1277_v17, 6.0  ;;  %v5458_v61 = vmin.f32 %v1279_v20, 6.0 }
 0x111   : > { %v5460_v25 = vmin.f32 %v1278_v23, 6.0  ;;  %v5463_v29 = vmin.f32 %v1280_v28, 6.0 }
 0x112   : > { %v743_v42 = vpop.f32.mrf.mxu0  ;;  %v816_v43 = vpop.f32.mrf.mxu1 }
 0x113   : > { %v1141_v16 = vmax.f32 %v733_v30, %v743_v42  ;;  %v1143_v44 = vmax.f32 %v5402_v7, %v816_v43  ;;  %v1293_v30 = vmax.f32 %v5448_v24, 0.0 }
 0x114   : > { %v745_v45 = vpop.f32.mrf.mxu0  ;;  %v818_v47 = vpop.f32.mrf.mxu1 }
 0x115   : > { %v1142_v46 = vmax.f32 %v5406_v38, %v745_v45  ;;  %v1144_v48 = vmax.f32 %v5408_v10, %v818_v47  ;;  %v1295_v47 = vmax.f32 %v5451_v36, 0.0 }
 0x116   : > { %v5421_v49 = vpop.f32.mrf.mxu0  ;;  %v5425_v51 = vpop.f32.mrf.mxu1 }
 0x117   : > { %v1157_v50 = vmax.f32 %v5410_v39, %v5421_v49  ;;  %v1159_v53 = vmax.f32 %v5412_v41, %v5425_v51  ;;  %v5467_v39 = vadd.f32 %v5442_v9, %v5400_v34 }
 0x118   : > { %v5431_v54 = vpop.f32.mrf.mxu0  ;;  %v5435_v56 = vpop.f32.mrf.mxu1 }
 0x119   : > { %v1158_v55 = vmax.f32 %v5414_v13, %v5431_v54  ;;  %v1160_v57 = vmax.f32 %v5416_v0, %v5435_v56 }
 0x11a   : > { %v753_v58 = vpop.f32.mrf.mxu0  ;;  %v826_v59 = vpop.f32.mrf.mxu1 }
 0x11c   : > { %v755_v60 = vpop.f32.mrf.mxu0  ;;  %v828_v6 = vpop.f32.mrf.mxu1 }
 0x11e   : > { %v757_v11 = vpop.f32.mrf.mxu0  ;;  %v830_v14 = vpop.f32.mrf.mxu1 }
 0x120   : > { %v759_v15 = vpop.f32.mrf.mxu0  ;;  %v832_v21 = vpop.f32.mrf.mxu1 }
 0x122   : > { %v763_v27 = vpop.f32.mrf.mxu0  ;;  %v836_v32 = vpop.f32.mrf.mxu1 }
 0x123   : > { %v1173_v31 = vmax.f32 %v753_v58, %v763_v27  ;;  %v1175_v33 = vmax.f32 %v826_v59, %v836_v32 }
 0x124   : > { %v765_v22 = vpop.f32.mrf.mxu0  ;;  %v838_v4 = vpop.f32.mrf.mxu1 }
 0x125   : > { %v1205_v1 = vmax.f32 %v1141_v16, %v1173_v31  ;;  %v1174_v26 = vmax.f32 %v755_v60, %v765_v22  ;;  %v1207_v7 = vmax.f32 %v1143_v44, %v1175_v33  ;;  %v1176_v38 = vmax.f32 %v828_v6, %v838_v4 }
 0x126   : > { %v767_v10 = vpop.f32.mrf.mxu0  ;;  %v840_v16 = vpop.f32.mrf.mxu1  ;;  %v1264_v60 = vadd.f32 %v5442_v9, %v5404_v35  ;;  %v1325_v31 = vmin.f32 %v1293_v30, 6.0 }
 0x127   : > { %v1249_v42 = vadd.f32 %v5427_v52, %v1205_v1  ;;  %v1206_v43 = vmax.f32 %v1142_v46, %v1174_v26  ;;  %v1189_v45 = vmax.f32 %v757_v11, %v767_v10  ;;  %v1251_v49 = vadd.f32 %v5427_v52, %v1207_v7 }
 0x128   : > { %v1208_v58 = vmax.f32 %v1144_v48, %v1176_v38  ;;  %v1191_v59 = vmax.f32 %v830_v14, %v840_v16  ;;  %v769_v44 = vpop.f32.mrf.mxu0  ;;  %v842_v3 = vpop.f32.mrf.mxu1  ;;  %v1327_v26 = vmin.f32 %v1295_v47, 6.0  ;;  %v1296_v7 = vmax.f32 %v1264_v60, 0.0 }
 0x129   : > { %v1281_v62 = vmax.f32 %v1249_v42, 0.0  ;;  %v1250_v63 = vadd.f32 %v5427_v52, %v1206_v43  ;;  %v1221_v34 = vmax.f32 %v1157_v50, %v1189_v45  ;;  %v1190_v2 = vmax.f32 %v759_v15, %v769_v44 }
 0x12a   : > { %v1283_v5 = vmax.f32 %v1251_v49, 0.0  ;;  %v1252_v46 = vadd.f32 %v5427_v52, %v1208_v58  ;;  %v1223_v6 = vmax.f32 %v1159_v53, %v1191_v59  ;;  %v1192_v8 = vmax.f32 %v832_v21, %v842_v3  ;;  %v5479_v48 = vpop.f32.mrf.mxu0  ;;  %v5485_v14 = vpop.f32.mrf.mxu1 }
 0x12b   : > { %v1313_v11 = vmin.f32 %v1281_v62, 6.0  ;;  %v1282_v12 = vmax.f32 %v1250_v63, 0.0  ;;  %v1265_v35 = vadd.f32 %v5442_v9, %v1221_v34  ;;  %v1222_v50 = vmax.f32 %v1158_v55, %v1190_v2 }
 0x12c   : > { %v1315_v15 = vmin.f32 %v1283_v5, 6.0  ;;  %v1284_v17 = vmax.f32 %v1252_v46, 0.0  ;;  %v1267_v18 = vadd.f32 %v5442_v9, %v1223_v6  ;;  %v1224_v41 = vmax.f32 %v1160_v57, %v1192_v8  ;;  %v5491_v51 = vpop.f32.mrf.mxu0  ;;  %v5495_v13 = vpop.f32.mrf.mxu1 }
 0x12d   : > { %v1341_v53 = vcombine.low %v5453_v37, %v1313_v11  ;;  %v1342_v20 = vcombine.high %v5453_v37, %v1313_v11  ;;  %v1314_v21 = vmin.f32 %v1282_v12, 6.0  ;;  %v1297_v23 = vmax.f32 %v1265_v35, 0.0 }
 0x12e   : > { %v1357_v54 = vcombine.low %v5458_v61, %v1315_v15  ;;  %v1358_v55 = vcombine.high %v5458_v61, %v1315_v15  ;;  %v1316_v24 = vmin.f32 %v1284_v17, 6.0  ;;  %v1299_v27 = vmax.f32 %v1267_v18, 0.0  ;;  %v5499_v28 = vpop.f32.mrf.mxu0  ;;  %v5506_v32 = vpop.f32.mrf.mxu1 }
 0x12f   : > { %v5502_v0 = vrot.slane %v1341_v53, %v5456_v40  ;;  %v1613_v56 = vcombine.low %v5460_v25, %v1314_v21  ;;  %v1614_v57 = vcombine.high %v5460_v25, %v1314_v21  ;;  %v1294_v61 = vmax.f32 %v5467_v39, 0.0 }
 0x130   : > { %v5509_v36 = vrot.slane %v1357_v54, %v5456_v40  ;;  %v1629_v37 = vcombine.low %v5463_v29, %v1316_v24  ;;  %v1630_v33 = vcombine.high %v5463_v29, %v1316_v24  ;;  %v5514_v22 = vpop.f32.mrf.mxu0  ;;  %v1329_v1 = vmin.f32 %v1297_v23, 6.0  ;;  %v5516_v38 = vpop.f32.mrf.mxu1 }
 0x131   : > { %v1331_v4 = vmin.f32 %v1299_v27, 6.0  ;;  %v5521_v30 = vrot.slane %v1613_v56, %v5456_v40  ;;  %v1266_v29 = vadd.f32 %v5442_v9, %v1222_v50  ;;  %v1268_v58 = vadd.f32 %v5442_v9, %v1224_v41 }
 0x132   : > { %7405 = vst [vmem:[#allocation5_spill] sm:$0xff] %v5509_v36  ;;  %v1405_v25 = vcombine.low %v5502_v0, %v5509_v36  ;;  %v5524_v10 = vrot.slane %v1629_v37, %v5456_v40  ;;  %v5527_v39 = vpop.f32.mrf.mxu0  ;;  %v1477_v42 = vcombine.low %v1325_v31, %v1329_v1  ;;  %v1478_v43 = vcombine.high %v1325_v31, %v1329_v1  ;;  %v5529_v47 = vpop.f32.mrf.mxu1 }
 0x133   : > { %v1493_v45 = vcombine.low %v1327_v26, %v1331_v4  ;;  %v1494_v16 = vcombine.high %v1327_v26, %v1331_v4  ;;  %v1298_v49 = vmax.f32 %v1266_v29, 0.0  ;;  %v5535_v44 = vrot.slane %v1342_v20, %v5456_v40 }
 0x134   : > { %v5532_v59 = vpop.f32.mrf.mxu0  ;;  %v5538_v60 = vrot.slane %v1358_v55, %v5456_v40  ;;  %v1326_v62 = vmin.f32 %v1294_v61, 6.0  ;;  %v1328_v63 = vmin.f32 %v1296_v7, 6.0  ;;  %v5540_v34 = vpop.f32.mrf.mxu1  ;;  %v5543_v2 = vrot.slane %v1614_v57, %v5456_v40 }
 0x135   : > { %v5546_v3 = vrot.slane %v1630_v33, %v5456_v40  ;;  %v1330_v5 = vmin.f32 %v1298_v49, 6.0  ;;  %v1300_v46 = vmax.f32 %v1268_v58, 0.0  ;;  %v5549_v8 = vrot.slane %v1477_v42, %v5456_v40 }
 0x136   : > { %7406 = vst [vmem:[#allocation6_spill] sm:$0xff] %v5543_v2  ;;  %v893_v6 = vpop.f32.mrf.mxu0  ;;  %v966_v12 = vpop.f32.mrf.mxu1  ;;  %v1677_v35 = vcombine.low %v5521_v30, %v5524_v10  ;;  %v5558_v20 = vrot.slane %v1478_v43, %v5456_v40  ;;  %v5561_v21 = vrot.slane %v1493_v45, %v5456_v40  ;;  %v5567_v24 = vrot.slane %v1494_v16, %v5456_v40 }
 0x137   : > { %7407 = vst [vmem:[#allocation7_spill] sm:$0xff] %v5546_v3  ;;  %v1161_v11 = vmax.f32 %v5499_v28, %v893_v6  ;;  %v1749_v15 = vcombine.low %v1326_v62, %v1330_v5  ;;  %v1750_v17 = vcombine.high %v1326_v62, %v1330_v5  ;;  %v1332_v18 = vmin.f32 %v1300_v46, 6.0 }
 0x138   : > { %v1163_v41 = vmax.f32 %v5506_v32, %v966_v12  ;;  %v895_v53 = vpop.f32.mrf.mxu0  ;;  %v968_v54 = vpop.f32.mrf.mxu1 }
 0x139   : > { %v1162_v23 = vmax.f32 %v5514_v22, %v895_v53  ;;  %v5570_v27 = vrot.slane %v1749_v15, %v5456_v40  ;;  %v1765_v28 = vcombine.low %v1328_v63, %v1332_v18  ;;  %v1766_v56 = vcombine.high %v1328_v63, %v1332_v18 }
 0x13a   : > { %v899_v57 = vpop.f32.mrf.mxu0  ;;  %v5573_v31 = vrot.slane %v1750_v17, %v5456_v40  ;;  %v1164_v32 = vmax.f32 %v5516_v38, %v968_v54  ;;  %v972_v37 = vpop.f32.mrf.mxu1 }
 0x13b   : > { %v5581_v22 = vrot.slane %v1765_v28, %v5456_v40  ;;  %v5584_v1 = vrot.slane %v1766_v56, %v5456_v40 }
 0x13c   : > { %v901_v26 = vpop.f32.mrf.mxu0  ;;  %v5590_v38 = vpop.f32.mrf.mxu1 }
 0x13e   : > { %v903_v43 = vpop.f32.mrf.mxu0  ;;  %v976_v49 = vpop.f32.mrf.mxu1 }
 0x140   : > { %v905_v63 = vpop.f32.mrf.mxu0  ;;  %v978_v6 = vpop.f32.mrf.mxu1 }
 0x142   : > { %v909_v12 = vpop.f32.mrf.mxu0  ;;  %v982_v15 = vpop.f32.mrf.mxu1 }
 0x144   : > { %v911_v17 = vpop.f32.mrf.mxu0  ;;  %v984_v18 = vpop.f32.mrf.mxu1 }
 0x146   : > { %v913_v53 = vpop.f32.mrf.mxu0  ;;  %v986_v28 = vpop.f32.mrf.mxu1 }
 0x147   : > { %v1193_v54 = vmax.f32 %v903_v43, %v913_v53  ;;  %v1195_v56 = vmax.f32 %v976_v49, %v986_v28 }
 0x148   : > { %v915_v4 = vpop.f32.mrf.mxu0  ;;  %v988_v62 = vpop.f32.mrf.mxu1 }
 0x149   : > { %v1225_v33 = vmax.f32 %v1161_v11, %v1193_v54  ;;  %v1194_v55 = vmax.f32 %v905_v63, %v915_v4  ;;  %v1227_v58 = vmax.f32 %v1163_v41, %v1195_v56  ;;  %v1196_v16 = vmax.f32 %v978_v6, %v988_v62 }
 0x14a   : > { %v5608_v42 = vpop.f32.mrf.mxu0  ;;  %v5612_v46 = vpop.f32.mrf.mxu1  ;;  %v1177_v4 = vmax.f32 %v899_v57, %v909_v12  ;;  %v1147_v6 = vmax.f32 %v5485_v14, %v5529_v47  ;;  %v4875_v54 = vmov 1934713408   ;;  %v1146_v57 = vmax.f32 %v5491_v51, %v5532_v59 }
 0x14b   : > { %v5610_v5 = vmax.f32 %v1162_v23, %v1194_v55  ;;  %v5614_v29 = vmax.f32 %v1164_v32, %v1196_v16  ;;  %v1179_v23 = vmax.f32 %v972_v37, %v982_v15  ;;  %v1145_v32 = vmax.f32 %v5479_v48, %v5527_v39 }
 0x14c   : > { %v5616_v45 = vpop.f32.mrf.mxu0  ;;  %v5618_v7 = vpop.f32.mrf.mxu1  ;;  %v1178_v16 = vmax.f32 %v901_v26, %v911_v17  ;;  %v1408_v28 = vunpack.c.l.s4 %v4875_v54  ;;  %v1180_v37 = vmax.f32 %v5590_v38, %v984_v18  ;;  %v1148_v14 = vmax.f32 %v5495_v13, %v5540_v34 }
 0x14d   : > { %v1209_v12 = vmax.f32 %v1145_v32, %v1177_v4  ;;  %v1211_v56 = vmax.f32 %v1147_v6, %v1179_v23  ;;  %v5667_v23 = vadd.f32 %v5442_v9, %v1225_v33 }
 0x14e   : > { %v5620_v43 = vpop.f32.mrf.mxu0  ;;  %v5622_v49 = vpop.f32.mrf.mxu1  ;;  %v1210_v47 = vmax.f32 %v1146_v57, %v1178_v16  ;;  %v1409_v38 = vunpack.c.0.s8 %v1408_v28  ;;  %v1212_v4 = vmax.f32 %v1148_v14, %v1180_v37 }
 0x14f   : > { %v1253_v18 = vadd.f32 %v5427_v52, %v1209_v12  ;;  %v1255_v13 = vadd.f32 %v5427_v52, %v1211_v56 }
 0x150   : > { %v5624_v11 = vpop.f32.mrf.mxu0  ;;  %v5626_v41 = vpop.f32.mrf.mxu1  ;;  %v1254_v16 = vadd.f32 %v5427_v52, %v1210_v47  ;;  %v5663_v57 = vsub.s32 %v1409_v38, %v5445_v19  ;;  %v1256_v28 = vadd.f32 %v5427_v52, %v1212_v4 }
 0x151   : > { %v1285_v61 = vmax.f32 %v1253_v18, 0.0  ;;  %v1287_v12 = vmax.f32 %v1255_v13, 0.0  ;;  %v1271_v13 = vadd.f32 %v5442_v9, %v1227_v58 }
 0x152   : > { %v1035_v62 = vpop.f32.mrf.mxu0  ;;  %v5628_v55 = vpop.f32.mrf.mxu1  ;;  %v1286_v14 = vmax.f32 %v1254_v16, 0.0  ;;  %v5673_v47 = vrot.slane %v1405_v25, %v5663_v57  ;;  %v1288_v38 = vmax.f32 %v1256_v28, 0.0  ;;  %v5681_v4 = vrot.slane %v1677_v35, %v5663_v57 }
 0x153   : > { %v5675_v19 = vmin.f32 %v1285_v61, 6.0  ;;  %v5683_v33 = vmin.f32 %v1287_v12, 6.0  ;;  %v1149_v16 = vmax.f32 %v5608_v42, %v1035_v62  ;;  %v1301_v61 = vmax.f32 %v5667_v23, 0.0 }
 0x154   : > { %v5632_v63 = vpop.f32.mrf.mxu0  ;;  %v5636_v53 = vpop.f32.mrf.mxu1  ;;  %v5687_v25 = vmin.f32 %v1286_v14, 6.0  ;;  %v1151_v28 = vmax.f32 %v5612_v46, %v5628_v55  ;;  %v5694_v35 = vadd.f32 %v5442_v9, %v5610_v5  ;;  %v1303_v55 = vmax.f32 %v1271_v13, 0.0 }
 0x155   : > { %v1150_v58 = vmax.f32 %v5616_v45, %v5632_v63  ;;  %v1152_v23 = vmax.f32 %v5618_v7, %v5636_v53  ;;  %v1272_v45 = vadd.f32 %v5442_v9, %v5614_v29 }
 0x156   : > { %v5641_v15 = vpop.f32.mrf.mxu0  ;;  %v5645_v39 = vpop.f32.mrf.mxu1 }
 0x157   : > { %v7409_v29 = vmax.f32 %v5622_v49, %v5645_v39 }
 0x158   : > { %v5651_v17 = vpop.f32.mrf.mxu0  ;;  %v5655_v59 = vpop.f32.mrf.mxu1 }
 0x15a   : > { %v1045_v32 = vpop.f32.mrf.mxu0  ;;  %v1118_v34 = vpop.f32.mrf.mxu1 }
 0x15c   : > { %v1047_v6 = vpop.f32.mrf.mxu0  ;;  %v1120_v54 = vpop.f32.mrf.mxu1 }
 0x15e   : > { %v1049_v50 = vpop.f32.mrf.mxu0  ;;  %v1122_v37 = vpop.f32.mrf.mxu1 }
 0x160   : > { %v1051_v51 = vpop.f32.mrf.mxu0  ;;  %v1124_v56 = vpop.f32.mrf.mxu1 }
 0x162   : > { %v1055_v18 = vpop.f32.mrf.mxu0  ;;  %v1128_v48 = vpop.f32.mrf.mxu1 }
 0x163   : > { %v1181_v26 = vmax.f32 %v1045_v32, %v1055_v18  ;;  %v1183_v3 = vmax.f32 %v1118_v34, %v1128_v48  ;;  %v5698_v32 = vmin.f32 %v1288_v38, 6.0 }
 0x164   : > { %v1057_v2 = vpop.f32.mrf.mxu0  ;;  %v1130_v62 = vpop.f32.mrf.mxu1 }
 0x165   : > { %v1213_v12 = vmax.f32 %v1149_v16, %v1181_v26  ;;  %v1182_v42 = vmax.f32 %v1047_v6, %v1057_v2  ;;  %v1215_v14 = vmax.f32 %v1151_v28, %v1183_v3  ;;  %v1184_v18 = vmax.f32 %v1120_v54, %v1130_v62 }
 0x166   : > { %v1059_v46 = vpop.f32.mrf.mxu0  ;;  %v1132_v36 = vpop.f32.mrf.mxu1  ;;  %v7408_v3 = vmax.f32 %v5620_v43, %v5641_v15 }
 0x167   : > { %v1257_v48 = vadd.f32 %v5427_v52, %v1213_v12  ;;  %v1214_v34 = vmax.f32 %v1150_v58, %v1182_v42  ;;  %v1197_v5 = vmax.f32 %v1049_v50, %v1059_v46  ;;  %v1259_v2 = vadd.f32 %v5427_v52, %v1215_v14 }
 0x168   : > { %v1216_v63 = vmax.f32 %v1152_v23, %v1184_v18  ;;  %v1199_v26 = vmax.f32 %v1122_v37, %v1132_v36  ;;  %v1061_v6 = vpop.f32.mrf.mxu0  ;;  %v1134_v13 = vpop.f32.mrf.mxu1  ;;  %v7410_v42 = vmax.f32 %v5624_v11, %v5651_v17 }
 0x169   : > { %v1289_v38 = vmax.f32 %v1257_v48, 0.0  ;;  %v1258_v7 = vadd.f32 %v5427_v52, %v1214_v34  ;;  %v1229_v53 = vmax.f32 %v7408_v3, %v1197_v5  ;;  %v1198_v54 = vmax.f32 %v1051_v51, %v1061_v6 }
 0x16a   : > { %v1291_v16 = vmax.f32 %v1259_v2, 0.0  ;;  %v1260_v50 = vadd.f32 %v5427_v52, %v1216_v63  ;;  %v1231_v28 = vmax.f32 %v7409_v29, %v1199_v26  ;;  %v1200_v58 = vmax.f32 %v1124_v56, %v1134_v13 }
 0x16b   : > { %v1321_v12 = vmin.f32 %v1289_v38, 6.0  ;;  %v1290_v36 = vmax.f32 %v1258_v7, 0.0  ;;  %v1273_v37 = vadd.f32 %v5442_v9, %v1229_v53  ;;  %v1230_v62 = vmax.f32 %v7410_v42, %v1198_v54 }
 0x16c   : > { %v1323_v43 = vmin.f32 %v1291_v16, 6.0  ;;  %v1292_v15 = vmax.f32 %v1260_v50, 0.0  ;;  %v1275_v51 = vadd.f32 %v5442_v9, %v1231_v28  ;;  %v7411_v52 = vmax.f32 %v5626_v41, %v5655_v59 }
 0x16d   : > { %v1373_v49 = vcombine.low %v5675_v19, %v1321_v12  ;;  %v1374_v39 = vcombine.high %v5675_v19, %v1321_v12  ;;  %v5724_v56 = vmin.f32 %v1290_v36, 6.0  ;;  %v1305_v14 = vmax.f32 %v1273_v37, 0.0 }
 0x16e   : > { %v1232_v23 = vmax.f32 %v7411_v52, %v1200_v58  ;;  %v1389_v18 = vcombine.low %v5683_v33, %v1323_v43  ;;  %v1390_v11 = vcombine.high %v5683_v33, %v1323_v43  ;;  %v5728_v17 = vmin.f32 %v1292_v15, 6.0 }
 0x16f   : > { %v1307_v46 = vmax.f32 %v1275_v51, 0.0  ;;  %v5731_v48 = vrot.slane %v1373_v49, %v5456_v40  ;;  %v1645_v41 = vcombine.low %v5687_v25, %v5724_v56  ;;  %v7412_v59 = vcombine.high %v5521_v30, %v5524_v10 }
 0x170   : > { %v7413_v34 = vcombine.low %v5535_v44, %v5538_v60  ;;  %v1333_v5 = vmin.f32 %v1301_v61, 6.0  ;;  %v1302_v2 = vmax.f32 %v5694_v35, 0.0  ;;  %v5749_v63 = vrot.slane %v1389_v18, %v5456_v40 }
 0x171   : > { %v5739_v19 = vrot.slane %v7412_v59, %v5663_v57  ;;  %v1661_v26 = vcombine.low %v5698_v32, %v5728_v17  ;;  %v1335_v6 = vmin.f32 %v1303_v55, 6.0  ;;  %v1653_v30 = vrot.slane %v1645_v41, %v5456_v40 }
 0x172   : > { %v5745_v33 = vrot.slane %v7413_v34, %v5663_v57  ;;  %v1337_v10 = vmin.f32 %v1305_v14, 6.0  ;;  %v1339_v38 = vmin.f32 %v1307_v46, 6.0  ;;  %v1304_v7 = vmax.f32 %v1272_v45, 0.0 }
 0x173   : > { %v1437_v3 = vcombine.low %v5731_v48, %v5749_v63  ;;  %v1669_v53 = vrot.slane %v1661_v26, %v5456_v40  ;;  %v1274_v61 = vadd.f32 %v5442_v9, %v1230_v62  ;;  %v1276_v29 = vadd.f32 %v5442_v9, %v1232_v23 }
 0x174   : > { %v1509_v35 = vcombine.low %v1333_v5, %v1337_v10  ;;  %v1510_v54 = vcombine.high %v1333_v5, %v1337_v10  ;;  %v1525_v13 = vcombine.low %v1335_v6, %v1339_v38  ;;  %v1526_v16 = vcombine.high %v1335_v6, %v1339_v38 }
 0x175   : > { %v1306_v50 = vmax.f32 %v1274_v61, 0.0  ;;  %v1709_v55 = vcombine.low %v1653_v30, %v1669_v53  ;;  %v7414_v28 = vcombine.high %v5535_v44, %v5538_v60  ;;  %v1445_v58 = vrot.slane %v1437_v3, %v5663_v57  ;;  %v3764_v61 = vld [vmem:[%s7395_s3 + $0x270] sm:$0xff] }
 0x176   : > { %v7415_v12 = vcombine.low %v5570_v27, %v5581_v22  ;;  %v7416_v37 = vcombine.low %v5549_v8, %v5561_v21  ;;  %v7417_v44 = vcombine.high %v5549_v8, %v5561_v21  ;;  %v1334_v42 = vmin.f32 %v1302_v2, 6.0 }
 0x177   : > { %v5763_v45 = vrot.slane %v7414_v28, %v5663_v57  ;;  %v1338_v62 = vmin.f32 %v1306_v50, 6.0  ;;  %v1308_v43 = vmax.f32 %v1276_v29, 0.0  ;;  %v1717_v15 = vrot.slane %v1709_v55, %v5663_v57  ;;  %v3779_v50 = vld [vmem:[%s7395_s3 + $0x2e8] sm:$0xff] }
 0x178   : > { %v5770_v36 = vrot.slane %v7415_v12, %v5663_v57  ;;  %v5776_v9 = vrot.slane %v7416_v37, %v5663_v57  ;;  %v5782_v60 = vrot.slane %v7417_v44, %v5663_v57  ;;  %v1336_v51 = vmin.f32 %v1304_v7, 6.0  ;;  %v3795_v12 = vld [vmem:[%s7395_s3 + $0x368] sm:$0xff]  ;;  %v3778_v37 = vld [vmem:[%s7395_s3 + $0x2e0] sm:$0xff] }
 0x179   : > { %v1388_v52 = vrot.slane %v1374_v39, %v5456_v40  ;;  %v1710_v23 = vcombine.high %v1653_v30, %v1669_v53  ;;  %v7418_v49 = vcombine.high %v5570_v27, %v5581_v22  ;;  %v1781_v18 = vcombine.low %v1334_v42, %v1338_v62  ;;  %v3765_v39 = vld [vmem:[%s7395_s3 + $0x278] sm:$0xff] }
 0x17a   : > { %v1782_v46 = vcombine.high %v1334_v42, %v1338_v62  ;;  %v1340_v8 = vmin.f32 %v1308_v43, 6.0  ;;  %v1742_v21 = vcombine.high %v5681_v4, %v1717_v15  ;;  %v1404_v41 = vrot.slane %v1390_v11, %v5456_v40  ;;  %v3780_v11 = vld [vmem:[%s7395_s3 + $0x2f0] sm:$0xff] }
 0x17b   : > { %v5790_v14 = vrot.slane %v7418_v49, %v5663_v57  ;;  %v1741_v59 = vcombine.low %v5681_v4, %v1717_v15  ;;  %v1470_v34 = vcombine.high %v5673_v47, %v1445_v58  ;;  %v1724_v5 = vrot.slane %v1710_v23, %v5663_v57  ;;  %v3797_v4 = vld [vmem:[%s7395_s3 + $0x378] sm:$0xff]  ;;  %v3810_v15 = vld [vmem:[%s7395_s3 + $0x3e0] sm:$0xff] }
 0x17c   : > { %v5801_v27 = vrot.slane %v1781_v18, %v5456_v40  ;;  %v1797_v22 = vcombine.low %v1336_v51, %v1340_v8  ;;  %v1798_v2 = vcombine.high %v1336_v51, %v1340_v8  ;;  %2014 = vmatprep.mubr.f32.mxu0 %v1742_v21  ;;  %v1469_v26 = vcombine.low %v5673_v47, %v1445_v58  ;;  %v3812_v47 = vld [vmem:[%s7395_s3 + $0x3f0] sm:$0xff]  ;;  %v3762_v51 = vld [vmem:[%s7395_s3 + $0x260] sm:$0xff]  ;;  %v3777_v18 = vld [vmem:[%s7395_s3 + $0x2d8] sm:$0xff] }
 0x17d   : > { %v5811_v6 = vrot.slane %v1509_v35, %v5456_v40  ;;  %v5814_v30 = vrot.slane %v1525_v13, %v5456_v40  ;;  %2084 = vmatprep.mubr.f32.mxu1 %v1741_v59  ;;  %2015 = vmatmul.mubr.f32.vlgmr.msra.gmra.mxu0 %v1470_v34  ;;  %v7419_v10 = vcombine.low %v5573_v31, %v5584_v1  ;;  %v3794_v49 = vld [vmem:[%s7395_s3 + $0x360] sm:$0xff]  ;;  %v3761_v59 = vld [vmem:[%s7395_s3 + $0x258] sm:$0xff] }
 0x17e   : > { %v5826_v7 = vrot.slane %v1510_v54, %v5456_v40  ;;  %v1805_v3 = vrot.slane %v1797_v22, %v5456_v40  ;;  %2085 = vmatmul.mubr.f32.vlgmr.msra.gmra.mxu1 %v1469_v26  ;;  %4274 = vmatpush3.msra.mxu0 %v3765_v39  ;;  %v1743_v53 = vcombine.low %v5739_v19, %v1724_v5  ;;  %v3796_v54 = vld [vmem:[%s7395_s3 + $0x370] sm:$0xff] }
 0x17f   : > { %v5823_v38 = vrot.slane %v7419_v10, %v5663_v57  ;;  %v5834_v35 = vrot.slane %v1526_v16, %v5456_v40  ;;  %4309 = vmatpush3.msra.mxu1 %v3797_v4  ;;  %4275 = vmatprep.subr.mxu0 %v3780_v11  ;;  %v1744_v13 = vcombine.high %v5739_v19, %v1724_v5  ;;  %v3811_v16 = vld [vmem:[%s7395_s3 + $0x3e8] sm:$0xff]  ;;  %v3776_v26 = vld [vmem:[%s7395_s3 + $0x2d0] sm:$0xff] }
 0x180   : > { %v1453_v29 = vcombine.low %v1388_v52, %v1404_v41  ;;  %v5844_v55 = vrot.slane %v1782_v46, %v5456_v40  ;;  %2187 = vmatprep.mubr.f32.mxu0 %v1743_v53  ;;  %4310 = vmatprep.subr.mxu1 %v3812_v47  ;;  %v3763_v19 = vld [vmem:[%s7395_s3 + $0x268] sm:$0xff]  ;;  %v1454_v28 = vcombine.high %v1388_v52, %v1404_v41  ;;  %v3809_v41 = vld [vmem:[%s7395_s3 + $0x3d8] sm:$0xff]  ;;  %v3760_v47 = vld [vmem:[%s7395_s3 + $0x250] sm:$0xff] }
 0x181   : > { %v1845_v58 = vcombine.low %v5801_v27, %v1805_v3  ;;  %2291 = vmatprep.mubr.f32.mxu1 %v1744_v13  ;;  %4276 = vmatpush3.msra.mxu0 %v3764_v61  ;;  %v1573_v42 = vcombine.low %v5811_v6, %v5814_v30  ;;  %v1846_v62 = vcombine.high %v5801_v27, %v1805_v3  ;;  %v3792_v61 = vld [vmem:[%s7395_s3 + $0x350] sm:$0xff]  ;;  %v3775_v13 = vld [vmem:[%s7395_s3 + $0x2c8] sm:$0xff] }
 0x182   : > { %v5860_v44 = vrot.slane %v1453_v29, %v5663_v57  ;;  %v1812_v43 = vrot.slane %v1798_v2, %v5456_v40  ;;  %4311 = vmatpush3.msra.mxu1 %v3796_v54  ;;  %4277 = vmatprep.subr.mxu0 %v3779_v50  ;;  %v5873_v52 = vrot.slane %v1454_v28, %v5663_v57  ;;  %v3793_v2 = vld [vmem:[%s7395_s3 + $0x358] sm:$0xff] }
 0x183   : > { %v5876_v23 = vrot.slane %v1845_v58, %v5663_v57  ;;  %4312 = vmatprep.subr.mxu1 %v3811_v16  ;;  %4278 = vmatpush3.msra.mxu0 %v3763_v19  ;;  %v5889_v21 = vrot.slane %v1573_v42, %v5663_v57  ;;  %v7420_v39 = vcombine.low %v5558_v20, %v5567_v24  ;;  %v3807_v16 = vld [vmem:[%s7395_s3 + $0x3c8] sm:$0xff] }
 0x184   : > { %v1473_v46 = vcombine.low %v5745_v33, %v5860_v44  ;;  %v1474_v8 = vcombine.high %v5745_v33, %v5860_v44  ;;  %4313 = vmatpush3.msra.mxu1 %v3795_v12  ;;  %4279 = vmatprep.subr.mxu0 %v3778_v37  ;;  %v1475_v34 = vcombine.low %v5763_v45, %v5873_v52  ;;  %v3759_v19 = vld [vmem:[%s7395_s3 + $0x248] sm:$0xff]  ;;  %v3774_v12 = vld [vmem:[%s7395_s3 + $0x2c0] sm:$0xff]  ;;  %v3924_v33 = vld [vmem:[%s7395_s3 + $0x770] sm:$0xff] }
 0x185   : > { %v5903_v5 = vrot.slane %v7420_v39, %v5663_v57  ;;  %v7421_v27 = vcombine.high %v5573_v31, %v5584_v1  ;;  %4314 = vmatprep.subr.mxu1 %v3810_v15  ;;  %4280 = vmatpush3.msra.mxu0 %v3762_v51  ;;  %v1476_v4 = vcombine.high %v5763_v45, %v5873_v52  ;;  %v3808_v1 = vld [vmem:[%s7395_s3 + $0x3d0] sm:$0xff]  ;;  %v3791_v58 = vld [vmem:[%s7395_s3 + $0x348] sm:$0xff] }
 0x186   : > { %v1877_v11 = vcombine.low %v5770_v36, %v5876_v23  ;;  %v1878_v31 = vcombine.high %v5770_v36, %v5876_v23  ;;  %4315 = vmatpush3.msra.mxu1 %v3794_v49  ;;  %4281 = vmatprep.subr.mxu0 %v3777_v18  ;;  %v1605_v10 = vcombine.low %v5776_v9, %v5889_v21  ;;  %v3907_v44 = vld [vmem:[%s7395_s3 + $0x6e8] sm:$0xff]  ;;  %v3988_v45 = vld [vmem:[%s7395_s3 + $0x970] sm:$0xff]  ;;  %v3970_v36 = vld [vmem:[%s7395_s3 + $0x8e0] sm:$0xff] }
 0x187   : > { %v5909_v22 = vrot.slane %v7421_v27, %v5663_v57  ;;  %v1606_v3 = vcombine.high %v5776_v9, %v5889_v21  ;;  %v5934_v53 = vrot.slane %v1846_v62, %v5663_v57  ;;  %4316 = vmatprep.subr.mxu1 %v3809_v41  ;;  %4282 = vmatpush3.msra.mxu0 %v3761_v59  ;;  %v3790_v41 = vld [vmem:[%s7395_s3 + $0x340] sm:$0xff]  ;;  %v3773_v59 = vld [vmem:[%s7395_s3 + $0x2b8] sm:$0xff]  ;;  %v3971_v52 = vld [vmem:[%s7395_s3 + $0x8e8] sm:$0xff] }
 0x188   : > { %v1574_v54 = vcombine.high %v5811_v6, %v5814_v30  ;;  %v1861_v50 = vcombine.low %v5844_v55, %v1812_v43  ;;  %v1589_v29 = vcombine.low %v5826_v7, %v5834_v35  ;;  %4317 = vmatpush3.msra.mxu1 %v3793_v2  ;;  %4283 = vmatprep.subr.mxu0 %v3776_v26  ;;  %v4002_v23 = vld [vmem:[%s7395_s3 + $0x9e0] sm:$0xff]  ;;  %v4052_v9 = vld [vmem:[%s7395_s3 + $0xb70] sm:$0xff]  ;;  %v4035_v21 = vld [vmem:[%s7395_s3 + $0xae8] sm:$0xff] }
 0x189   : > { %v1879_v28 = vcombine.low %v5790_v14, %v5934_v53  ;;  %v1880_v6 = vcombine.high %v5790_v14, %v5934_v53  ;;  %v1862_v30 = vcombine.high %v5844_v55, %v1812_v43  ;;  %4318 = vmatprep.subr.mxu1 %v3808_v1  ;;  %4284 = vmatpush3.msra.mxu0 %v3760_v47  ;;  %v3806_v55 = vld [vmem:[%s7395_s3 + $0x3c0] sm:$0xff]  ;;  %v3789_v1 = vld [vmem:[%s7395_s3 + $0x338] sm:$0xff]  ;;  %v3772_v47 = vld [vmem:[%s7395_s3 + $0x2b0] sm:$0xff] }
 0x18a   : > { %v5965_v37 = vrot.slane %v1574_v54, %v5663_v57  ;;  %v5968_v42 = vrot.slane %v1861_v50, %v5663_v57  ;;  %v5971_v62 = vrot.slane %v1589_v29, %v5663_v57  ;;  %4319 = vmatpush3.msra.mxu1 %v3792_v61  ;;  %4285 = vmatprep.subr.mxu0 %v3775_v13  ;;  %v3758_v43 = vld [vmem:[%s7395_s3 + $0x240] sm:$0xff]  ;;  %v3804_v29 = vld [vmem:[%s7395_s3 + $0x3b0] sm:$0xff] }
 0x18b   : > { %v5980_v15 = vrot.slane %v1862_v30, %v5663_v57  ;;  %v7422_v51 = vcombine.high %v5558_v20, %v5567_v24  ;;  %v1590_v18 = vcombine.high %v5826_v7, %v5834_v35  ;;  %4320 = vmatprep.subr.mxu1 %v3807_v16  ;;  %4286 = vmatpush3.msra.mxu0 %v3759_v19  ;;  %v3805_v7 = vld [vmem:[%s7395_s3 + $0x3b8] sm:$0xff]  ;;  %v3756_v16 = vld [vmem:[%s7395_s3 + $0x230] sm:$0xff]  ;;  %v4034_v14 = vld [vmem:[%s7395_s3 + $0xae0] sm:$0xff] }
 0x18c   : > { %v1607_v39 = vcombine.low %v5782_v60, %v5965_v37  ;;  %v1608_v20 = vcombine.high %v5782_v60, %v5965_v37  ;;  %v1881_v24 = vcombine.low %v5823_v38, %v5968_v42  ;;  %4321 = vmatpush3.msra.mxu1 %v3791_v58  ;;  %4287 = vmatprep.subr.mxu0 %v3774_v12  ;;  %v3757_v35 = vld [vmem:[%s7395_s3 + $0x238] sm:$0xff]  ;;  %v3788_v30 = vld [vmem:[%s7395_s3 + $0x330] sm:$0xff]  ;;  %v3787_v12 = vld [vmem:[%s7395_s3 + $0x328] sm:$0xff] }
 0x18d   : > { %v5986_v49 = vrot.slane %v7422_v51, %v5663_v57  ;;  %v1882_v27 = vcombine.high %v5823_v38, %v5968_v42  ;;  %v1609_v2 = vcombine.low %v5903_v5, %v5971_v62  ;;  %v1610_v26 = vcombine.high %v5903_v5, %v5971_v62  ;;  %4322 = vmatprep.subr.mxu1 %v3806_v55  ;;  %v3770_v55 = vld [vmem:[%s7395_s3 + $0x2a0] sm:$0xff]  ;;  %v4116_v60 = vld [vmem:[%s7395_s3 + $0xd70] sm:$0xff]  ;;  %v4099_v37 = vld [vmem:[%s7395_s3 + $0xce8] sm:$0xff] }
 0x18e   : > { %4288 = vmatpush3.msra.mxu0 %v3758_v43  ;;  %v1883_v61 = vcombine.low %v5909_v22, %v5980_v15  ;;  %v1884_v13 = vcombine.high %v5909_v22, %v5980_v15  ;;  %v6025_v54 = vrot.slane %v1590_v18, %v5663_v57  ;;  %v1646_v50 = vcombine.high %v5687_v25, %v5724_v56  ;;  %v3771_v25 = vld [vmem:[%s7395_s3 + $0x2a8] sm:$0xff]  ;;  %v3802_v43 = vld [vmem:[%s7395_s3 + $0x3a0] sm:$0xff]  ;;  %v4180_v5 = vld [vmem:[%s7395_s3 + $0xf70] sm:$0xff] }
 0x18f   : > { %4323 = vmatpush3.msra.mxu1 %v3790_v41  ;;  %4289 = vmatprep.subr.mxu0 %v3773_v59  ;;  %v1662_v19 = vcombine.high %v5698_v32, %v5728_v17  ;;  %v3803_v32 = vld [vmem:[%s7395_s3 + $0x3a8] sm:$0xff]  ;;  %v3754_v51 = vld [vmem:[%s7395_s3 + $0x220] sm:$0xff] }
 0x190   : > { %4324 = vmatprep.subr.mxu1 %v3805_v7  ;;  %4290 = vmatpush3.msra.mxu0 %v3757_v35  ;;  %v1611_v56 = vcombine.low %v5986_v49, %v6025_v54  ;;  %v1612_v58 = vcombine.high %v5986_v49, %v6025_v54  ;;  %v3755_v17 = vld [vmem:[%s7395_s3 + $0x228] sm:$0xff]  ;;  %v6066_v18 = vrot.slane %v1646_v50, %v5456_v40  ;;  %v3786_v59 = vld [vmem:[%s7395_s3 + $0x320] sm:$0xff]  ;;  %v3769_v7 = vld [vmem:[%s7395_s3 + $0x298] sm:$0xff] }
 0x191   : > { %4325 = vmatpush3.msra.mxu1 %v3789_v1  ;;  %4291 = vmatprep.subr.mxu0 %v3772_v47  ;;  %v6069_v41 = vrot.slane %v1662_v19, %v5456_v40  ;;  %v3801_v35 = vld [vmem:[%s7395_s3 + $0x398] sm:$0xff]  ;;  %v1438_v1 = vcombine.high %v5731_v48, %v5749_v63  ;;  %v3768_v50 = vld [vmem:[%s7395_s3 + $0x290] sm:$0xff]  ;;  %v4066_v53 = vld [vmem:[%s7395_s3 + $0xbe0] sm:$0xff] }
 0x192   : > { %4326 = vmatprep.subr.mxu1 %v3804_v29  ;;  %4292 = vmatpush3.msra.mxu0 %v3756_v16  ;;  %v3753_v40 = vld [vmem:[%s7395_s3 + $0x218] sm:$0xff]  ;;  %v3800_v29 = vld [vmem:[%s7395_s3 + $0x390] sm:$0xff]  ;;  %v3767_v16 = vld [vmem:[%s7395_s3 + $0x288] sm:$0xff] }
 0x193   : > { %4327 = vmatpush3.msra.mxu1 %v3788_v30  ;;  %4293 = vmatprep.subr.mxu0 %v3771_v25  ;;  %v3785_v47 = vld [vmem:[%s7395_s3 + $0x318] sm:$0xff]  ;;  %v3752_v48 = vld [vmem:[%s7395_s3 + $0x210] sm:$0xff]  ;;  %v1725_v19 = vcombine.low %v6066_v18, %v6069_v41  ;;  %v3799_v30 = vld [vmem:[%s7395_s3 + $0x388] sm:$0xff] }
 0x194   : > { %4328 = vmatprep.subr.mxu1 %v3803_v32  ;;  %4294 = vmatpush3.msra.mxu0 %v3755_v17  ;;  %v3784_v63 = vld [vmem:[%s7395_s3 + $0x310] sm:$0xff]  ;;  %v3751_v25 = vld [vmem:[%s7395_s3 + $0x208] sm:$0xff]  ;;  %v1452_v32 = vrot.slane %v1438_v1, %v5663_v57  ;;  %v4098_v38 = vld [vmem:[%s7395_s3 + $0xce0] sm:$0xff] }
 0x195   : > { %4329 = vmatpush3.msra.mxu1 %v3787_v12  ;;  %4295 = vmatprep.subr.mxu0 %v3770_v55  ;;  %v3783_v17 = vld [vmem:[%s7395_s3 + $0x308] sm:$0xff]  ;;  %v3766_v12 = vld [vmem:[%s7395_s3 + $0x280] sm:$0xff] }
 0x196   : > { %4330 = vmatprep.subr.mxu1 %v3802_v43  ;;  %4296 = vmatpush3.msra.mxu0 %v3754_v51  ;;  %v3798_v55 = vld [vmem:[%s7395_s3 + $0x380] sm:$0xff]  ;;  %v7423_v51 = vld [vmem:[#allocation5_spill] sm:$0xff]  ;;  %v4163_v62 = vld [vmem:[%s7395_s3 + $0xee8] sm:$0xff] }
 0x197   : > { %4331 = vmatpush3.msra.mxu1 %v3786_v59  ;;  %4297 = vmatprep.subr.mxu0 %v3769_v7  ;;  %v3750_v43 = vld [vmem:[%s7395_s3 + $0x200] sm:$0xff]  ;;  %v7424_v59 = vcombine.high %v5502_v0, %v7423_v51  ;;  %v3877_v0 = vld [vmem:[%s7395_s3 + $0x5f8] sm:$0xff]  ;;  %v3843_v51 = vld [vmem:[%s7395_s3 + $0x4e8] sm:$0xff] }
 0x198   : > { %4332 = vmatprep.subr.mxu1 %v3801_v35  ;;  %4298 = vmatpush3.msra.mxu0 %v3753_v40  ;;  %v3782_v35 = vld [vmem:[%s7395_s3 + $0x300] sm:$0xff]  ;;  %v1733_v40 = vrot.slane %v1725_v19, %v5663_v57 }
 0x199   : > { %4333 = vmatpush3.msra.mxu1 %v3785_v47  ;;  %4299 = vmatprep.subr.mxu0 %v3768_v50  ;;  %v1420_v7 = vrot.slane %v7424_v59, %v5663_v57  ;;  %v3845_v47 = vld [vmem:[%s7395_s3 + $0x4f8] sm:$0xff]  ;;  %v3875_v59 = vld [vmem:[%s7395_s3 + $0x5e8] sm:$0xff]  ;;  %v4130_v42 = vld [vmem:[%s7395_s3 + $0xde0] sm:$0xff] }
 0x19a   : > { %4334 = vmatprep.subr.mxu1 %v3800_v29  ;;  %4300 = vmatpush3.msra.mxu0 %v3752_v48  ;;  %v3829_v29 = vld [vmem:[%s7395_s3 + $0x478] sm:$0xff]  ;;  %v4162_v22 = vld [vmem:[%s7395_s3 + $0xee0] sm:$0xff] }
 0x19b   : > { %4335 = vmatpush3.msra.mxu1 %v3784_v63  ;;  %4301 = vmatprep.subr.mxu0 %v3767_v16  ;;  %v1471_v1 = vcombine.low %v1420_v7, %v1452_v32  ;;  %v1472_v50 = vcombine.high %v1420_v7, %v1452_v32  ;;  %v7425_v48 = vld [vmem:[#allocation6_spill] sm:$0xff]  ;;  %v7426_v63 = vld [vmem:[#allocation7_spill] sm:$0xff]  ;;  %v3844_v32 = vld [vmem:[%s7395_s3 + $0x4f0] sm:$0xff] }
 0x19c   : > { %4336 = vmatprep.subr.mxu1 %v3799_v30  ;;  %4302 = vmatpush3.msra.mxu0 %v3751_v25  ;;  %v7427_v16 = vcombine.low %v7425_v48, %v7426_v63  ;;  %v3861_v30 = vld [vmem:[%s7395_s3 + $0x578] sm:$0xff]  ;;  %v3827_v7 = vld [vmem:[%s7395_s3 + $0x468] sm:$0xff]  ;;  %v4194_v15 = vld [vmem:[%s7395_s3 + $0xfe0] sm:$0xff] }
 0x19d   : > { %4337 = vmatpush3.msra.mxu1 %v3783_v17  ;;  %4303 = vmatprep.subr.mxu0 %v3766_v12  ;;  %v3876_v12 = vld [vmem:[%s7395_s3 + $0x5f0] sm:$0xff] }
 0x19e   : > { %4338 = vmatprep.subr.mxu1 %v3798_v55  ;;  %4304 = vmatpush3.msra.mxu0 %v3750_v43  ;;  %v1701_v19 = vrot.slane %v7427_v16, %v5663_v57  ;;  %v3828_v55 = vld [vmem:[%s7395_s3 + $0x470] sm:$0xff]  ;;  %v3825_v16 = vld [vmem:[%s7395_s3 + $0x458] sm:$0xff] }
 0x19f   : > { %4339 = vmatpush3.msra.mxu1 %v3782_v35  ;;  %2188 = vmatmul.mubr.f32.vlgmr.msra.gmra.mxu0 %v1471_v1  ;;  %v3860_v43 = vld [vmem:[%s7395_s3 + $0x570] sm:$0xff]  ;;  %v3859_v35 = vld [vmem:[%s7395_s3 + $0x568] sm:$0xff]  ;;  %v3874_v1 = vld [vmem:[%s7395_s3 + $0x5e0] sm:$0xff] }
 0x1a0   : > { %2292 = vmatmul.mubr.f32.vlgmr.msra.gmra.mxu1 %v1472_v50  ;;  %4343 = vmatprep.subr.mxu0 %v3845_v47  ;;  %v1745_v25 = vcombine.low %v1701_v19, %v1733_v40  ;;  %v1746_v17 = vcombine.high %v1701_v19, %v1733_v40  ;;  %v3842_v40 = vld [vmem:[%s7395_s3 + $0x4e0] sm:$0xff]  ;;  %v3857_v19 = vld [vmem:[%s7395_s3 + $0x558] sm:$0xff] }
 0x1a1   : > { %4378 = vmatprep.subr.mxu1 %v3877_v0  ;;  %4344 = vmatpush3.msra.mxu0 %v3829_v29  ;;  %v3826_v47 = vld [vmem:[%s7395_s3 + $0x460] sm:$0xff]  ;;  %v3841_v0 = vld [vmem:[%s7395_s3 + $0x4d8] sm:$0xff] }
 0x1a2   : > { %2395 = vmatprep.mubr.f32.mxu0 %v1745_v25  ;;  %4379 = vmatpush3.msra.mxu1 %v3861_v30  ;;  %v3858_v50 = vld [vmem:[%s7395_s3 + $0x560] sm:$0xff]  ;;  %v3873_v29 = vld [vmem:[%s7395_s3 + $0x5d8] sm:$0xff]  ;;  %v3840_v30 = vld [vmem:[%s7395_s3 + $0x4d0] sm:$0xff] }
 0x1a3   : > { %2499 = vmatprep.mubr.f32.mxu1 %v1746_v17  ;;  %4345 = vmatprep.subr.mxu0 %v3844_v32  ;;  %v3872_v25 = vld [vmem:[%s7395_s3 + $0x5d0] sm:$0xff] }
 0x1a4   : > { %4380 = vmatprep.subr.mxu1 %v3876_v12  ;;  %4346 = vmatpush3.msra.mxu0 %v3828_v55  ;;  %v3824_v32 = vld [vmem:[%s7395_s3 + $0x450] sm:$0xff]  ;;  %v3839_v12 = vld [vmem:[%s7395_s3 + $0x4c8] sm:$0xff] }
 0x1a5   : > { %4381 = vmatpush3.msra.mxu1 %v3860_v43  ;;  %4347 = vmatprep.subr.mxu0 %v3843_v51  ;;  %v3856_v17 = vld [vmem:[%s7395_s3 + $0x550] sm:$0xff]  ;;  %v3871_v55 = vld [vmem:[%s7395_s3 + $0x5c8] sm:$0xff] }
 0x1a6   : > { %4382 = vmatprep.subr.mxu1 %v3875_v59  ;;  %4348 = vmatpush3.msra.mxu0 %v3827_v7  ;;  %v3823_v43 = vld [vmem:[%s7395_s3 + $0x448] sm:$0xff]  ;;  %v3838_v59 = vld [vmem:[%s7395_s3 + $0x4c0] sm:$0xff] }
 0x1a7   : > { %4383 = vmatpush3.msra.mxu1 %v3859_v35  ;;  %4349 = vmatprep.subr.mxu0 %v3842_v40  ;;  %v3855_v51 = vld [vmem:[%s7395_s3 + $0x548] sm:$0xff]  ;;  %v3870_v7 = vld [vmem:[%s7395_s3 + $0x5c0] sm:$0xff] }
 0x1a8   : > { %4384 = vmatprep.subr.mxu1 %v3874_v1  ;;  %4350 = vmatpush3.msra.mxu0 %v3826_v47  ;;  %v3822_v35 = vld [vmem:[%s7395_s3 + $0x440] sm:$0xff]  ;;  %v3837_v1 = vld [vmem:[%s7395_s3 + $0x4b8] sm:$0xff] }
 0x1a9   : > { %4385 = vmatpush3.msra.mxu1 %v3858_v50  ;;  %4351 = vmatprep.subr.mxu0 %v3841_v0  ;;  %v3854_v40 = vld [vmem:[%s7395_s3 + $0x540] sm:$0xff]  ;;  %v3869_v47 = vld [vmem:[%s7395_s3 + $0x5b8] sm:$0xff] }
 0x1aa   : > { %4386 = vmatprep.subr.mxu1 %v3873_v29  ;;  %4352 = vmatpush3.msra.mxu0 %v3825_v16  ;;  %v3821_v50 = vld [vmem:[%s7395_s3 + $0x438] sm:$0xff]  ;;  %v3836_v29 = vld [vmem:[%s7395_s3 + $0x4b0] sm:$0xff] }
 0x1ab   : > { %4387 = vmatpush3.msra.mxu1 %v3857_v19  ;;  %4353 = vmatprep.subr.mxu0 %v3840_v30  ;;  %v3853_v0 = vld [vmem:[%s7395_s3 + $0x538] sm:$0xff]  ;;  %v3868_v16 = vld [vmem:[%s7395_s3 + $0x5b0] sm:$0xff] }
 0x1ac   : > { %4388 = vmatprep.subr.mxu1 %v3872_v25  ;;  %4354 = vmatpush3.msra.mxu0 %v3824_v32  ;;  %v3820_v19 = vld [vmem:[%s7395_s3 + $0x430] sm:$0xff]  ;;  %v3835_v25 = vld [vmem:[%s7395_s3 + $0x4a8] sm:$0xff] }
 0x1ad   : > { %4389 = vmatpush3.msra.mxu1 %v3856_v17  ;;  %4355 = vmatprep.subr.mxu0 %v3839_v12  ;;  %v3852_v30 = vld [vmem:[%s7395_s3 + $0x530] sm:$0xff]  ;;  %v3867_v32 = vld [vmem:[%s7395_s3 + $0x5a8] sm:$0xff] }
 0x1ae   : > { %4390 = vmatprep.subr.mxu1 %v3871_v55  ;;  %4356 = vmatpush3.msra.mxu0 %v3823_v43  ;;  %v3819_v17 = vld [vmem:[%s7395_s3 + $0x428] sm:$0xff]  ;;  %v3834_v55 = vld [vmem:[%s7395_s3 + $0x4a0] sm:$0xff] }
 0x1af   : > { %4391 = vmatpush3.msra.mxu1 %v3855_v51  ;;  %4357 = vmatprep.subr.mxu0 %v3838_v59  ;;  %v3851_v12 = vld [vmem:[%s7395_s3 + $0x528] sm:$0xff]  ;;  %v3866_v43 = vld [vmem:[%s7395_s3 + $0x5a0] sm:$0xff] }
 0x1b0   : > { %4392 = vmatprep.subr.mxu1 %v3870_v7  ;;  %4358 = vmatpush3.msra.mxu0 %v3822_v35  ;;  %v3818_v51 = vld [vmem:[%s7395_s3 + $0x420] sm:$0xff]  ;;  %v3833_v7 = vld [vmem:[%s7395_s3 + $0x498] sm:$0xff] }
 0x1b1   : > { %4393 = vmatpush3.msra.mxu1 %v3854_v40  ;;  %4359 = vmatprep.subr.mxu0 %v3837_v1  ;;  %v3850_v59 = vld [vmem:[%s7395_s3 + $0x520] sm:$0xff]  ;;  %v3865_v35 = vld [vmem:[%s7395_s3 + $0x598] sm:$0xff] }
 0x1b2   : > { %4394 = vmatprep.subr.mxu1 %v3869_v47  ;;  %4360 = vmatpush3.msra.mxu0 %v3821_v50  ;;  %v3817_v40 = vld [vmem:[%s7395_s3 + $0x418] sm:$0xff]  ;;  %v3832_v47 = vld [vmem:[%s7395_s3 + $0x490] sm:$0xff] }
 0x1b3   : > { %4395 = vmatpush3.msra.mxu1 %v3853_v0  ;;  %4361 = vmatprep.subr.mxu0 %v3836_v29  ;;  %v3849_v1 = vld [vmem:[%s7395_s3 + $0x518] sm:$0xff]  ;;  %v3864_v50 = vld [vmem:[%s7395_s3 + $0x590] sm:$0xff] }
 0x1b4   : > { %4396 = vmatprep.subr.mxu1 %v3868_v16  ;;  %4362 = vmatpush3.msra.mxu0 %v3820_v19  ;;  %v3816_v0 = vld [vmem:[%s7395_s3 + $0x410] sm:$0xff]  ;;  %v3831_v16 = vld [vmem:[%s7395_s3 + $0x488] sm:$0xff]  ;;  %v1726_v19 = vcombine.high %v6066_v18, %v6069_v41  ;;  %v3830_v18 = vld [vmem:[%s7395_s3 + $0x480] sm:$0xff] }
 0x1b5   : > { %4397 = vmatpush3.msra.mxu1 %v3852_v30  ;;  %4363 = vmatprep.subr.mxu0 %v3835_v25  ;;  %v3848_v29 = vld [vmem:[%s7395_s3 + $0x510] sm:$0xff]  ;;  %v3863_v30 = vld [vmem:[%s7395_s3 + $0x588] sm:$0xff]  ;;  %v3862_v41 = vld [vmem:[%s7395_s3 + $0x580] sm:$0xff] }
 0x1b6   : > { %4398 = vmatprep.subr.mxu1 %v3867_v32  ;;  %4364 = vmatpush3.msra.mxu0 %v3819_v17  ;;  %v3815_v25 = vld [vmem:[%s7395_s3 + $0x408] sm:$0xff]  ;;  %v3814_v17 = vld [vmem:[%s7395_s3 + $0x400] sm:$0xff] }
 0x1b7   : > { %4399 = vmatpush3.msra.mxu1 %v3851_v12  ;;  %4365 = vmatprep.subr.mxu0 %v3834_v55  ;;  %v3847_v32 = vld [vmem:[%s7395_s3 + $0x508] sm:$0xff]  ;;  %v3846_v12 = vld [vmem:[%s7395_s3 + $0x500] sm:$0xff]  ;;  %v1740_v55 = vrot.slane %v1726_v19, %v5663_v57 }
 0x1b8   : > { %4400 = vmatprep.subr.mxu1 %v3866_v43  ;;  %4366 = vmatpush3.msra.mxu0 %v3818_v51  ;;  %v3909_v43 = vld [vmem:[%s7395_s3 + $0x6f8] sm:$0xff]  ;;  %v3922_v19 = vld [vmem:[%s7395_s3 + $0x760] sm:$0xff] }
 0x1b9   : > { %4401 = vmatpush3.msra.mxu1 %v3850_v59  ;;  %4367 = vmatprep.subr.mxu0 %v3833_v7  ;;  %v3941_v51 = vld [vmem:[%s7395_s3 + $0x7f8] sm:$0xff]  ;;  %v7428_v7 = vcombine.high %v7425_v48, %v7426_v63  ;;  %v3908_v48 = vld [vmem:[%s7395_s3 + $0x6f0] sm:$0xff] }
 0x1ba   : > { %4402 = vmatprep.subr.mxu1 %v3865_v35  ;;  %4368 = vmatpush3.msra.mxu0 %v3817_v40  ;;  %v3893_v59 = vld [vmem:[%s7395_s3 + $0x678] sm:$0xff]  ;;  %v3892_v63 = vld [vmem:[%s7395_s3 + $0x670] sm:$0xff] }
 0x1bb   : > { %4403 = vmatpush3.msra.mxu1 %v3849_v1  ;;  %4369 = vmatprep.subr.mxu0 %v3832_v47  ;;  %v1708_v35 = vrot.slane %v7428_v7, %v5663_v57  ;;  %v3925_v40 = vld [vmem:[%s7395_s3 + $0x778] sm:$0xff]  ;;  %v3891_v47 = vld [vmem:[%s7395_s3 + $0x668] sm:$0xff] }
 0x1bc   : > { %4404 = vmatprep.subr.mxu1 %v3864_v50  ;;  %4370 = vmatpush3.msra.mxu0 %v3816_v0  ;;  %v3923_v50 = vld [vmem:[%s7395_s3 + $0x768] sm:$0xff]  ;;  %v3906_v0 = vld [vmem:[%s7395_s3 + $0x6e0] sm:$0xff] }
 0x1bd   : > { %4405 = vmatpush3.msra.mxu1 %v3848_v29  ;;  %4371 = vmatprep.subr.mxu0 %v3831_v16  ;;  %v1747_v1 = vcombine.low %v1708_v35, %v1740_v55  ;;  %v1748_v57 = vcombine.high %v1708_v35, %v1740_v55  ;;  %v3938_v29 = vld [vmem:[%s7395_s3 + $0x7e0] sm:$0xff]  ;;  %v3920_v55 = vld [vmem:[%s7395_s3 + $0x750] sm:$0xff]  ;;  %v3919_v7 = vld [vmem:[%s7395_s3 + $0x748] sm:$0xff] }
 0x1be   : > { %4406 = vmatprep.subr.mxu1 %v3863_v30  ;;  %4372 = vmatpush3.msra.mxu0 %v3815_v25  ;;  %v3890_v16 = vld [vmem:[%s7395_s3 + $0x660] sm:$0xff]  ;;  %v3905_v30 = vld [vmem:[%s7395_s3 + $0x6d8] sm:$0xff] }
 0x1bf   : > { %4407 = vmatpush3.msra.mxu1 %v3847_v32  ;;  %4373 = vmatprep.subr.mxu0 %v3830_v18  ;;  %v3937_v25 = vld [vmem:[%s7395_s3 + $0x7d8] sm:$0xff]  ;;  %v3902_v35 = vld [vmem:[%s7395_s3 + $0x6c0] sm:$0xff] }
 0x1c0   : > { %4408 = vmatprep.subr.mxu1 %v3862_v41  ;;  %4374 = vmatpush3.msra.mxu0 %v3814_v17  ;;  %v3889_v32 = vld [vmem:[%s7395_s3 + $0x658] sm:$0xff]  ;;  %v3904_v41 = vld [vmem:[%s7395_s3 + $0x6d0] sm:$0xff] }
 0x1c1   : > { %4409 = vmatpush3.msra.mxu1 %v3846_v12  ;;  %2396 = vmatmul.mubr.f32.vlgmr.msra.gmra.mxu0 %v1473_v46  ;;  %v3940_v46 = vld [vmem:[%s7395_s3 + $0x7f0] sm:$0xff]  ;;  %v3921_v18 = vld [vmem:[%s7395_s3 + $0x758] sm:$0xff] }
 0x1c2   : > { %2500 = vmatmul.mubr.f32.vlgmr.msra.gmra.mxu1 %v1474_v8  ;;  %4413 = vmatprep.subr.mxu0 %v3909_v43  ;;  %v3939_v8 = vld [vmem:[%s7395_s3 + $0x7e8] sm:$0xff]  ;;  %v3936_v17 = vld [vmem:[%s7395_s3 + $0x7d0] sm:$0xff] }
 0x1c3   : > { %4448 = vmatprep.subr.mxu1 %v3941_v51  ;;  %4414 = vmatpush3.msra.mxu0 %v3893_v59  ;;  %v3888_v12 = vld [vmem:[%s7395_s3 + $0x650] sm:$0xff]  ;;  %v3903_v43 = vld [vmem:[%s7395_s3 + $0x6c8] sm:$0xff] }
 0x1c4   : > { %2603 = vmatprep.mubr.f32.mxu0 %v1747_v1  ;;  %4449 = vmatpush3.msra.mxu1 %v3925_v40  ;;  %v3935_v51 = vld [vmem:[%s7395_s3 + $0x7c8] sm:$0xff]  ;;  %v3934_v40 = vld [vmem:[%s7395_s3 + $0x7c0] sm:$0xff] }
 0x1c5   : > { %2707 = vmatprep.mubr.f32.mxu1 %v1748_v57  ;;  %4415 = vmatprep.subr.mxu0 %v3908_v48  ;;  %v3887_v59 = vld [vmem:[%s7395_s3 + $0x648] sm:$0xff]  ;;  %v3886_v1 = vld [vmem:[%s7395_s3 + $0x640] sm:$0xff]  ;;  %v3901_v57 = vld [vmem:[%s7395_s3 + $0x6b8] sm:$0xff] }
 0x1c6   : > { %4450 = vmatprep.subr.mxu1 %v3940_v46  ;;  %4416 = vmatpush3.msra.mxu0 %v3892_v63  ;;  %v3918_v48 = vld [vmem:[%s7395_s3 + $0x740] sm:$0xff]  ;;  %v3933_v46 = vld [vmem:[%s7395_s3 + $0x7b8] sm:$0xff] }
 0x1c7   : > { %4451 = vmatpush3.msra.mxu1 %v3924_v33  ;;  %4417 = vmatprep.subr.mxu0 %v3907_v44  ;;  %v3885_v63 = vld [vmem:[%s7395_s3 + $0x638] sm:$0xff]  ;;  %v3900_v44 = vld [vmem:[%s7395_s3 + $0x6b0] sm:$0xff] }
 0x1c8   : > { %4452 = vmatprep.subr.mxu1 %v3939_v8  ;;  %4418 = vmatpush3.msra.mxu0 %v3891_v47  ;;  %v3917_v33 = vld [vmem:[%s7395_s3 + $0x738] sm:$0xff]  ;;  %v3932_v8 = vld [vmem:[%s7395_s3 + $0x7b0] sm:$0xff] }
 0x1c9   : > { %4453 = vmatpush3.msra.mxu1 %v3923_v50  ;;  %4419 = vmatprep.subr.mxu0 %v3906_v0  ;;  %v3884_v47 = vld [vmem:[%s7395_s3 + $0x630] sm:$0xff]  ;;  %v3899_v0 = vld [vmem:[%s7395_s3 + $0x6a8] sm:$0xff] }
 0x1ca   : > { %4454 = vmatprep.subr.mxu1 %v3938_v29  ;;  %4420 = vmatpush3.msra.mxu0 %v3890_v16  ;;  %v3916_v50 = vld [vmem:[%s7395_s3 + $0x730] sm:$0xff]  ;;  %v3931_v29 = vld [vmem:[%s7395_s3 + $0x7a8] sm:$0xff] }
 0x1cb   : > { %4455 = vmatpush3.msra.mxu1 %v3922_v19  ;;  %4421 = vmatprep.subr.mxu0 %v3905_v30  ;;  %v3883_v16 = vld [vmem:[%s7395_s3 + $0x628] sm:$0xff]  ;;  %v3898_v30 = vld [vmem:[%s7395_s3 + $0x6a0] sm:$0xff] }
 0x1cc   : > { %4456 = vmatprep.subr.mxu1 %v3937_v25  ;;  %4422 = vmatpush3.msra.mxu0 %v3889_v32  ;;  %v3915_v19 = vld [vmem:[%s7395_s3 + $0x728] sm:$0xff]  ;;  %v3930_v25 = vld [vmem:[%s7395_s3 + $0x7a0] sm:$0xff] }
 0x1cd   : > { %4457 = vmatpush3.msra.mxu1 %v3921_v18  ;;  %4423 = vmatprep.subr.mxu0 %v3904_v41  ;;  %v3882_v32 = vld [vmem:[%s7395_s3 + $0x620] sm:$0xff]  ;;  %v3897_v41 = vld [vmem:[%s7395_s3 + $0x698] sm:$0xff] }
 0x1ce   : > { %4458 = vmatprep.subr.mxu1 %v3936_v17  ;;  %4424 = vmatpush3.msra.mxu0 %v3888_v12  ;;  %v3914_v18 = vld [vmem:[%s7395_s3 + $0x720] sm:$0xff]  ;;  %v3929_v17 = vld [vmem:[%s7395_s3 + $0x798] sm:$0xff] }
 0x1cf   : > { %4459 = vmatpush3.msra.mxu1 %v3920_v55  ;;  %4425 = vmatprep.subr.mxu0 %v3903_v43  ;;  %v3881_v12 = vld [vmem:[%s7395_s3 + $0x618] sm:$0xff]  ;;  %v3896_v43 = vld [vmem:[%s7395_s3 + $0x690] sm:$0xff] }
 0x1d0   : > { %4460 = vmatprep.subr.mxu1 %v3935_v51  ;;  %4426 = vmatpush3.msra.mxu0 %v3887_v59  ;;  %v3913_v55 = vld [vmem:[%s7395_s3 + $0x718] sm:$0xff]  ;;  %v3928_v51 = vld [vmem:[%s7395_s3 + $0x790] sm:$0xff] }
 0x1d1   : > { %4461 = vmatpush3.msra.mxu1 %v3919_v7  ;;  %4427 = vmatprep.subr.mxu0 %v3902_v35  ;;  %v3880_v59 = vld [vmem:[%s7395_s3 + $0x610] sm:$0xff]  ;;  %v3895_v35 = vld [vmem:[%s7395_s3 + $0x688] sm:$0xff] }
 0x1d2   : > { %4462 = vmatprep.subr.mxu1 %v3934_v40  ;;  %4428 = vmatpush3.msra.mxu0 %v3886_v1  ;;  %v3912_v7 = vld [vmem:[%s7395_s3 + $0x710] sm:$0xff]  ;;  %v3927_v40 = vld [vmem:[%s7395_s3 + $0x788] sm:$0xff] }
 0x1d3   : > { %4463 = vmatpush3.msra.mxu1 %v3918_v48  ;;  %4429 = vmatprep.subr.mxu0 %v3901_v57  ;;  %v3879_v1 = vld [vmem:[%s7395_s3 + $0x608] sm:$0xff]  ;;  %v3894_v57 = vld [vmem:[%s7395_s3 + $0x680] sm:$0xff] }
 0x1d4   : > { %4464 = vmatprep.subr.mxu1 %v3933_v46  ;;  %4430 = vmatpush3.msra.mxu0 %v3885_v63  ;;  %v3911_v48 = vld [vmem:[%s7395_s3 + $0x708] sm:$0xff]  ;;  %v3926_v46 = vld [vmem:[%s7395_s3 + $0x780] sm:$0xff] }
 0x1d5   : > { %4465 = vmatpush3.msra.mxu1 %v3917_v33  ;;  %4431 = vmatprep.subr.mxu0 %v3900_v44  ;;  %v3878_v63 = vld [vmem:[%s7395_s3 + $0x600] sm:$0xff]  ;;  %v3973_v44 = vld [vmem:[%s7395_s3 + $0x8f8] sm:$0xff] }
 0x1d6   : > { %4466 = vmatprep.subr.mxu1 %v3932_v8  ;;  %4432 = vmatpush3.msra.mxu0 %v3884_v47  ;;  %v3910_v33 = vld [vmem:[%s7395_s3 + $0x700] sm:$0xff]  ;;  %v4005_v8 = vld [vmem:[%s7395_s3 + $0x9f8] sm:$0xff] }
 0x1d7   : > { %4467 = vmatpush3.msra.mxu1 %v3916_v50  ;;  %4433 = vmatprep.subr.mxu0 %v3899_v0  ;;  %v3957_v47 = vld [vmem:[%s7395_s3 + $0x878] sm:$0xff]  ;;  %v3972_v0 = vld [vmem:[%s7395_s3 + $0x8f0] sm:$0xff] }
 0x1d8   : > { %4468 = vmatprep.subr.mxu1 %v3931_v29  ;;  %4434 = vmatpush3.msra.mxu0 %v3883_v16  ;;  %v3989_v50 = vld [vmem:[%s7395_s3 + $0x978] sm:$0xff]  ;;  %v4004_v29 = vld [vmem:[%s7395_s3 + $0x9f0] sm:$0xff]  ;;  %v3987_v16 = vld [vmem:[%s7395_s3 + $0x968] sm:$0xff] }
 0x1d9   : > { %4469 = vmatpush3.msra.mxu1 %v3915_v19  ;;  %4435 = vmatprep.subr.mxu0 %v3898_v30  ;;  %v3986_v19 = vld [vmem:[%s7395_s3 + $0x960] sm:$0xff]  ;;  %v3969_v30 = vld [vmem:[%s7395_s3 + $0x8d8] sm:$0xff] }
 0x1da   : > { %4470 = vmatprep.subr.mxu1 %v3930_v25  ;;  %4436 = vmatpush3.msra.mxu0 %v3882_v32  ;;  %v4001_v25 = vld [vmem:[%s7395_s3 + $0x9d8] sm:$0xff] }
 0x1db   : > { %4471 = vmatpush3.msra.mxu1 %v3914_v18  ;;  %4437 = vmatprep.subr.mxu0 %v3897_v41  ;;  %v3953_v32 = vld [vmem:[%s7395_s3 + $0x858] sm:$0xff]  ;;  %v3968_v41 = vld [vmem:[%s7395_s3 + $0x8d0] sm:$0xff] }
 0x1dc   : > { %4472 = vmatprep.subr.mxu1 %v3929_v17  ;;  %4438 = vmatpush3.msra.mxu0 %v3881_v12  ;;  %v3985_v18 = vld [vmem:[%s7395_s3 + $0x958] sm:$0xff]  ;;  %v4000_v17 = vld [vmem:[%s7395_s3 + $0x9d0] sm:$0xff] }
 0x1dd   : > { %4473 = vmatpush3.msra.mxu1 %v3913_v55  ;;  %4439 = vmatprep.subr.mxu0 %v3896_v43  ;;  %v3952_v12 = vld [vmem:[%s7395_s3 + $0x850] sm:$0xff]  ;;  %v3967_v43 = vld [vmem:[%s7395_s3 + $0x8c8] sm:$0xff] }
 0x1de   : > { %4474 = vmatprep.subr.mxu1 %v3928_v51  ;;  %4440 = vmatpush3.msra.mxu0 %v3880_v59  ;;  %v3984_v55 = vld [vmem:[%s7395_s3 + $0x950] sm:$0xff]  ;;  %v3999_v51 = vld [vmem:[%s7395_s3 + $0x9c8] sm:$0xff] }
 0x1df   : > { %4475 = vmatpush3.msra.mxu1 %v3912_v7  ;;  %4441 = vmatprep.subr.mxu0 %v3895_v35  ;;  %v3951_v59 = vld [vmem:[%s7395_s3 + $0x848] sm:$0xff]  ;;  %v3966_v35 = vld [vmem:[%s7395_s3 + $0x8c0] sm:$0xff] }
 0x1e0   : > { %4476 = vmatprep.subr.mxu1 %v3927_v40  ;;  %4442 = vmatpush3.msra.mxu0 %v3879_v1  ;;  %v3983_v7 = vld [vmem:[%s7395_s3 + $0x948] sm:$0xff]  ;;  %v3998_v40 = vld [vmem:[%s7395_s3 + $0x9c0] sm:$0xff] }
 0x1e1   : > { %4477 = vmatpush3.msra.mxu1 %v3911_v48  ;;  %4443 = vmatprep.subr.mxu0 %v3894_v57  ;;  %v3950_v1 = vld [vmem:[%s7395_s3 + $0x840] sm:$0xff]  ;;  %v3965_v57 = vld [vmem:[%s7395_s3 + $0x8b8] sm:$0xff] }
 0x1e2   : > { %4478 = vmatprep.subr.mxu1 %v3926_v46  ;;  %4444 = vmatpush3.msra.mxu0 %v3878_v63  ;;  %v3982_v48 = vld [vmem:[%s7395_s3 + $0x940] sm:$0xff]  ;;  %v3997_v46 = vld [vmem:[%s7395_s3 + $0x9b8] sm:$0xff] }
 0x1e3   : > { %4479 = vmatpush3.msra.mxu1 %v3910_v33  ;;  %2604 = vmatmul.mubr.f32.vlgmr.msra.gmra.mxu0 %v1475_v34  ;;  %v3956_v34 = vld [vmem:[%s7395_s3 + $0x870] sm:$0xff]  ;;  %v3949_v63 = vld [vmem:[%s7395_s3 + $0x838] sm:$0xff] }
 0x1e4   : > { %2708 = vmatmul.mubr.f32.vlgmr.msra.gmra.mxu1 %v1476_v4  ;;  %4483 = vmatprep.subr.mxu0 %v3973_v44  ;;  %v4003_v4 = vld [vmem:[%s7395_s3 + $0x9e8] sm:$0xff]  ;;  %v3981_v33 = vld [vmem:[%s7395_s3 + $0x938] sm:$0xff]  ;;  %v3964_v44 = vld [vmem:[%s7395_s3 + $0x8b0] sm:$0xff] }
 0x1e5   : > { %4518 = vmatprep.subr.mxu1 %v4005_v8  ;;  %4484 = vmatpush3.msra.mxu0 %v3957_v47  ;;  %v3996_v8 = vld [vmem:[%s7395_s3 + $0x9b0] sm:$0xff] }
 0x1e6   : > { %2811 = vmatprep.mubr.f32.mxu0 %v1877_v11  ;;  %4519 = vmatpush3.msra.mxu1 %v3989_v50  ;;  %v3955_v11 = vld [vmem:[%s7395_s3 + $0x868] sm:$0xff]  ;;  %v3948_v47 = vld [vmem:[%s7395_s3 + $0x830] sm:$0xff] }
 0x1e7   : > { %2915 = vmatprep.mubr.f32.mxu1 %v1878_v31  ;;  %4485 = vmatprep.subr.mxu0 %v3972_v0  ;;  %v3954_v31 = vld [vmem:[%s7395_s3 + $0x860] sm:$0xff]  ;;  %v3980_v50 = vld [vmem:[%s7395_s3 + $0x930] sm:$0xff]  ;;  %v3963_v0 = vld [vmem:[%s7395_s3 + $0x8a8] sm:$0xff] }
 0x1e8   : > { %4520 = vmatprep.subr.mxu1 %v4004_v29  ;;  %4486 = vmatpush3.msra.mxu0 %v3956_v34  ;;  %v3995_v29 = vld [vmem:[%s7395_s3 + $0x9a8] sm:$0xff] }
 0x1e9   : > { %4521 = vmatpush3.msra.mxu1 %v3988_v45  ;;  %4487 = vmatprep.subr.mxu0 %v3971_v52  ;;  %v3947_v34 = vld [vmem:[%s7395_s3 + $0x828] sm:$0xff]  ;;  %v3962_v52 = vld [vmem:[%s7395_s3 + $0x8a0] sm:$0xff] }
 0x1ea   : > { %4522 = vmatprep.subr.mxu1 %v4003_v4  ;;  %4488 = vmatpush3.msra.mxu0 %v3955_v11  ;;  %v3979_v45 = vld [vmem:[%s7395_s3 + $0x928] sm:$0xff]  ;;  %v3994_v4 = vld [vmem:[%s7395_s3 + $0x9a0] sm:$0xff] }
 0x1eb   : > { %4523 = vmatpush3.msra.mxu1 %v3987_v16  ;;  %4489 = vmatprep.subr.mxu0 %v3970_v36  ;;  %v3946_v11 = vld [vmem:[%s7395_s3 + $0x820] sm:$0xff]  ;;  %v3961_v36 = vld [vmem:[%s7395_s3 + $0x898] sm:$0xff] }
 0x1ec   : > { %4524 = vmatprep.subr.mxu1 %v4002_v23  ;;  %4490 = vmatpush3.msra.mxu0 %v3954_v31  ;;  %v3978_v16 = vld [vmem:[%s7395_s3 + $0x920] sm:$0xff]  ;;  %v3993_v23 = vld [vmem:[%s7395_s3 + $0x998] sm:$0xff] }
 0x1ed   : > { %4525 = vmatpush3.msra.mxu1 %v3986_v19  ;;  %4491 = vmatprep.subr.mxu0 %v3969_v30  ;;  %v3945_v31 = vld [vmem:[%s7395_s3 + $0x818] sm:$0xff]  ;;  %v3960_v30 = vld [vmem:[%s7395_s3 + $0x890] sm:$0xff] }
 0x1ee   : > { %4526 = vmatprep.subr.mxu1 %v4001_v25  ;;  %4492 = vmatpush3.msra.mxu0 %v3953_v32  ;;  %v3977_v19 = vld [vmem:[%s7395_s3 + $0x918] sm:$0xff]  ;;  %v3992_v25 = vld [vmem:[%s7395_s3 + $0x990] sm:$0xff] }
 0x1ef   : > { %4527 = vmatpush3.msra.mxu1 %v3985_v18  ;;  %4493 = vmatprep.subr.mxu0 %v3968_v41  ;;  %v3944_v32 = vld [vmem:[%s7395_s3 + $0x810] sm:$0xff]  ;;  %v3959_v41 = vld [vmem:[%s7395_s3 + $0x888] sm:$0xff] }
 0x1f0   : > { %4528 = vmatprep.subr.mxu1 %v4000_v17  ;;  %4494 = vmatpush3.msra.mxu0 %v3952_v12  ;;  %v3976_v18 = vld [vmem:[%s7395_s3 + $0x910] sm:$0xff]  ;;  %v3991_v17 = vld [vmem:[%s7395_s3 + $0x988] sm:$0xff] }
 0x1f1   : > { %4529 = vmatpush3.msra.mxu1 %v3984_v55  ;;  %4495 = vmatprep.subr.mxu0 %v3967_v43  ;;  %v3943_v12 = vld [vmem:[%s7395_s3 + $0x808] sm:$0xff]  ;;  %v3958_v43 = vld [vmem:[%s7395_s3 + $0x880] sm:$0xff] }
 0x1f2   : > { %4530 = vmatprep.subr.mxu1 %v3999_v51  ;;  %4496 = vmatpush3.msra.mxu0 %v3951_v59  ;;  %v3975_v55 = vld [vmem:[%s7395_s3 + $0x908] sm:$0xff]  ;;  %v3990_v51 = vld [vmem:[%s7395_s3 + $0x980] sm:$0xff] }
 0x1f3   : > { %4531 = vmatpush3.msra.mxu1 %v3983_v7  ;;  %4497 = vmatprep.subr.mxu0 %v3966_v35  ;;  %v3942_v59 = vld [vmem:[%s7395_s3 + $0x800] sm:$0xff]  ;;  %v4037_v35 = vld [vmem:[%s7395_s3 + $0xaf8] sm:$0xff] }
 0x1f4   : > { %4532 = vmatprep.subr.mxu1 %v3998_v40  ;;  %4498 = vmatpush3.msra.mxu0 %v3950_v1  ;;  %v3974_v7 = vld [vmem:[%s7395_s3 + $0x900] sm:$0xff]  ;;  %v4069_v40 = vld [vmem:[%s7395_s3 + $0xbf8] sm:$0xff] }
 0x1f5   : > { %4533 = vmatpush3.msra.mxu1 %v3982_v48  ;;  %4499 = vmatprep.subr.mxu0 %v3965_v57  ;;  %v4021_v1 = vld [vmem:[%s7395_s3 + $0xa78] sm:$0xff]  ;;  %v4036_v57 = vld [vmem:[%s7395_s3 + $0xaf0] sm:$0xff] }
 0x1f6   : > { %4534 = vmatprep.subr.mxu1 %v3997_v46  ;;  %4500 = vmatpush3.msra.mxu0 %v3949_v63  ;;  %v4053_v48 = vld [vmem:[%s7395_s3 + $0xb78] sm:$0xff]  ;;  %v4068_v46 = vld [vmem:[%s7395_s3 + $0xbf0] sm:$0xff]  ;;  %v4051_v63 = vld [vmem:[%s7395_s3 + $0xb68] sm:$0xff] }
 0x1f7   : > { %4535 = vmatpush3.msra.mxu1 %v3981_v33  ;;  %4501 = vmatprep.subr.mxu0 %v3964_v44  ;;  %v4050_v33 = vld [vmem:[%s7395_s3 + $0xb60] sm:$0xff]  ;;  %v4033_v44 = vld [vmem:[%s7395_s3 + $0xad8] sm:$0xff] }
 0x1f8   : > { %4536 = vmatprep.subr.mxu1 %v3996_v8  ;;  %4502 = vmatpush3.msra.mxu0 %v3948_v47  ;;  %v4065_v8 = vld [vmem:[%s7395_s3 + $0xbd8] sm:$0xff] }
 0x1f9   : > { %4537 = vmatpush3.msra.mxu1 %v3980_v50  ;;  %4503 = vmatprep.subr.mxu0 %v3963_v0  ;;  %v4017_v47 = vld [vmem:[%s7395_s3 + $0xa58] sm:$0xff]  ;;  %v4032_v0 = vld [vmem:[%s7395_s3 + $0xad0] sm:$0xff] }
 0x1fa   : > { %4538 = vmatprep.subr.mxu1 %v3995_v29  ;;  %4504 = vmatpush3.msra.mxu0 %v3947_v34  ;;  %v4049_v50 = vld [vmem:[%s7395_s3 + $0xb58] sm:$0xff]  ;;  %v4064_v29 = vld [vmem:[%s7395_s3 + $0xbd0] sm:$0xff] }
 0x1fb   : > { %4539 = vmatpush3.msra.mxu1 %v3979_v45  ;;  %4505 = vmatprep.subr.mxu0 %v3962_v52  ;;  %v4016_v34 = vld [vmem:[%s7395_s3 + $0xa50] sm:$0xff]  ;;  %v4031_v52 = vld [vmem:[%s7395_s3 + $0xac8] sm:$0xff] }
 0x1fc   : > { %4540 = vmatprep.subr.mxu1 %v3994_v4  ;;  %4506 = vmatpush3.msra.mxu0 %v3946_v11  ;;  %v4048_v45 = vld [vmem:[%s7395_s3 + $0xb50] sm:$0xff]  ;;  %v4063_v4 = vld [vmem:[%s7395_s3 + $0xbc8] sm:$0xff] }
 0x1fd   : > { %4541 = vmatpush3.msra.mxu1 %v3978_v16  ;;  %4507 = vmatprep.subr.mxu0 %v3961_v36  ;;  %v4015_v11 = vld [vmem:[%s7395_s3 + $0xa48] sm:$0xff]  ;;  %v4030_v36 = vld [vmem:[%s7395_s3 + $0xac0] sm:$0xff] }
 0x1fe   : > { %4542 = vmatprep.subr.mxu1 %v3993_v23  ;;  %4508 = vmatpush3.msra.mxu0 %v3945_v31  ;;  %v4047_v16 = vld [vmem:[%s7395_s3 + $0xb48] sm:$0xff]  ;;  %v4062_v23 = vld [vmem:[%s7395_s3 + $0xbc0] sm:$0xff] }
 0x1ff   : > { %4543 = vmatpush3.msra.mxu1 %v3977_v19  ;;  %4509 = vmatprep.subr.mxu0 %v3960_v30  ;;  %v4014_v31 = vld [vmem:[%s7395_s3 + $0xa40] sm:$0xff]  ;;  %v4029_v30 = vld [vmem:[%s7395_s3 + $0xab8] sm:$0xff] }
 0x200   : > { %4544 = vmatprep.subr.mxu1 %v3992_v25  ;;  %4510 = vmatpush3.msra.mxu0 %v3944_v32  ;;  %v4046_v19 = vld [vmem:[%s7395_s3 + $0xb40] sm:$0xff]  ;;  %v4061_v25 = vld [vmem:[%s7395_s3 + $0xbb8] sm:$0xff] }
 0x201   : > { %4545 = vmatpush3.msra.mxu1 %v3976_v18  ;;  %4511 = vmatprep.subr.mxu0 %v3959_v41  ;;  %v4013_v32 = vld [vmem:[%s7395_s3 + $0xa38] sm:$0xff]  ;;  %v4028_v41 = vld [vmem:[%s7395_s3 + $0xab0] sm:$0xff] }
 0x202   : > { %4546 = vmatprep.subr.mxu1 %v3991_v17  ;;  %4512 = vmatpush3.msra.mxu0 %v3943_v12  ;;  %v4045_v18 = vld [vmem:[%s7395_s3 + $0xb38] sm:$0xff]  ;;  %v4060_v17 = vld [vmem:[%s7395_s3 + $0xbb0] sm:$0xff] }
 0x203   : > { %4547 = vmatpush3.msra.mxu1 %v3975_v55  ;;  %4513 = vmatprep.subr.mxu0 %v3958_v43  ;;  %v4012_v12 = vld [vmem:[%s7395_s3 + $0xa30] sm:$0xff]  ;;  %v4027_v43 = vld [vmem:[%s7395_s3 + $0xaa8] sm:$0xff] }
 0x204   : > { %4548 = vmatprep.subr.mxu1 %v3990_v51  ;;  %4514 = vmatpush3.msra.mxu0 %v3942_v59  ;;  %v4044_v55 = vld [vmem:[%s7395_s3 + $0xb30] sm:$0xff]  ;;  %v4059_v51 = vld [vmem:[%s7395_s3 + $0xba8] sm:$0xff] }
 0x205   : > { %4549 = vmatpush3.msra.mxu1 %v3974_v7  ;;  %2812 = vmatmul.mubr.f32.vlgmr.msra.gmra.mxu0 %v1605_v10  ;;  %v4020_v10 = vld [vmem:[%s7395_s3 + $0xa70] sm:$0xff]  ;;  %v4011_v59 = vld [vmem:[%s7395_s3 + $0xa28] sm:$0xff] }
 0x206   : > { %2916 = vmatmul.mubr.f32.vlgmr.msra.gmra.mxu1 %v1606_v3  ;;  %4553 = vmatprep.subr.mxu0 %v4037_v35  ;;  %v4067_v3 = vld [vmem:[%s7395_s3 + $0xbe8] sm:$0xff]  ;;  %v4026_v35 = vld [vmem:[%s7395_s3 + $0xaa0] sm:$0xff] }
 0x207   : > { %4588 = vmatprep.subr.mxu1 %v4069_v40  ;;  %4554 = vmatpush3.msra.mxu0 %v4021_v1  ;;  %v4043_v7 = vld [vmem:[%s7395_s3 + $0xb28] sm:$0xff]  ;;  %v4058_v40 = vld [vmem:[%s7395_s3 + $0xba0] sm:$0xff] }
 0x208   : > { %3019 = vmatprep.mubr.f32.mxu0 %v1879_v28  ;;  %4589 = vmatpush3.msra.mxu1 %v4053_v48  ;;  %v4019_v28 = vld [vmem:[%s7395_s3 + $0xa68] sm:$0xff]  ;;  %v4010_v1 = vld [vmem:[%s7395_s3 + $0xa20] sm:$0xff] }
 0x209   : > { %3123 = vmatprep.mubr.f32.mxu1 %v1880_v6  ;;  %4555 = vmatprep.subr.mxu0 %v4036_v57  ;;  %v4018_v6 = vld [vmem:[%s7395_s3 + $0xa60] sm:$0xff]  ;;  %v4025_v57 = vld [vmem:[%s7395_s3 + $0xa98] sm:$0xff] }
 0x20a   : > { %4590 = vmatprep.subr.mxu1 %v4068_v46  ;;  %4556 = vmatpush3.msra.mxu0 %v4020_v10  ;;  %v4042_v48 = vld [vmem:[%s7395_s3 + $0xb20] sm:$0xff]  ;;  %v4057_v46 = vld [vmem:[%s7395_s3 + $0xb98] sm:$0xff] }
 0x20b   : > { %4591 = vmatpush3.msra.mxu1 %v4052_v9  ;;  %4557 = vmatprep.subr.mxu0 %v4035_v21  ;;  %v4009_v10 = vld [vmem:[%s7395_s3 + $0xa18] sm:$0xff]  ;;  %v4024_v21 = vld [vmem:[%s7395_s3 + $0xa90] sm:$0xff] }
 0x20c   : > { %4592 = vmatprep.subr.mxu1 %v4067_v3  ;;  %4558 = vmatpush3.msra.mxu0 %v4019_v28  ;;  %v4041_v9 = vld [vmem:[%s7395_s3 + $0xb18] sm:$0xff]  ;;  %v4056_v3 = vld [vmem:[%s7395_s3 + $0xb90] sm:$0xff] }
 0x20d   : > { %4593 = vmatpush3.msra.mxu1 %v4051_v63  ;;  %4559 = vmatprep.subr.mxu0 %v4034_v14  ;;  %v4008_v28 = vld [vmem:[%s7395_s3 + $0xa10] sm:$0xff]  ;;  %v4023_v14 = vld [vmem:[%s7395_s3 + $0xa88] sm:$0xff] }
 0x20e   : > { %4594 = vmatprep.subr.mxu1 %v4066_v53  ;;  %4560 = vmatpush3.msra.mxu0 %v4018_v6  ;;  %v4040_v63 = vld [vmem:[%s7395_s3 + $0xb10] sm:$0xff]  ;;  %v4055_v53 = vld [vmem:[%s7395_s3 + $0xb88] sm:$0xff] }
 0x20f   : > { %4595 = vmatpush3.msra.mxu1 %v4050_v33  ;;  %4561 = vmatprep.subr.mxu0 %v4033_v44  ;;  %v4007_v6 = vld [vmem:[%s7395_s3 + $0xa08] sm:$0xff]  ;;  %v4022_v44 = vld [vmem:[%s7395_s3 + $0xa80] sm:$0xff] }
 0x210   : > { %4596 = vmatprep.subr.mxu1 %v4065_v8  ;;  %4562 = vmatpush3.msra.mxu0 %v4017_v47  ;;  %v4039_v33 = vld [vmem:[%s7395_s3 + $0xb08] sm:$0xff]  ;;  %v4054_v8 = vld [vmem:[%s7395_s3 + $0xb80] sm:$0xff] }
 0x211   : > { %4597 = vmatpush3.msra.mxu1 %v4049_v50  ;;  %4563 = vmatprep.subr.mxu0 %v4032_v0  ;;  %v4006_v47 = vld [vmem:[%s7395_s3 + $0xa00] sm:$0xff]  ;;  %v4101_v0 = vld [vmem:[%s7395_s3 + $0xcf8] sm:$0xff] }
 0x212   : > { %4598 = vmatprep.subr.mxu1 %v4064_v29  ;;  %4564 = vmatpush3.msra.mxu0 %v4016_v34  ;;  %v4038_v50 = vld [vmem:[%s7395_s3 + $0xb00] sm:$0xff]  ;;  %v4133_v29 = vld [vmem:[%s7395_s3 + $0xdf8] sm:$0xff] }
 0x213   : > { %4599 = vmatpush3.msra.mxu1 %v4048_v45  ;;  %4565 = vmatprep.subr.mxu0 %v4031_v52  ;;  %v4085_v34 = vld [vmem:[%s7395_s3 + $0xc78] sm:$0xff]  ;;  %v4100_v52 = vld [vmem:[%s7395_s3 + $0xcf0] sm:$0xff] }
 0x214   : > { %4600 = vmatprep.subr.mxu1 %v4063_v4  ;;  %4566 = vmatpush3.msra.mxu0 %v4015_v11  ;;  %v4117_v45 = vld [vmem:[%s7395_s3 + $0xd78] sm:$0xff]  ;;  %v4132_v4 = vld [vmem:[%s7395_s3 + $0xdf0] sm:$0xff]  ;;  %v4115_v11 = vld [vmem:[%s7395_s3 + $0xd68] sm:$0xff] }
 0x215   : > { %4601 = vmatpush3.msra.mxu1 %v4047_v16  ;;  %4567 = vmatprep.subr.mxu0 %v4030_v36  ;;  %v4114_v16 = vld [vmem:[%s7395_s3 + $0xd60] sm:$0xff]  ;;  %v4097_v36 = vld [vmem:[%s7395_s3 + $0xcd8] sm:$0xff] }
 0x216   : > { %4602 = vmatprep.subr.mxu1 %v4062_v23  ;;  %4568 = vmatpush3.msra.mxu0 %v4014_v31  ;;  %v4129_v23 = vld [vmem:[%s7395_s3 + $0xdd8] sm:$0xff] }
 0x217   : > { %4603 = vmatpush3.msra.mxu1 %v4046_v19  ;;  %4569 = vmatprep.subr.mxu0 %v4029_v30  ;;  %v4081_v31 = vld [vmem:[%s7395_s3 + $0xc58] sm:$0xff]  ;;  %v4096_v30 = vld [vmem:[%s7395_s3 + $0xcd0] sm:$0xff] }
 0x218   : > { %4604 = vmatprep.subr.mxu1 %v4061_v25  ;;  %4570 = vmatpush3.msra.mxu0 %v4013_v32  ;;  %v4113_v19 = vld [vmem:[%s7395_s3 + $0xd58] sm:$0xff]  ;;  %v4128_v25 = vld [vmem:[%s7395_s3 + $0xdd0] sm:$0xff] }
 0x219   : > { %4605 = vmatpush3.msra.mxu1 %v4045_v18  ;;  %4571 = vmatprep.subr.mxu0 %v4028_v41  ;;  %v4080_v32 = vld [vmem:[%s7395_s3 + $0xc50] sm:$0xff]  ;;  %v4095_v41 = vld [vmem:[%s7395_s3 + $0xcc8] sm:$0xff] }
 0x21a   : > { %4606 = vmatprep.subr.mxu1 %v4060_v17  ;;  %4572 = vmatpush3.msra.mxu0 %v4012_v12  ;;  %v4112_v18 = vld [vmem:[%s7395_s3 + $0xd50] sm:$0xff]  ;;  %v4127_v17 = vld [vmem:[%s7395_s3 + $0xdc8] sm:$0xff] }
 0x21b   : > { %4607 = vmatpush3.msra.mxu1 %v4044_v55  ;;  %4573 = vmatprep.subr.mxu0 %v4027_v43  ;;  %v4079_v12 = vld [vmem:[%s7395_s3 + $0xc48] sm:$0xff]  ;;  %v4094_v43 = vld [vmem:[%s7395_s3 + $0xcc0] sm:$0xff] }
 0x21c   : > { %4608 = vmatprep.subr.mxu1 %v4059_v51  ;;  %4574 = vmatpush3.msra.mxu0 %v4011_v59  ;;  %v4111_v55 = vld [vmem:[%s7395_s3 + $0xd48] sm:$0xff]  ;;  %v4126_v51 = vld [vmem:[%s7395_s3 + $0xdc0] sm:$0xff] }
 0x21d   : > { %4609 = vmatpush3.msra.mxu1 %v4043_v7  ;;  %4575 = vmatprep.subr.mxu0 %v4026_v35  ;;  %v4078_v59 = vld [vmem:[%s7395_s3 + $0xc40] sm:$0xff]  ;;  %v4093_v35 = vld [vmem:[%s7395_s3 + $0xcb8] sm:$0xff] }
 0x21e   : > { %4610 = vmatprep.subr.mxu1 %v4058_v40  ;;  %4576 = vmatpush3.msra.mxu0 %v4010_v1  ;;  %v4110_v7 = vld [vmem:[%s7395_s3 + $0xd40] sm:$0xff]  ;;  %v4125_v40 = vld [vmem:[%s7395_s3 + $0xdb8] sm:$0xff] }
 0x21f   : > { %4611 = vmatpush3.msra.mxu1 %v4042_v48  ;;  %4577 = vmatprep.subr.mxu0 %v4025_v57  ;;  %v4077_v1 = vld [vmem:[%s7395_s3 + $0xc38] sm:$0xff]  ;;  %v4092_v57 = vld [vmem:[%s7395_s3 + $0xcb0] sm:$0xff] }
 0x220   : > { %4612 = vmatprep.subr.mxu1 %v4057_v46  ;;  %4578 = vmatpush3.msra.mxu0 %v4009_v10  ;;  %v4109_v48 = vld [vmem:[%s7395_s3 + $0xd38] sm:$0xff]  ;;  %v4124_v46 = vld [vmem:[%s7395_s3 + $0xdb0] sm:$0xff] }
 0x221   : > { %4613 = vmatpush3.msra.mxu1 %v4041_v9  ;;  %4579 = vmatprep.subr.mxu0 %v4024_v21  ;;  %v4076_v10 = vld [vmem:[%s7395_s3 + $0xc30] sm:$0xff]  ;;  %v4091_v21 = vld [vmem:[%s7395_s3 + $0xca8] sm:$0xff] }
 0x222   : > { %4614 = vmatprep.subr.mxu1 %v4056_v3  ;;  %4580 = vmatpush3.msra.mxu0 %v4008_v28  ;;  %v4108_v9 = vld [vmem:[%s7395_s3 + $0xd30] sm:$0xff]  ;;  %v4123_v3 = vld [vmem:[%s7395_s3 + $0xda8] sm:$0xff] }
 0x223   : > { %4615 = vmatpush3.msra.mxu1 %v4040_v63  ;;  %4581 = vmatprep.subr.mxu0 %v4023_v14  ;;  %v4075_v28 = vld [vmem:[%s7395_s3 + $0xc28] sm:$0xff]  ;;  %v4090_v14 = vld [vmem:[%s7395_s3 + $0xca0] sm:$0xff] }
 0x224   : > { %4616 = vmatprep.subr.mxu1 %v4055_v53  ;;  %4582 = vmatpush3.msra.mxu0 %v4007_v6  ;;  %v4107_v63 = vld [vmem:[%s7395_s3 + $0xd28] sm:$0xff]  ;;  %v4122_v53 = vld [vmem:[%s7395_s3 + $0xda0] sm:$0xff] }
 0x225   : > { %4617 = vmatpush3.msra.mxu1 %v4039_v33  ;;  %4583 = vmatprep.subr.mxu0 %v4022_v44  ;;  %v4074_v6 = vld [vmem:[%s7395_s3 + $0xc20] sm:$0xff]  ;;  %v4089_v44 = vld [vmem:[%s7395_s3 + $0xc98] sm:$0xff] }
 0x226   : > { %4618 = vmatprep.subr.mxu1 %v4054_v8  ;;  %4584 = vmatpush3.msra.mxu0 %v4006_v47  ;;  %v4106_v33 = vld [vmem:[%s7395_s3 + $0xd20] sm:$0xff]  ;;  %v4121_v8 = vld [vmem:[%s7395_s3 + $0xd98] sm:$0xff] }
 0x227   : > { %4619 = vmatpush3.msra.mxu1 %v4038_v50  ;;  %3020 = vmatmul.mubr.f32.vlgmr.msra.gmra.mxu0 %v1607_v39  ;;  %v4084_v39 = vld [vmem:[%s7395_s3 + $0xc70] sm:$0xff]  ;;  %v4073_v47 = vld [vmem:[%s7395_s3 + $0xc18] sm:$0xff] }
 0x228   : > { %3124 = vmatmul.mubr.f32.vlgmr.msra.gmra.mxu1 %v1608_v20  ;;  %4623 = vmatprep.subr.mxu0 %v4101_v0  ;;  %v4131_v20 = vld [vmem:[%s7395_s3 + $0xde8] sm:$0xff]  ;;  %v4105_v50 = vld [vmem:[%s7395_s3 + $0xd18] sm:$0xff]  ;;  %v4088_v0 = vld [vmem:[%s7395_s3 + $0xc90] sm:$0xff] }
 0x229   : > { %4658 = vmatprep.subr.mxu1 %v4133_v29  ;;  %4624 = vmatpush3.msra.mxu0 %v4085_v34  ;;  %v4120_v29 = vld [vmem:[%s7395_s3 + $0xd90] sm:$0xff] }
 0x22a   : > { %3227 = vmatprep.mubr.f32.mxu0 %v1881_v24  ;;  %4659 = vmatpush3.msra.mxu1 %v4117_v45  ;;  %v4083_v24 = vld [vmem:[%s7395_s3 + $0xc68] sm:$0xff]  ;;  %v4072_v34 = vld [vmem:[%s7395_s3 + $0xc10] sm:$0xff] }
 0x22b   : > { %3331 = vmatprep.mubr.f32.mxu1 %v1882_v27  ;;  %4625 = vmatprep.subr.mxu0 %v4100_v52  ;;  %v4082_v27 = vld [vmem:[%s7395_s3 + $0xc60] sm:$0xff]  ;;  %v4104_v45 = vld [vmem:[%s7395_s3 + $0xd10] sm:$0xff]  ;;  %v4087_v52 = vld [vmem:[%s7395_s3 + $0xc88] sm:$0xff] }
 0x22c   : > { %4660 = vmatprep.subr.mxu1 %v4132_v4  ;;  %4626 = vmatpush3.msra.mxu0 %v4084_v39  ;;  %v4119_v4 = vld [vmem:[%s7395_s3 + $0xd88] sm:$0xff] }
 0x22d   : > { %4661 = vmatpush3.msra.mxu1 %v4116_v60  ;;  %4627 = vmatprep.subr.mxu0 %v4099_v37  ;;  %v4071_v39 = vld [vmem:[%s7395_s3 + $0xc08] sm:$0xff]  ;;  %v4086_v37 = vld [vmem:[%s7395_s3 + $0xc80] sm:$0xff] }
 0x22e   : > { %4662 = vmatprep.subr.mxu1 %v4131_v20  ;;  %4628 = vmatpush3.msra.mxu0 %v4083_v24  ;;  %v4103_v60 = vld [vmem:[%s7395_s3 + $0xd08] sm:$0xff]  ;;  %v4118_v20 = vld [vmem:[%s7395_s3 + $0xd80] sm:$0xff] }
 0x22f   : > { %4663 = vmatpush3.msra.mxu1 %v4115_v11  ;;  %4629 = vmatprep.subr.mxu0 %v4098_v38  ;;  %v4070_v24 = vld [vmem:[%s7395_s3 + $0xc00] sm:$0xff]  ;;  %v4165_v38 = vld [vmem:[%s7395_s3 + $0xef8] sm:$0xff] }
 0x230   : > { %4664 = vmatprep.subr.mxu1 %v4130_v42  ;;  %4630 = vmatpush3.msra.mxu0 %v4082_v27  ;;  %v4102_v11 = vld [vmem:[%s7395_s3 + $0xd00] sm:$0xff]  ;;  %v4197_v42 = vld [vmem:[%s7395_s3 + $0xff8] sm:$0xff] }
 0x231   : > { %4665 = vmatpush3.msra.mxu1 %v4114_v16  ;;  %4631 = vmatprep.subr.mxu0 %v4097_v36  ;;  %v4149_v27 = vld [vmem:[%s7395_s3 + $0xe78] sm:$0xff]  ;;  %v4164_v36 = vld [vmem:[%s7395_s3 + $0xef0] sm:$0xff] }
 0x232   : > { %4666 = vmatprep.subr.mxu1 %v4129_v23  ;;  %4632 = vmatpush3.msra.mxu0 %v4081_v31  ;;  %v4181_v16 = vld [vmem:[%s7395_s3 + $0xf78] sm:$0xff]  ;;  %v4196_v23 = vld [vmem:[%s7395_s3 + $0xff0] sm:$0xff]  ;;  %v4179_v31 = vld [vmem:[%s7395_s3 + $0xf68] sm:$0xff] }
 0x233   : > { %4667 = vmatpush3.msra.mxu1 %v4113_v19  ;;  %4633 = vmatprep.subr.mxu0 %v4096_v30  ;;  %v4178_v19 = vld [vmem:[%s7395_s3 + $0xf60] sm:$0xff]  ;;  %v4161_v30 = vld [vmem:[%s7395_s3 + $0xed8] sm:$0xff] }
 0x234   : > { %4668 = vmatprep.subr.mxu1 %v4128_v25  ;;  %4634 = vmatpush3.msra.mxu0 %v4080_v32  ;;  %v4193_v25 = vld [vmem:[%s7395_s3 + $0xfd8] sm:$0xff] }
 0x235   : > { %4669 = vmatpush3.msra.mxu1 %v4112_v18  ;;  %4635 = vmatprep.subr.mxu0 %v4095_v41  ;;  %v4145_v32 = vld [vmem:[%s7395_s3 + $0xe58] sm:$0xff]  ;;  %v4160_v41 = vld [vmem:[%s7395_s3 + $0xed0] sm:$0xff] }
 0x236   : > { %4670 = vmatprep.subr.mxu1 %v4127_v17  ;;  %4636 = vmatpush3.msra.mxu0 %v4079_v12  ;;  %v4177_v18 = vld [vmem:[%s7395_s3 + $0xf58] sm:$0xff]  ;;  %v4192_v17 = vld [vmem:[%s7395_s3 + $0xfd0] sm:$0xff] }
 0x237   : > { %4671 = vmatpush3.msra.mxu1 %v4111_v55  ;;  %4637 = vmatprep.subr.mxu0 %v4094_v43  ;;  %v4144_v12 = vld [vmem:[%s7395_s3 + $0xe50] sm:$0xff]  ;;  %v4159_v43 = vld [vmem:[%s7395_s3 + $0xec8] sm:$0xff] }
 0x238   : > { %4672 = vmatprep.subr.mxu1 %v4126_v51  ;;  %4638 = vmatpush3.msra.mxu0 %v4078_v59  ;;  %v4176_v55 = vld [vmem:[%s7395_s3 + $0xf50] sm:$0xff]  ;;  %v4191_v51 = vld [vmem:[%s7395_s3 + $0xfc8] sm:$0xff] }
 0x239   : > { %4673 = vmatpush3.msra.mxu1 %v4110_v7  ;;  %4639 = vmatprep.subr.mxu0 %v4093_v35  ;;  %v4143_v59 = vld [vmem:[%s7395_s3 + $0xe48] sm:$0xff]  ;;  %v4158_v35 = vld [vmem:[%s7395_s3 + $0xec0] sm:$0xff] }
 0x23a   : > { %4674 = vmatprep.subr.mxu1 %v4125_v40  ;;  %4640 = vmatpush3.msra.mxu0 %v4077_v1  ;;  %v4175_v7 = vld [vmem:[%s7395_s3 + $0xf48] sm:$0xff]  ;;  %v4190_v40 = vld [vmem:[%s7395_s3 + $0xfc0] sm:$0xff] }
 0x23b   : > { %4675 = vmatpush3.msra.mxu1 %v4109_v48  ;;  %4641 = vmatprep.subr.mxu0 %v4092_v57  ;;  %v4142_v1 = vld [vmem:[%s7395_s3 + $0xe40] sm:$0xff]  ;;  %v4157_v57 = vld [vmem:[%s7395_s3 + $0xeb8] sm:$0xff] }
 0x23c   : > { %4676 = vmatprep.subr.mxu1 %v4124_v46  ;;  %4642 = vmatpush3.msra.mxu0 %v4076_v10  ;;  %v4174_v48 = vld [vmem:[%s7395_s3 + $0xf40] sm:$0xff]  ;;  %v4189_v46 = vld [vmem:[%s7395_s3 + $0xfb8] sm:$0xff] }
 0x23d   : > { %4677 = vmatpush3.msra.mxu1 %v4108_v9  ;;  %4643 = vmatprep.subr.mxu0 %v4091_v21  ;;  %v4141_v10 = vld [vmem:[%s7395_s3 + $0xe38] sm:$0xff]  ;;  %v4156_v21 = vld [vmem:[%s7395_s3 + $0xeb0] sm:$0xff] }
 0x23e   : > { %4678 = vmatprep.subr.mxu1 %v4123_v3  ;;  %4644 = vmatpush3.msra.mxu0 %v4075_v28  ;;  %v4173_v9 = vld [vmem:[%s7395_s3 + $0xf38] sm:$0xff]  ;;  %v4188_v3 = vld [vmem:[%s7395_s3 + $0xfb0] sm:$0xff] }
 0x23f   : > { %4679 = vmatpush3.msra.mxu1 %v4107_v63  ;;  %4645 = vmatprep.subr.mxu0 %v4090_v14  ;;  %v4140_v28 = vld [vmem:[%s7395_s3 + $0xe30] sm:$0xff]  ;;  %v4155_v14 = vld [vmem:[%s7395_s3 + $0xea8] sm:$0xff] }
 0x240   : > { %4680 = vmatprep.subr.mxu1 %v4122_v53  ;;  %4646 = vmatpush3.msra.mxu0 %v4074_v6  ;;  %v4172_v63 = vld [vmem:[%s7395_s3 + $0xf30] sm:$0xff]  ;;  %v4187_v53 = vld [vmem:[%s7395_s3 + $0xfa8] sm:$0xff] }
 0x241   : > { %4681 = vmatpush3.msra.mxu1 %v4106_v33  ;;  %4647 = vmatprep.subr.mxu0 %v4089_v44  ;;  %v4139_v6 = vld [vmem:[%s7395_s3 + $0xe28] sm:$0xff]  ;;  %v4154_v44 = vld [vmem:[%s7395_s3 + $0xea0] sm:$0xff] }
 0x242   : > { %4682 = vmatprep.subr.mxu1 %v4121_v8  ;;  %4648 = vmatpush3.msra.mxu0 %v4073_v47  ;;  %v4171_v33 = vld [vmem:[%s7395_s3 + $0xf28] sm:$0xff]  ;;  %v4186_v8 = vld [vmem:[%s7395_s3 + $0xfa0] sm:$0xff] }
 0x243   : > { %4683 = vmatpush3.msra.mxu1 %v4105_v50  ;;  %4649 = vmatprep.subr.mxu0 %v4088_v0  ;;  %v4138_v47 = vld [vmem:[%s7395_s3 + $0xe20] sm:$0xff]  ;;  %v4153_v0 = vld [vmem:[%s7395_s3 + $0xe98] sm:$0xff] }
 0x244   : > { %4684 = vmatprep.subr.mxu1 %v4120_v29  ;;  %4650 = vmatpush3.msra.mxu0 %v4072_v34  ;;  %v4170_v50 = vld [vmem:[%s7395_s3 + $0xf20] sm:$0xff]  ;;  %v4185_v29 = vld [vmem:[%s7395_s3 + $0xf98] sm:$0xff] }
 0x245   : > { %4685 = vmatpush3.msra.mxu1 %v4104_v45  ;;  %4651 = vmatprep.subr.mxu0 %v4087_v52  ;;  %v4137_v34 = vld [vmem:[%s7395_s3 + $0xe18] sm:$0xff]  ;;  %v4152_v52 = vld [vmem:[%s7395_s3 + $0xe90] sm:$0xff] }
 0x246   : > { %4686 = vmatprep.subr.mxu1 %v4119_v4  ;;  %4652 = vmatpush3.msra.mxu0 %v4071_v39  ;;  %v4169_v45 = vld [vmem:[%s7395_s3 + $0xf18] sm:$0xff]  ;;  %v4184_v4 = vld [vmem:[%s7395_s3 + $0xf90] sm:$0xff] }
 0x247   : > { %4687 = vmatpush3.msra.mxu1 %v4103_v60  ;;  %4653 = vmatprep.subr.mxu0 %v4086_v37  ;;  %v4136_v39 = vld [vmem:[%s7395_s3 + $0xe10] sm:$0xff]  ;;  %v4151_v37 = vld [vmem:[%s7395_s3 + $0xe88] sm:$0xff] }
 0x248   : > { %4688 = vmatprep.subr.mxu1 %v4118_v20  ;;  %4654 = vmatpush3.msra.mxu0 %v4070_v24  ;;  %v4168_v60 = vld [vmem:[%s7395_s3 + $0xf10] sm:$0xff]  ;;  %v4183_v20 = vld [vmem:[%s7395_s3 + $0xf88] sm:$0xff] }
 0x249   : > { %4689 = vmatpush3.msra.mxu1 %v4102_v11  ;;  %3228 = vmatmul.mubr.f32.vlgmr.msra.gmra.mxu0 %v1609_v2  ;;  %v4148_v2 = vld [vmem:[%s7395_s3 + $0xe70] sm:$0xff]  ;;  %v4135_v24 = vld [vmem:[%s7395_s3 + $0xe08] sm:$0xff] }
 0x24a   : > { %3332 = vmatmul.mubr.f32.vlgmr.msra.gmra.mxu1 %v1610_v26  ;;  %4693 = vmatprep.subr.mxu0 %v4165_v38  ;;  %v4195_v26 = vld [vmem:[%s7395_s3 + $0xfe8] sm:$0xff]  ;;  %v4150_v38 = vld [vmem:[%s7395_s3 + $0xe80] sm:$0xff] }
 0x24b   : > { %4728 = vmatprep.subr.mxu1 %v4197_v42  ;;  %4694 = vmatpush3.msra.mxu0 %v4149_v27  ;;  %v4167_v11 = vld [vmem:[%s7395_s3 + $0xf08] sm:$0xff]  ;;  %v4182_v42 = vld [vmem:[%s7395_s3 + $0xf80] sm:$0xff] }
 0x24c   : > { %3435 = vmatprep.mubr.f32.mxu0 %v1883_v61  ;;  %4729 = vmatpush3.msra.mxu1 %v4181_v16  ;;  %v4147_v61 = vld [vmem:[%s7395_s3 + $0xe68] sm:$0xff]  ;;  %v4134_v27 = vld [vmem:[%s7395_s3 + $0xe00] sm:$0xff] }
 0x24d   : > { %3539 = vmatprep.mubr.f32.mxu1 %v1884_v13  ;;  %4695 = vmatprep.subr.mxu0 %v4164_v36  ;;  %v4146_v13 = vld [vmem:[%s7395_s3 + $0xe60] sm:$0xff]  ;;  %v4235_v36 = vpop.f32.mrf.mxu0 }
 0x24e   : > { %4730 = vmatprep.subr.mxu1 %v4196_v23  ;;  %4696 = vmatpush3.msra.mxu0 %v4148_v2  ;;  %v4166_v16 = vld [vmem:[%s7395_s3 + $0xf00] sm:$0xff]  ;;  %v4270_v23 = vpop.f32.mrf.mxu1 }
 0x24f   : > { %4731 = vmatpush3.msra.mxu1 %v4180_v5  ;;  %4697 = vmatprep.subr.mxu0 %v4163_v62  ;;  %v4236_v2 = vpop.f32.mrf.mxu0 }
 0x250   : > { %4732 = vmatprep.subr.mxu1 %v4195_v26  ;;  %4698 = vmatpush3.msra.mxu0 %v4147_v61  ;;  %v4271_v62 = vpop.f32.mrf.mxu1  ;;  %v4237_v61 = vadd.f32 %v4236_v2, %v4235_v36 }
 0x251   : > { %4733 = vmatpush3.msra.mxu1 %v4179_v31  ;;  %4699 = vmatprep.subr.mxu0 %v4162_v22  ;;  %v4272_v31 = vadd.f32 %v4271_v62, %v4270_v23 }
 0x252   : > { %4734 = vmatprep.subr.mxu1 %v4194_v15  ;;  %4700 = vmatpush3.msra.mxu0 %v4146_v13 }
 0x253   : > { %4735 = vmatpush3.msra.mxu1 %v4178_v19  ;;  %4701 = vmatprep.subr.mxu0 %v4161_v30  ;;  %v2087_v19 = vadd.f32 %v4272_v31, %v4237_v61 }
 0x254   : > { %4736 = vmatprep.subr.mxu1 %v4193_v25  ;;  %4702 = vmatpush3.msra.mxu0 %v4145_v32 }
 0x255   : > { %4737 = vmatpush3.msra.mxu1 %v4177_v18  ;;  %4703 = vmatprep.subr.mxu0 %v4160_v41 }
 0x256   : > { %4738 = vmatprep.subr.mxu1 %v4192_v17  ;;  %4704 = vmatpush3.msra.mxu0 %v4144_v12 }
 0x257   : > { %4739 = vmatpush3.msra.mxu1 %v4176_v55  ;;  %4705 = vmatprep.subr.mxu0 %v4159_v43 }
 0x258   : > { %4740 = vmatprep.subr.mxu1 %v4191_v51  ;;  %4706 = vmatpush3.msra.mxu0 %v4143_v59 }
 0x259   : > { %4741 = vmatpush3.msra.mxu1 %v4175_v7  ;;  %4707 = vmatprep.subr.mxu0 %v4158_v35 }
 0x25a   : > { %4742 = vmatprep.subr.mxu1 %v4190_v40  ;;  %4708 = vmatpush3.msra.mxu0 %v4142_v1 }
 0x25b   : > { %4743 = vmatpush3.msra.mxu1 %v4174_v48  ;;  %4709 = vmatprep.subr.mxu0 %v4157_v57 }
 0x25c   : > { %4744 = vmatprep.subr.mxu1 %v4189_v46  ;;  %4710 = vmatpush3.msra.mxu0 %v4141_v10 }
 0x25d   : > { %4745 = vmatpush3.msra.mxu1 %v4173_v9  ;;  %4711 = vmatprep.subr.mxu0 %v4156_v21 }
 0x25e   : > { %4746 = vmatprep.subr.mxu1 %v4188_v3  ;;  %4712 = vmatpush3.msra.mxu0 %v4140_v28 }
 0x25f   : > { %4747 = vmatpush3.msra.mxu1 %v4172_v63  ;;  %4713 = vmatprep.subr.mxu0 %v4155_v14  ;;  %v4305_v5 = vpop.f32.mrf.mxu0 }
 0x260   : > { %4748 = vmatprep.subr.mxu1 %v4187_v53  ;;  %4714 = vmatpush3.msra.mxu0 %v4139_v6  ;;  %v4340_v22 = vpop.f32.mrf.mxu1 }
 0x261   : > { %4749 = vmatpush3.msra.mxu1 %v4171_v33  ;;  %4715 = vmatprep.subr.mxu0 %v4154_v44  ;;  %v4306_v26 = vpop.f32.mrf.mxu0 }
 0x262   : > { %4750 = vmatprep.subr.mxu1 %v4186_v8  ;;  %4716 = vmatpush3.msra.mxu0 %v4138_v47  ;;  %v4307_v13 = vadd.f32 %v4306_v26, %v4305_v5  ;;  %v4341_v30 = vpop.f32.mrf.mxu1 }
 0x263   : > { %4751 = vmatpush3.msra.mxu1 %v4170_v50  ;;  %4717 = vmatprep.subr.mxu0 %v4153_v0  ;;  %v4342_v41 = vadd.f32 %v4341_v30, %v4340_v22 }
 0x264   : > { %4752 = vmatprep.subr.mxu1 %v4185_v29  ;;  %4718 = vmatpush3.msra.mxu0 %v4137_v34  ;;  %v2193_v32 = vadd.f32 %v4307_v13, %v2087_v19 }
 0x265   : > { %4753 = vmatpush3.msra.mxu1 %v4169_v45  ;;  %4719 = vmatprep.subr.mxu0 %v4152_v52 }
 0x266   : > { %4754 = vmatprep.subr.mxu1 %v4184_v4  ;;  %4720 = vmatpush3.msra.mxu0 %v4136_v39  ;;  %v2297_v54 = vadd.f32 %v4342_v41, %v2193_v32 }
 0x267   : > { %4755 = vmatpush3.msra.mxu1 %v4168_v60  ;;  %4721 = vmatprep.subr.mxu0 %v4151_v37 }
 0x268   : > { %4756 = vmatprep.subr.mxu1 %v4183_v20  ;;  %4722 = vmatpush3.msra.mxu0 %v4135_v24 }
 0x269   : > { %4757 = vmatpush3.msra.mxu1 %v4167_v11  ;;  %4723 = vmatprep.subr.mxu0 %v4150_v38 }
 0x26a   : > { %4758 = vmatprep.subr.mxu1 %v4182_v42  ;;  %4724 = vmatpush3.msra.mxu0 %v4134_v27  ;;  %v4198_v27 = vld [vmem:[%s7396_s4] ss:$0 sm:$0xff] }
 0x26b   : > { %4759 = vmatpush3.msra.mxu1 %v4166_v16  ;;  %3436 = vmatmul.mubr.f32.vlgmr.msra.gmra.mxu0 %v1611_v56 }
 0x26c   : > { %3540 = vmatmul.mubr.f32.vlgmr.msra.gmra.mxu1 %v1612_v58 }
 0x281   : > { %v4375_v15 = vpop.f32.mrf.mxu0 }
 0x282   : > { %v4410_v56 = vpop.f32.mrf.mxu1 }
 0x283   : > { %v4376_v25 = vpop.f32.mrf.mxu0 }
 0x284   : > { %v4377_v49 = vadd.f32 %v4376_v25, %v4375_v15  ;;  %v4411_v58 = vpop.f32.mrf.mxu1 }
 0x285   : > { %v4412_v51 = vadd.f32 %v4411_v58, %v4410_v56 }
 0x286   : > { %v2401_v12 = vadd.f32 %v4377_v49, %v2297_v54 }
 0x288   : > { %v2505_v7 = vadd.f32 %v4412_v51, %v2401_v12 }
 0x2a3   : > { %v4445_v18 = vpop.f32.mrf.mxu0 }
 0x2a4   : > { %v4480_v55 = vpop.f32.mrf.mxu1 }
 0x2a5   : > { %v4446_v17 = vpop.f32.mrf.mxu0 }
 0x2a6   : > { %v4447_v59 = vadd.f32 %v4446_v17, %v4445_v18  ;;  %v4481_v35 = vpop.f32.mrf.mxu1 }
 0x2a7   : > { %v4482_v46 = vadd.f32 %v4481_v35, %v4480_v55 }
 0x2a8   : > { %v2609_v1 = vadd.f32 %v4447_v59, %v2505_v7 }
 0x2aa   : > { %v2713_v9 = vadd.f32 %v4482_v46, %v2609_v1 }
 0x2c5   : > { %v4515_v43 = vpop.f32.mrf.mxu0 }
 0x2c6   : > { %v4550_v48 = vpop.f32.mrf.mxu1 }
 0x2c7   : > { %v4516_v40 = vpop.f32.mrf.mxu0 }
 0x2c8   : > { %v4517_v10 = vadd.f32 %v4516_v40, %v4515_v43  ;;  %v4551_v21 = vpop.f32.mrf.mxu1 }
 0x2c9   : > { %v4552_v53 = vadd.f32 %v4551_v21, %v4550_v48 }
 0x2ca   : > { %v2817_v28 = vadd.f32 %v4517_v10, %v2713_v9 }
 0x2cc   : > { %v2921_v33 = vadd.f32 %v4552_v53, %v2817_v28 }
 0x2e7   : > { %v4585_v57 = vpop.f32.mrf.mxu0 }
 0x2e8   : > { %v4620_v63 = vpop.f32.mrf.mxu1 }
 0x2e9   : > { %v4586_v3 = vpop.f32.mrf.mxu0 }
 0x2ea   : > { %v4587_v6 = vadd.f32 %v4586_v3, %v4585_v57  ;;  %v4621_v44 = vpop.f32.mrf.mxu1 }
 0x2eb   : > { %v4622_v0 = vadd.f32 %v4621_v44, %v4620_v63 }
 0x2ec   : > { %v3025_v47 = vadd.f32 %v4587_v6, %v2921_v33 }
 0x2ee   : > { %v3129_v34 = vadd.f32 %v4622_v0, %v3025_v47 }
 0x309   : > { %v4655_v14 = vpop.f32.mrf.mxu0 }
 0x30a   : > { %v4690_v50 = vpop.f32.mrf.mxu1 }
 0x30b   : > { %v4656_v8 = vpop.f32.mrf.mxu0 }
 0x30c   : > { %v4657_v29 = vadd.f32 %v4656_v8, %v4655_v14  ;;  %v4691_v45 = vpop.f32.mrf.mxu1 }
 0x30d   : > { %v4692_v39 = vadd.f32 %v4691_v45, %v4690_v50 }
 0x30e   : > { %v3233_v52 = vadd.f32 %v4657_v29, %v3129_v34 }
 0x310   : > { %v3337_v20 = vadd.f32 %v4692_v39, %v3233_v52 }
 0x32b   : > { %v4725_v4 = vpop.f32.mrf.mxu0 }
 0x32c   : > { %v4760_v60 = vpop.f32.mrf.mxu1 }
 0x32d   : > { %v4726_v37 = vpop.f32.mrf.mxu0 }
 0x32e   : > { %v4727_v24 = vadd.f32 %v4726_v37, %v4725_v4  ;;  %v4761_v11 = vpop.f32.mrf.mxu1 }
 0x32f   : > { %v4762_v42 = vadd.f32 %v4761_v11, %v4760_v60 }
 0x330   : > { %v3441_v38 = vadd.f32 %v4727_v24, %v3337_v20 }
 0x332   : > { %v3545_v16 = vadd.f32 %v4762_v42, %v3441_v38 }
 0x334   : > { %v3553_v36 = vadd.f32 %v4198_v27, %v3545_v16 }
 0x336   : > { %3554 = vst [vmem:[%s217_s11] sm:$0xff] %v3553_v36 }
 0x337   : > { %4824 = shalt.err (!%p4821_p3)
}
 0x338   : > { %s4825_s26 = scalar_lea.hbm %s3567_s15, 128  ;;  %s4829_s7 = scalar_lea.hbm %s7397_s5, 256 }
 0x339   : > { %p4826_p4 = scmp.ne.s32.totalorder %s3567_s15, %s4825_s26  ;;  %p4830_p9 = scmp.lt.s32.totalorder %s3567_s15, %s7397_s5 }
 0x33a   : > { %p4831_p10 = scmp.lt.s32.totalorder %s4829_s7, %s4825_s26 }
 0x33b   : > { %p4827_p7 = pnand %p4826_p4, %p4945_p5 }
 0x33c   : > { %p4832_p11 = por %p4831_p10, %p4830_p9 }
 0x33d   : > { %p4828_p8 = pneg %p4827_p7 }
 0x33f   : > { %p4833_p12 = pnand %p4832_p11, %p4828_p8 }
 0x341   : > { %4836 = shalt.err (!%p4833_p12)
}
 0x342   : > { %4764 = dma.vmem_to_hbm [thread:$0]  (%p4945_p5), %s3570_s12, 128, %s3567_s15, %s3556_s16  }
 0x343 PF: > { %p4770_p13 = scmp.ge.s32.totalorder %s4871_s21, 2  ;;  %s3581_s10 = sand.u32 1, %s4859_s18  }
 0x344   : > { %s3582_s11 = scalar_lea.sflag [#allocation3], %s3581_s10 }
 0x345   : > { %p4767_p0 = pnand %p4770_p13, %p4949_p6 }
 0x347   : > { %p4768_p1 = pneg %p4767_p0 }
 0x349   : > { %4854 = dma.done.wait (%p4768_p1), %s3582_s11, 128  }
 0x34a   : > { %4856 = vsyncadd (%p4768_p1), %s3582_s11, 4294967168  ;;  %p15_p2 = scmp.ge.s32.totalorder %s4932_s24, 4   ;;  %s7429_s18 = smov %s4863_s19 }
 0x34b   : > { %s7430_s19 = smov %s4867_s20  ;;  %s7431_s20 = smov %s4943_s27 }
 0x34c   : > { %s7432_s21 = smov %s4932_s24  ;;  %17 = sbr.rel (!%p15_p2) target bundleno = 3 (0x3), region = 90 }
 0x351   :  { %3587 = vsyncpa [#allocation3], 1 }
 0x352   :  { %3589 = vsyncpa [#allocation3 + $0x1], 1 }

</bundles_post_ra>
